<compile_context>
chip_gen: v7x
topology: tpu7x:2x2x1
jax: 0.10.0
libtpu: 0.0.40
codegen_flags: <defaults>
</compile_context>

<pallas_src>
import functools

import jax
import jax.numpy as jnp
from jax import lax
from jax.experimental import pallas as pl
from jax.experimental.pallas import tpu as pltpu

# ----------------- config -----------------
PATCH = 8            # module uses 32 (scaled down)
IMAGE = 32
CHANNELS = 3
D_MODEL = 128        # module uses 768 (scaled down, keeps head_dim = 64)
D_FF = 4 * D_MODEL
HEAD_DIM = 64
N_HEADS = D_MODEL // 64
ENC_LAYERS = 2       # module uses 12 (scaled down)
DEC_LAYERS = 2
N_LAYERS = ENC_LAYERS + DEC_LAYERS
N_CLS = 4
LN_EPS = 1e-5

GS = IMAGE // PATCH
N_PATCH = GS * GS                 # 16 patch tokens
S_ENC = 1 + N_PATCH               # 17: CLS + patches  (encoder sequence)
S_DEC = N_PATCH + N_CLS           # 20: patches + class embeddings (decoder sequence)
S_PAD = 24                        # sublane-aligned slab per batch element (mult. of 8)
CPP = CHANNELS * PATCH * PATCH    # 192
HW = IMAGE * IMAGE                # 1024 (lane-dense output)
B_TILE = 2                        # batch elements per grid step (raises MXU M to 48)

BLOCK_KEYS = ("ln1_g", "ln1_b", "w_qkv", "b_qkv", "w_proj", "b_proj",
              "ln2_g", "ln2_b", "w_fc1", "b_fc1", "w_fc2", "b_fc2")


# ----------------- BlockSpec helpers (grid = (batch_tile, layer)) -----------------
def _full_spec(shape):
    zero = (0,) * len(shape)
    return pl.BlockSpec(tuple(shape), lambda bt, l, _z=zero: _z)


def _layer_spec(shape):
    # stacked per-layer weight (L, r, c): fetch layer l's slice each grid step
    return pl.BlockSpec((1,) + tuple(shape[1:]), lambda bt, l: (l, 0, 0))


def _tile_spec(shape):
    # per-batch-tile activation/output (n_tiles, rows, cols)
    return pl.BlockSpec((1,) + tuple(shape[1:]), lambda bt, l: (bt, 0, 0))


# ----------------- in-kernel math helpers (values, not refs) -----------------
def _ln(x, g, b):
    mu = jnp.mean(x, axis=-1, keepdims=True)
    var = jnp.mean(jnp.square(x - mu), axis=-1, keepdims=True)
    return (x - mu) * lax.rsqrt(var + LN_EPS) * g + b


def _gelu(x):
    # TODO(synk): PyTorch nn.GELU defaults to the erf form; tanh approximation kept for
    # robust Mosaic lowering (small systematic numeric deviation vs the reference).
    c = 0.7978845608028654  # sqrt(2/pi)
    return 0.5 * x * (1.0 + jnp.tanh(c * (x + 0.044715 * x * x * x)))


# ----------------- fused Segmenter kernel -----------------
def _segmenter_kernel(paug_ref, pw_ref, ebias_ref,
                      l1g, l1b, wqkv, bqkv, wpr, bpr, l2g, l2b, wf1, bf1, wf2, bf2,
                      eng_ref, enb_ref, pdw_ref, dbias_ref,
                      dng_ref, dnb_ref, ppat_ref, pcls_ref, mg_ref, mb_ref, up_ref,
                      o_ref, carry):
    l = pl.program_id(1)
    last = pl.num_programs(1) - 1

    # --- encoder prologue (l == 0): patch embed; ebias carries [cls_token ; patch_bias]+pos ---
    @pl.when(l == 0)
    def _():
        carry[...] = jnp.dot(paug_ref[0].astype(jnp.bfloat16), pw_ref[...],
                             preferred_element_type=jnp.float32) + ebias_ref[...]

    # --- decoder prologue (l == ENC_LAYERS): enc final LN, drop CLS (sublane slice),
    #     proj_dec on the full batch tile, append class embeddings from dec_bias ---
    @pl.when(l == ENC_LAYERS)
    def _():
        y = _ln(carry[...], eng_ref[...], enb_ref[...])
        proj = jnp.dot(y.astype(jnp.bfloat16), pdw_ref[...],
                       preferred_element_type=jnp.float32)          # (B_TILE*S_PAD, D)
        for bi in range(B_TILE):
            base = bi * S_PAD
            # patch tokens: encoder rows 1..N_PATCH (CLS dropped by a 1-row sublane shift)
            carry[pl.ds(base, N_PATCH), :] = (
                proj[base + 1:base + 1 + N_PATCH, :]
                + dbias_ref[pl.ds(0, N_PATCH), :])
            # class-embedding rows + zero padding rows
            carry[pl.ds(base + N_PATCH, S_PAD - N_PATCH), :] = (
                dbias_ref[pl.ds(N_PATCH, S_PAD - N_PATCH), :])

    # --- shared pre-norm transformer block (encoder & decoder), key-masked to valid length ---
    seq_len = jnp.where(l < ENC_LAYERS, S_ENC, S_DEC)
    kmask = lax.broadcasted_iota(jnp.int32, (S_PAD, S_PAD), 1) < seq_len

    x = carry[...]                                                   # (B_TILE*S_PAD, D) f32
    h = _ln(x, l1g[0], l1b[0])
    qkv = jnp.dot(h.astype(jnp.bfloat16), wqkv[0],
                  preferred_element_type=jnp.float32) + bqkv[0]      # (B_TILE*S_PAD, 3D)
    scale = HEAD_DIM ** -0.5

    slabs = []
    for bi in range(B_TILE):
        base = bi * S_PAD
        heads = []
        for hh in range(N_HEADS):
            q = qkv[base:base + S_PAD, hh * HEAD_DIM:(hh + 1) * HEAD_DIM]
            k = qkv[base:base + S_PAD,
                    D_MODEL + hh * HEAD_DIM:D_MODEL + (hh + 1) * HEAD_DIM]
            v = qkv[base:base + S_PAD,
                    2 * D_MODEL + hh * HEAD_DIM:2 * D_MODEL + (hh + 1) * HEAD_DIM]
            # q @ k^T via dot_general contracting dim 1 of both (no in-kernel transpose)
            s = lax.dot_general(q.astype(jnp.bfloat16), k.astype(jnp.bfloat16),
                                (((1,), (1,)), ((), ())),
                                preferred_element_type=jnp.float32) * scale
            s = jnp.where(kmask, s, -1e30)
            s = s - jnp.max(s, axis=-1, keepdims=True)
            e = jnp.where(kmask, jnp.exp(s), 0.0)
            p = e * pl.reciprocal(jnp.sum(e, axis=-1, keepdims=True), approx=True)
            heads.append(jnp.dot(p.astype(jnp.bfloat16), v.astype(jnp.bfloat16),
                                 preferred_element_type=jnp.float32))      # (S_PAD, 64)
        slabs.append(jnp.concatenate(heads, axis=-1))                      # (S_PAD, D)
    attn = jnp.concatenate(slabs, axis=0)                                  # (B_TILE*S_PAD, D)
    # single K=D output projection over the whole batch tile (no per-head matmuls)
    x = x + jnp.dot(attn.astype(jnp.bfloat16), wpr[0],
                    preferred_element_type=jnp.float32) + bpr[0]

    # --- MLP ---
    h2 = _ln(x, l2g[0], l2b[0])
    h2 = jnp.dot(h2.astype(jnp.bfloat16), wf1[0],
                 preferred_element_type=jnp.float32) + bf1[0]
    h2 = _gelu(h2)
    h2 = jnp.dot(h2.astype(jnp.bfloat16), wf2[0],
                 preferred_element_type=jnp.float32) + bf2[0]
    x = x + h2

    @pl.when(l < last)
    def _():
        carry[...] = x            # skip the dead write-back on the final layer

    # --- decoder epilogue (l == last): LN, mask head, mask LN, bilinear upsample ---
    @pl.when(l == last)
    def _():
        y = _ln(x, dng_ref[...], dnb_ref[...])
        pat_all = jnp.dot(y.astype(jnp.bfloat16), ppat_ref[...],
                          preferred_element_type=jnp.float32)        # (B_TILE*S_PAD, D)
        cls_all = jnp.dot(y.astype(jnp.bfloat16), pcls_ref[...],
                          preferred_element_type=jnp.float32)
        ms = []
        for bi in range(B_TILE):
            base = bi * S_PAD
            pat = pat_all[base:base + N_PATCH, :]                    # (N, D)
            clf = cls_all[base + N_PATCH:base + N_PATCH + N_CLS, :]  # (n_cls, D)
            # L2 normalize (rsqrt on EUP; no eps, matching the PyTorch reference)
            pat = pat * lax.rsqrt(jnp.sum(pat * pat, axis=-1, keepdims=True))
            clf = clf * lax.rsqrt(jnp.sum(clf * clf, axis=-1, keepdims=True))
            # lane-dense, pre-transposed mask logits: (n_cls, N) = clf @ pat^T (bf16 operands)
            m = lax.dot_general(clf.astype(jnp.bfloat16), pat.astype(jnp.bfloat16),
                                (((1,), (1,)), ((), ())),
                                preferred_element_type=jnp.float32)
            # mask_norm = LayerNorm over classes -> axis 0 in this transposed layout
            mu = jnp.mean(m, axis=0, keepdims=True)
            var = jnp.mean(jnp.square(m - mu), axis=0, keepdims=True)
            ms.append((m - mu) * lax.rsqrt(var + LN_EPS) * mg_ref[...] + mb_ref[...])
        m_all = jnp.concatenate(ms, axis=0)                          # (B_TILE*n_cls, N)
        # bilinear upsample fused as one bf16 matmul: (BT*n_cls, N) @ (N, H*W)
        o_ref[0] = jnp.dot(m_all.astype(jnp.bfloat16), up_ref[...],
                           preferred_element_type=jnp.float32).astype(o_ref.dtype)


def _segmenter_call(paug, ebias_tiled, dec_bias, up_T, blocks, p, n_tiles):
    stack = [blocks[k] for k in BLOCK_KEYS]
    in_specs = (
        [_tile_spec(paug.shape),
         _full_spec(p["patch_w"].shape),
         _full_spec(ebias_tiled.shape)]
        + [_layer_spec(w.shape) for w in stack]
        + [_full_spec(p["enc_norm_g"].shape), _full_spec(p["enc_norm_b"].shape),
           _full_spec(p["proj_dec_w"].shape), _full_spec(dec_bias.shape),
           _full_spec(p["dec_norm_g"].shape), _full_spec(p["dec_norm_b"].shape),
           _full_spec(p["proj_patch"].shape), _full_spec(p["proj_classes"].shape),
           _full_spec(p["mask_norm_g"].shape), _full_spec(p["mask_norm_b"].shape),
           _full_spec(up_T.shape)])
    return pl.pallas_call(
        _segmenter_kernel,
        grid=(n_tiles, N_LAYERS),
        out_shape=jax.ShapeDtypeStruct((n_tiles, B_TILE * N_CLS, HW), jnp.float32),
        in_specs=in_specs,
        out_specs=pl.BlockSpec((1, B_TILE * N_CLS, HW), lambda bt, l: (bt, 0, 0)),
        scratch_shapes=[pltpu.VMEM((B_TILE * S_PAD, D_MODEL), jnp.float32)],
        compiler_params=pltpu.CompilerParams(
            dimension_semantics=("parallel", "arbitrary"),
            # explicit scoped-VMEM budget; re-derive (and raise) when scaling to d_model=768
            vmem_limit_bytes=32 * 1024 * 1024),
    )(paug, p["patch_w"], ebias_tiled, *stack,
      p["enc_norm_g"], p["enc_norm_b"], p["proj_dec_w"], dec_bias,
      p["dec_norm_g"], p["dec_norm_b"], p["proj_patch"], p["proj_classes"],
      p["mask_norm_g"], p["mask_norm_b"], up_T)


# ----------------- bilinear (align_corners=False) operator matrices -----------------
def _bilinear_matrix(out_size, in_size):
    scale = in_size / out_size
    i = jnp.arange(out_size, dtype=jnp.float32)
    src = jnp.maximum((i + 0.5) * scale - 0.5, 0.0)
    i0 = jnp.floor(src).astype(jnp.int32)
    i1 = jnp.minimum(i0 + 1, in_size - 1)
    w1 = src - i0.astype(jnp.float32)
    w0 = 1.0 - w1
    rows = jnp.arange(out_size)
    A = jnp.zeros((out_size, in_size), jnp.float32)
    A = A.at[rows, i0].add(w0)
    A = A.at[rows, i1].add(w1)
    return A


# ----------------- parameters (weights stored bf16, biases/LN params f32) -----------------
def init_params(key):
    keys = iter(jax.random.split(key, 64))

    def normal(shape, std=0.02, dtype=jnp.float32):
        return (std * jax.random.normal(next(keys), shape)).astype(dtype)

    def zeros(shape):
        return jnp.zeros(shape, jnp.float32)

    def ones(shape):
        return jnp.ones(shape, jnp.float32)

    def stacked_blocks(n_layers):
        return {
            "ln1_g": ones((n_layers, 1, D_MODEL)), "ln1_b": zeros((n_layers, 1, D_MODEL)),
            "w_qkv": normal((n_layers, D_MODEL, 3 * D_MODEL), dtype=jnp.bfloat16),
            "b_qkv": zeros((n_layers, 1, 3 * D_MODEL)),
            "w_proj": normal((n_layers, D_MODEL, D_MODEL), dtype=jnp.bfloat16),
            "b_proj": zeros((n_layers, 1, D_MODEL)),
            "ln2_g": ones((n_layers, 1, D_MODEL)), "ln2_b": zeros((n_layers, 1, D_MODEL)),
            "w_fc1": normal((n_layers, D_MODEL, D_FF), dtype=jnp.bfloat16),
            "b_fc1": zeros((n_layers, 1, D_FF)),
            "w_fc2": normal((n_layers, D_FF, D_MODEL), dtype=jnp.bfloat16),
            "b_fc2": zeros((n_layers, 1, D_MODEL)),
        }

    d_scale = D_MODEL ** -0.5
    return {
        # encoder
        "patch_w": normal((CPP, D_MODEL), dtype=jnp.bfloat16),
        "patch_b": zeros((1, D_MODEL)),
        "cls_token": normal((1, D_MODEL)),
        "pos_embed": normal((S_ENC, D_MODEL)),
        "enc_blocks": stacked_blocks(ENC_LAYERS),
        "enc_norm_g": ones((1, D_MODEL)), "enc_norm_b": zeros((1, D_MODEL)),
        # decoder (MaskTransformer)
        "proj_dec_w": normal((D_MODEL, D_MODEL), dtype=jnp.bfloat16),
        "proj_dec_b": zeros((1, D_MODEL)),
        "cls_emb": normal((N_CLS, D_MODEL)),
        "dec_blocks": stacked_blocks(DEC_LAYERS),
        "dec_norm_g": ones((1, D_MODEL)), "dec_norm_b": zeros((1, D_MODEL)),
        "proj_patch": (d_scale * jax.random.normal(next(keys), (D_MODEL, D_MODEL))).astype(jnp.bfloat16),
        "proj_classes": (d_scale * jax.random.normal(next(keys), (D_MODEL, D_MODEL))).astype(jnp.bfloat16),
        "mask_norm_g": ones((N_CLS, 1)), "mask_norm_b": zeros((N_CLS, 1)),
    }


# ----------------- full forward (Segmenter.forward) -----------------
def vit_segment_forward(x, params):
    B, C, H, W = x.shape
    assert C == CHANNELS and H == IMAGE and W == IMAGE and B % B_TILE == 0
    n_tiles = B // B_TILE

    # patch extraction (Conv2d kernel=stride=PATCH as unfold); pure layout work left to XLA.
    patches = x.reshape(B, C, GS, PATCH, GS, PATCH)
    patches = patches.transpose(0, 2, 4, 1, 3, 5).reshape(B, N_PATCH, CPP)
    # per-element slab: [zero CLS row | patches | zero pad rows] -> S_PAD sublane-aligned rows
    paug = jnp.concatenate(
        [jnp.zeros((B, 1, CPP), patches.dtype), patches,
         jnp.zeros((B, S_PAD - S_ENC, CPP), patches.dtype)], axis=1)
    paug = paug.reshape(n_tiles, B_TILE * S_PAD, CPP)

    # encoder bias: [cls_token ; patch_bias] + pos_embed, zero-padded, tiled over the batch tile
    ebias = jnp.concatenate(
        [params["cls_token"],
         jnp.broadcast_to(params["patch_b"], (N_PATCH, D_MODEL))], axis=0) + params["pos_embed"]
    ebias = jnp.concatenate([ebias, jnp.zeros((S_PAD - S_ENC, D_MODEL), jnp.float32)], axis=0)
    ebias_tiled = jnp.tile(ebias, (B_TILE, 1))                        # (B_TILE*S_PAD, D)

    # decoder bias per slab: proj_dec bias for patch rows, class embeddings, zero padding
    dec_bias = jnp.concatenate(
        [jnp.broadcast_to(params["proj_dec_b"], (N_PATCH, D_MODEL)),
         params["cls_emb"],
         jnp.zeros((S_PAD - S_DEC, D_MODEL), jnp.float32)], axis=0)   # (S_PAD, D)

    # F.interpolate(..., mode="bilinear", align_corners=False) fused as one matmul:
    # out_flat = m @ kron(A_h, A_w)^T ; stored bf16 (weights are exactly representable here).
    # TODO(synk): at real Segmenter resolutions do NOT keep the kron matrix VMEM-resident
    # (factorize A_h @ M @ A_w^T or tile the H*W lane axis) — it would not fit v7x's 64 MiB VMEM.
    up_T = jnp.kron(_bilinear_matrix(H, GS), _bilinear_matrix(W, GS)).T.astype(jnp.bfloat16)

    # stack encoder + decoder blocks along one layer axis (shapes are identical)
    blocks = {k: jnp.concatenate([params["enc_blocks"][k], params["dec_blocks"][k]], axis=0)
              for k in BLOCK_KEYS}

    masks = _segmenter_call(paug, ebias_tiled, dec_bias, up_T, blocks, params, n_tiles)
    return {"pred": masks.reshape(B, N_CLS, H, W)}


if __name__ == "__main__":
    key = jax.random.PRNGKey(0)
    pkey, xkey = jax.random.split(key)
    params = init_params(pkey)

    B = 4  # 2 batch tiles of B_TILE=2 -> keeps both v7x TensorCores busy
    x = jax.random.normal(xkey, (B, CHANNELS, IMAGE, IMAGE), dtype=jnp.float32)

    fwd = jax.jit(functools.partial(vit_segment_forward, params=params))
    out = fwd(x)
    jax.block_until_ready(out)

    assert out["pred"].shape == (B, N_CLS, IMAGE, IMAGE), out["pred"].shape
    assert bool(jnp.all(jnp.isfinite(out["pred"])))
    print("KERNEL_OK")
</pallas_src>

<mosaic_0001>
module attributes {stable_mosaic.version = 11 : i64} {
  func.func private @main(%arg0: i32) attributes {dimension_semantics = [#tpu.dimension_semantics<core_parallel>], iteration_bounds = array<i64: 2>, tpu.core_type = #tpu.core_type<sc_scalar_subcore>, window_params = []} {
    return
  }
}

module attributes {stable_mosaic.version = 11 : i64} {
  func.func private @main(%arg0: i32) attributes {dimension_semantics = [#tpu.dimension_semantics<core_parallel>], iteration_bounds = array<i64: 2>, tpu.core_type = #tpu.core_type<sc_scalar_subcore>, window_params = []} {
    return
  }
}

module attributes {stable_mosaic.version = 11 : i64} {
  func.func @_segmenter_kernel(%arg0: i32, %arg1: i32, %arg2: memref<1x48x192xf32, #tpu.memory_space<vmem>>, %arg3: memref<192x128xbf16, #tpu.memory_space<vmem>>, %arg4: memref<48x128xf32, #tpu.memory_space<vmem>>, %arg5: memref<1x1x128xf32, #tpu.memory_space<vmem>>, %arg6: memref<1x1x128xf32, #tpu.memory_space<vmem>>, %arg7: memref<1x128x384xbf16, #tpu.memory_space<vmem>>, %arg8: memref<1x1x384xf32, #tpu.memory_space<vmem>>, %arg9: memref<1x128x128xbf16, #tpu.memory_space<vmem>>, %arg10: memref<1x1x128xf32, #tpu.memory_space<vmem>>, %arg11: memref<1x1x128xf32, #tpu.memory_space<vmem>>, %arg12: memref<1x1x128xf32, #tpu.memory_space<vmem>>, %arg13: memref<1x128x512xbf16, #tpu.memory_space<vmem>>, %arg14: memref<1x1x512xf32, #tpu.memory_space<vmem>>, %arg15: memref<1x512x128xbf16, #tpu.memory_space<vmem>>, %arg16: memref<1x1x128xf32, #tpu.memory_space<vmem>>, %arg17: memref<1x128xf32, #tpu.memory_space<vmem>>, %arg18: memref<1x128xf32, #tpu.memory_space<vmem>>, %arg19: memref<128x128xbf16, #tpu.memory_space<vmem>>, %arg20: memref<24x128xf32, #tpu.memory_space<vmem>>, %arg21: memref<1x128xf32, #tpu.memory_space<vmem>>, %arg22: memref<1x128xf32, #tpu.memory_space<vmem>>, %arg23: memref<128x128xbf16, #tpu.memory_space<vmem>>, %arg24: memref<128x128xbf16, #tpu.memory_space<vmem>>, %arg25: memref<4x1xf32, #tpu.memory_space<vmem>>, %arg26: memref<4x1xf32, #tpu.memory_space<vmem>>, %arg27: memref<16x1024xbf16, #tpu.memory_space<vmem>>, %arg28: memref<1x8x1024xf32, #tpu.memory_space<vmem>>, %arg29: memref<48x128xf32, #tpu.memory_space<vmem>>) attributes {dimension_semantics = [#tpu.dimension_semantics<parallel>, #tpu.dimension_semantics<arbitrary>], iteration_bounds = array<i64: 2, 4>, scalar_prefetch = 0 : i64, scratch_operands = 1 : i64, tpu.core_type = #tpu.core_type<tc>, window_params = [{transform_indices = @transform_0, window_bounds = array<i64: 1, 48, 192>}, {pipeline_mode = #tpu.pipeline_mode<synchronous>, transform_indices = @transform_1, window_bounds = array<i64: 192, 128>}, {pipeline_mode = #tpu.pipeline_mode<synchronous>, transform_indices = @transform_2, window_bounds = array<i64: 48, 128>}, {transform_indices = @transform_3, window_bounds = array<i64: 1, 1, 128>}, {transform_indices = @transform_4, window_bounds = array<i64: 1, 1, 128>}, {transform_indices = @transform_5, window_bounds = array<i64: 1, 128, 384>}, {transform_indices = @transform_6, window_bounds = array<i64: 1, 1, 384>}, {transform_indices = @transform_7, window_bounds = array<i64: 1, 128, 128>}, {transform_indices = @transform_8, window_bounds = array<i64: 1, 1, 128>}, {transform_indices = @transform_9, window_bounds = array<i64: 1, 1, 128>}, {transform_indices = @transform_10, window_bounds = array<i64: 1, 1, 128>}, {transform_indices = @transform_11, window_bounds = array<i64: 1, 128, 512>}, {transform_indices = @transform_12, window_bounds = array<i64: 1, 1, 512>}, {transform_indices = @transform_13, window_bounds = array<i64: 1, 512, 128>}, {transform_indices = @transform_14, window_bounds = array<i64: 1, 1, 128>}, {pipeline_mode = #tpu.pipeline_mode<synchronous>, transform_indices = @transform_15, window_bounds = array<i64: 1, 128>}, {pipeline_mode = #tpu.pipeline_mode<synchronous>, transform_indices = @transform_16, window_bounds = array<i64: 1, 128>}, {pipeline_mode = #tpu.pipeline_mode<synchronous>, transform_indices = @transform_17, window_bounds = array<i64: 128, 128>}, {pipeline_mode = #tpu.pipeline_mode<synchronous>, transform_indices = @transform_18, window_bounds = array<i64: 24, 128>}, {pipeline_mode = #tpu.pipeline_mode<synchronous>, transform_indices = @transform_19, window_bounds = array<i64: 1, 128>}, {pipeline_mode = #tpu.pipeline_mode<synchronous>, transform_indices = @transform_20, window_bounds = array<i64: 1, 128>}, {pipeline_mode = #tpu.pipeline_mode<synchronous>, transform_indices = @transform_21, window_bounds = array<i64: 128, 128>}, {pipeline_mode = #tpu.pipeline_mode<synchronous>, transform_indices = @transform_22, window_bounds = array<i64: 128, 128>}, {pipeline_mode = #tpu.pipeline_mode<synchronous>, transform_indices = @transform_23, window_bounds = array<i64: 4, 1>}, {pipeline_mode = #tpu.pipeline_mode<synchronous>, transform_indices = @transform_24, window_bounds = array<i64: 4, 1>}, {pipeline_mode = #tpu.pipeline_mode<synchronous>, transform_indices = @transform_25, window_bounds = array<i64: 16, 1024>}, {transform_indices = @transform_26, window_bounds = array<i64: 1, 8, 1024>}]} {
    %c0_i32 = arith.constant 0 : i32
    %0 = arith.cmpi eq, %arg1, %c0_i32 : i32
    %1 = arith.extui %0 : i1 to i32
    %c0_i32_0 = arith.constant 0 : i32
    %2 = arith.cmpi ne, %1, %c0_i32_0 : i32
    scf.if %2 {
      %c0_88 = arith.constant 0 : index
      %c0_89 = arith.constant 0 : index
      %c0_90 = arith.constant 0 : index
      %220 = vector.load %arg2[%c0_88, %c0_89, %c0_90] : memref<1x48x192xf32, #tpu.memory_space<vmem>>, vector<1x48x192xf32>
      %221 = vector.shape_cast %220 : vector<1x48x192xf32> to vector<48x192xf32>
      %222 = arith.truncf %221 : vector<48x192xf32> to vector<48x192xbf16>
      %c0_91 = arith.constant 0 : index
      %c0_92 = arith.constant 0 : index
      %223 = vector.load %arg3[%c0_91, %c0_92] : memref<192x128xbf16, #tpu.memory_space<vmem>>, vector<192x128xbf16>
      %cst_93 = arith.constant dense<0.000000e+00> : vector<48x128xf32>
      %224 = tpu.matmul %222, %223, %cst_93 {dimension_numbers = #tpu.dot_dimension_numbers<[1], [0], [0], [1], [0, 0, 1, 1], [], []>} : vector<48x192xbf16>, vector<192x128xbf16>, vector<48x128xf32> -> vector<48x128xf32>
      %c0_94 = arith.constant 0 : index
      %c0_95 = arith.constant 0 : index
      %225 = vector.load %arg4[%c0_94, %c0_95] : memref<48x128xf32, #tpu.memory_space<vmem>>, vector<48x128xf32>
      %226 = arith.addf %224, %225 : vector<48x128xf32>
      %c0_96 = arith.constant 0 : index
      %c0_97 = arith.constant 0 : index
      %227 = vector.load %arg29[%c0_96, %c0_97] : memref<48x128xf32, #tpu.memory_space<vmem>>, vector<48x128xf32>
      tpu.vector_store %arg29[%c0_96, %c0_97], %226 {strides = array<i32>} : memref<48x128xf32, #tpu.memory_space<vmem>>, vector<48x128xf32>,
    } else {
    }
    %c2_i32 = arith.constant 2 : i32
    %3 = arith.cmpi eq, %arg1, %c2_i32 : i32
    %4 = arith.extui %3 : i1 to i32
    %c0_i32_1 = arith.constant 0 : i32
    %5 = arith.cmpi ne, %4, %c0_i32_1 : i32
    scf.if %5 {
      %c0_88 = arith.constant 0 : index
      %c0_89 = arith.constant 0 : index
      %220 = vector.load %arg29[%c0_88, %c0_89] : memref<48x128xf32, #tpu.memory_space<vmem>>, vector<48x128xf32>
      %c0_90 = arith.constant 0 : index
      %c0_91 = arith.constant 0 : index
      %221 = vector.load %arg17[%c0_90, %c0_91] : memref<1x128xf32, #tpu.memory_space<vmem>>, vector<1x128xf32>
      %c0_92 = arith.constant 0 : index
      %c0_93 = arith.constant 0 : index
      %222 = vector.load %arg18[%c0_92, %c0_93] : memref<1x128xf32, #tpu.memory_space<vmem>>, vector<1x128xf32>
      %cst_94 = arith.constant dense<0.000000e+00> : vector<48xf32>
      %223 = vector.multi_reduction <add>, %220, %cst_94 [1] : vector<48x128xf32> to vector<48xf32>
      %224 = vector.shape_cast %223 : vector<48xf32> to vector<48x1xf32>
      %cst_95 = arith.constant 1.280000e+02 : f32
      %225 = vector.broadcast %cst_95 : f32 to vector<48x1xf32>
      %226 = arith.divf %224, %225 : vector<48x1xf32>
      %227 = vector.broadcast %226 : vector<48x1xf32> to vector<48x128xf32>
      %228 = arith.subf %220, %227 : vector<48x128xf32>
      %229 = arith.mulf %228, %228 : vector<48x128xf32>
      %cst_96 = arith.constant dense<0.000000e+00> : vector<48xf32>
      %230 = vector.multi_reduction <add>, %229, %cst_96 [1] : vector<48x128xf32> to vector<48xf32>
      %231 = vector.shape_cast %230 : vector<48xf32> to vector<48x1xf32>
      %cst_97 = arith.constant 1.280000e+02 : f32
      %232 = vector.broadcast %cst_97 : f32 to vector<48x1xf32>
      %233 = arith.divf %231, %232 : vector<48x1xf32>
      %234 = vector.broadcast %226 : vector<48x1xf32> to vector<48x128xf32>
      %235 = arith.subf %220, %234 : vector<48x128xf32>
      %cst_98 = arith.constant 9.99999974E-6 : f32
      %236 = vector.broadcast %cst_98 : f32 to vector<48x1xf32>
      %237 = arith.addf %233, %236 : vector<48x1xf32>
      %238 = math.rsqrt %237 : vector<48x1xf32>
      %239 = vector.broadcast %238 : vector<48x1xf32> to vector<48x128xf32>
      %240 = arith.mulf %235, %239 : vector<48x128xf32>
      %241 = vector.broadcast %221 : vector<1x128xf32> to vector<48x128xf32>
      %242 = arith.mulf %240, %241 : vector<48x128xf32>
      %243 = vector.broadcast %222 : vector<1x128xf32> to vector<48x128xf32>
      %244 = arith.addf %242, %243 : vector<48x128xf32>
      %245 = arith.truncf %244 : vector<48x128xf32> to vector<48x128xbf16>
      %c0_99 = arith.constant 0 : index
      %c0_100 = arith.constant 0 : index
      %246 = vector.load %arg19[%c0_99, %c0_100] : memref<128x128xbf16, #tpu.memory_space<vmem>>, vector<128x128xbf16>
      %cst_101 = arith.constant dense<0.000000e+00> : vector<48x128xf32>
      %247 = tpu.matmul %245, %246, %cst_101 {dimension_numbers = #tpu.dot_dimension_numbers<[1], [0], [0], [1], [0, 0, 1, 1], [], []>} : vector<48x128xbf16>, vector<128x128xbf16>, vector<48x128xf32> -> vector<48x128xf32>
      %248 = vector.extract_strided_slice %247 {offsets = [1, 0], sizes = [16, 128], strides = [1, 1]} : vector<48x128xf32> to vector<16x128xf32>
      %c0_102 = arith.constant 0 : index
      %c0_103 = arith.constant 0 : index
      %249 = vector.load %arg20[%c0_102, %c0_103] : memref<24x128xf32, #tpu.memory_space<vmem>>, vector<16x128xf32>
      %250 = arith.addf %248, %249 : vector<16x128xf32>
      %c0_104 = arith.constant 0 : index
      %c0_105 = arith.constant 0 : index
      %251 = vector.load %arg29[%c0_104, %c0_105] : memref<48x128xf32, #tpu.memory_space<vmem>>, vector<16x128xf32>
      tpu.vector_store %arg29[%c0_104, %c0_105], %250 {strides = array<i32>} : memref<48x128xf32, #tpu.memory_space<vmem>>, vector<16x128xf32>,
      %c16 = arith.constant 16 : index
      %c0_106 = arith.constant 0 : index
      %252 = vector.load %arg20[%c16, %c0_106] : memref<24x128xf32, #tpu.memory_space<vmem>>, vector<8x128xf32>
      %c16_107 = arith.constant 16 : index
      %c0_108 = arith.constant 0 : index
      %253 = vector.load %arg29[%c16_107, %c0_108] : memref<48x128xf32, #tpu.memory_space<vmem>>, vector<8x128xf32>
      tpu.vector_store %arg29[%c16_107, %c0_108], %252 {strides = array<i32>} : memref<48x128xf32, #tpu.memory_space<vmem>>, vector<8x128xf32>,
      %254 = vector.extract_strided_slice %247 {offsets = [25, 0], sizes = [16, 128], strides = [1, 1]} : vector<48x128xf32> to vector<16x128xf32>
      %c0_109 = arith.constant 0 : index
      %c0_110 = arith.constant 0 : index
      %255 = vector.load %arg20[%c0_109, %c0_110] : memref<24x128xf32, #tpu.memory_space<vmem>>, vector<16x128xf32>
      %256 = arith.addf %254, %255 : vector<16x128xf32>
      %c24 = arith.constant 24 : index
      %c0_111 = arith.constant 0 : index
      %257 = vector.load %arg29[%c24, %c0_111] : memref<48x128xf32, #tpu.memory_space<vmem>>, vector<16x128xf32>
      tpu.vector_store %arg29[%c24, %c0_111], %256 {strides = array<i32>} : memref<48x128xf32, #tpu.memory_space<vmem>>, vector<16x128xf32>,
      %c16_112 = arith.constant 16 : index
      %c0_113 = arith.constant 0 : index
      %258 = vector.load %arg20[%c16_112, %c0_113] : memref<24x128xf32, #tpu.memory_space<vmem>>, vector<8x128xf32>
      %c40 = arith.constant 40 : index
      %c0_114 = arith.constant 0 : index
      %259 = vector.load %arg29[%c40, %c0_114] : memref<48x128xf32, #tpu.memory_space<vmem>>, vector<8x128xf32>
      tpu.vector_store %arg29[%c40, %c0_114], %258 {strides = array<i32>} : memref<48x128xf32, #tpu.memory_space<vmem>>, vector<8x128xf32>,
    } else {
    }
    %c2_i32_2 = arith.constant 2 : i32
    %6 = arith.cmpi slt, %arg1, %c2_i32_2 : i32
    %c17_i32 = arith.constant 17 : i32
    %c20_i32 = arith.constant 20 : i32
    %7 = arith.select %6, %c17_i32, %c20_i32 : i32
    %8 = tpu.iota {dimensions = array<i32: 1>} : vector<24x24xi32>
    %9 = vector.broadcast %7 : i32 to vector<24x24xi32>
    %10 = arith.cmpi slt, %8, %9 : vector<24x24xi32>
    %c0 = arith.constant 0 : index
    %c0_3 = arith.constant 0 : index
    %11 = vector.load %arg29[%c0, %c0_3] : memref<48x128xf32, #tpu.memory_space<vmem>>, vector<48x128xf32>
    %c0_4 = arith.constant 0 : index
    %c0_5 = arith.constant 0 : index
    %c0_6 = arith.constant 0 : index
    %12 = vector.load %arg5[%c0_4, %c0_5, %c0_6] : memref<1x1x128xf32, #tpu.memory_space<vmem>>, vector<1x1x128xf32>
    %13 = vector.shape_cast %12 : vector<1x1x128xf32> to vector<1x128xf32>
    %c0_7 = arith.constant 0 : index
    %c0_8 = arith.constant 0 : index
    %c0_9 = arith.constant 0 : index
    %14 = vector.load %arg6[%c0_7, %c0_8, %c0_9] : memref<1x1x128xf32, #tpu.memory_space<vmem>>, vector<1x1x128xf32>
    %15 = vector.shape_cast %14 : vector<1x1x128xf32> to vector<1x128xf32>
    %cst = arith.constant dense<0.000000e+00> : vector<48xf32>
    %16 = vector.multi_reduction <add>, %11, %cst [1] : vector<48x128xf32> to vector<48xf32>
    %17 = vector.shape_cast %16 : vector<48xf32> to vector<48x1xf32>
    %cst_10 = arith.constant 1.280000e+02 : f32
    %18 = vector.broadcast %cst_10 : f32 to vector<48x1xf32>
    %19 = arith.divf %17, %18 : vector<48x1xf32>
    %20 = vector.broadcast %19 : vector<48x1xf32> to vector<48x128xf32>
    %21 = arith.subf %11, %20 : vector<48x128xf32>
    %22 = arith.mulf %21, %21 : vector<48x128xf32>
    %cst_11 = arith.constant dense<0.000000e+00> : vector<48xf32>
    %23 = vector.multi_reduction <add>, %22, %cst_11 [1] : vector<48x128xf32> to vector<48xf32>
    %24 = vector.shape_cast %23 : vector<48xf32> to vector<48x1xf32>
    %cst_12 = arith.constant 1.280000e+02 : f32
    %25 = vector.broadcast %cst_12 : f32 to vector<48x1xf32>
    %26 = arith.divf %24, %25 : vector<48x1xf32>
    %27 = vector.broadcast %19 : vector<48x1xf32> to vector<48x128xf32>
    %28 = arith.subf %11, %27 : vector<48x128xf32>
    %cst_13 = arith.constant 9.99999974E-6 : f32
    %29 = vector.broadcast %cst_13 : f32 to vector<48x1xf32>
    %30 = arith.addf %26, %29 : vector<48x1xf32>
    %31 = math.rsqrt %30 : vector<48x1xf32>
    %32 = vector.broadcast %31 : vector<48x1xf32> to vector<48x128xf32>
    %33 = arith.mulf %28, %32 : vector<48x128xf32>
    %34 = vector.broadcast %13 : vector<1x128xf32> to vector<48x128xf32>
    %35 = arith.mulf %33, %34 : vector<48x128xf32>
    %36 = vector.broadcast %15 : vector<1x128xf32> to vector<48x128xf32>
    %37 = arith.addf %35, %36 : vector<48x128xf32>
    %38 = arith.truncf %37 : vector<48x128xf32> to vector<48x128xbf16>
    %c0_14 = arith.constant 0 : index
    %c0_15 = arith.constant 0 : index
    %c0_16 = arith.constant 0 : index
    %39 = vector.load %arg7[%c0_14, %c0_15, %c0_16] : memref<1x128x384xbf16, #tpu.memory_space<vmem>>, vector<1x128x384xbf16>
    %40 = vector.shape_cast %39 : vector<1x128x384xbf16> to vector<128x384xbf16>
    %cst_17 = arith.constant dense<0.000000e+00> : vector<48x384xf32>
    %41 = tpu.matmul %38, %40, %cst_17 {dimension_numbers = #tpu.dot_dimension_numbers<[1], [0], [0], [1], [0, 0, 1, 1], [], []>} : vector<48x128xbf16>, vector<128x384xbf16>, vector<48x384xf32> -> vector<48x384xf32>
    %c0_18 = arith.constant 0 : index
    %c0_19 = arith.constant 0 : index
    %c0_20 = arith.constant 0 : index
    %42 = vector.load %arg8[%c0_18, %c0_19, %c0_20] : memref<1x1x384xf32, #tpu.memory_space<vmem>>, vector<1x1x384xf32>
    %43 = vector.shape_cast %42 : vector<1x1x384xf32> to vector<1x384xf32>
    %44 = vector.broadcast %43 : vector<1x384xf32> to vector<48x384xf32>
    %45 = arith.addf %41, %44 : vector<48x384xf32>
    %46 = vector.extract_strided_slice %45 {offsets = [0, 0], sizes = [24, 64], strides = [1, 1]} : vector<48x384xf32> to vector<24x64xf32>
    %47 = vector.extract_strided_slice %45 {offsets = [0, 128], sizes = [24, 64], strides = [1, 1]} : vector<48x384xf32> to vector<24x64xf32>
    %48 = vector.extract_strided_slice %45 {offsets = [0, 256], sizes = [24, 64], strides = [1, 1]} : vector<48x384xf32> to vector<24x64xf32>
    %49 = arith.truncf %46 : vector<24x64xf32> to vector<24x64xbf16>
    %50 = arith.truncf %47 : vector<24x64xf32> to vector<24x64xbf16>
    %cst_21 = arith.constant dense<0.000000e+00> : vector<24x24xf32>
    %51 = tpu.matmul %49, %50, %cst_21 {dimension_numbers = #tpu.dot_dimension_numbers<[1], [1], [0], [0], [0, 0, 1, 0], [], []>} : vector<24x64xbf16>, vector<24x64xbf16>, vector<24x24xf32> -> vector<24x24xf32>
    %cst_22 = arith.constant 1.250000e-01 : f32
    %52 = vector.broadcast %cst_22 : f32 to vector<24x24xf32>
    %53 = arith.mulf %51, %52 : vector<24x24xf32>
    %cst_23 = arith.constant -1.000000e+30 : f32
    %54 = vector.broadcast %cst_23 : f32 to vector<24x24xf32>
    %55 = arith.select %10, %53, %54 : vector<24x24xi1>, vector<24x24xf32>
    %cst_24 = arith.constant dense<0xFF800000> : vector<24xf32>
    %56 = vector.multi_reduction <maximumf>, %55, %cst_24 [1] : vector<24x24xf32> to vector<24xf32>
    %57 = vector.shape_cast %56 : vector<24xf32> to vector<24x1xf32>
    %58 = vector.broadcast %57 : vector<24x1xf32> to vector<24x24xf32>
    %59 = arith.subf %55, %58 : vector<24x24xf32>
    %60 = math.exp %59 : vector<24x24xf32>
    %cst_25 = arith.constant 0.000000e+00 : f32
    %61 = vector.broadcast %cst_25 : f32 to vector<24x24xf32>
    %62 = arith.select %10, %60, %61 : vector<24x24xi1>, vector<24x24xf32>
    %cst_26 = arith.constant dense<0.000000e+00> : vector<24xf32>
    %63 = vector.multi_reduction <add>, %62, %cst_26 [1] : vector<24x24xf32> to vector<24xf32>
    %64 = vector.shape_cast %63 : vector<24xf32> to vector<24x1xf32>
    %65 = tpu.reciprocal %64 {approx = true} : vector<24x1xf32> -> vector<24x1xf32>
    %66 = vector.broadcast %65 : vector<24x1xf32> to vector<24x24xf32>
    %67 = arith.mulf %62, %66 : vector<24x24xf32>
    %68 = arith.truncf %67 : vector<24x24xf32> to vector<24x24xbf16>
    %69 = arith.truncf %48 : vector<24x64xf32> to vector<24x64xbf16>
    %cst_27 = arith.constant dense<0.000000e+00> : vector<24x64xf32>
    %70 = tpu.matmul %68, %69, %cst_27 {dimension_numbers = #tpu.dot_dimension_numbers<[1], [0], [0], [1], [0, 0, 1, 1], [], []>} : vector<24x24xbf16>, vector<24x64xbf16>, vector<24x64xf32> -> vector<24x64xf32>
    %71 = vector.extract_strided_slice %45 {offsets = [0, 64], sizes = [24, 64], strides = [1, 1]} : vector<48x384xf32> to vector<24x64xf32>
    %72 = vector.extract_strided_slice %45 {offsets = [0, 192], sizes = [24, 64], strides = [1, 1]} : vector<48x384xf32> to vector<24x64xf32>
    %73 = vector.extract_strided_slice %45 {offsets = [0, 320], sizes = [24, 64], strides = [1, 1]} : vector<48x384xf32> to vector<24x64xf32>
    %74 = arith.truncf %71 : vector<24x64xf32> to vector<24x64xbf16>
    %75 = arith.truncf %72 : vector<24x64xf32> to vector<24x64xbf16>
    %cst_28 = arith.constant dense<0.000000e+00> : vector<24x24xf32>
    %76 = tpu.matmul %74, %75, %cst_28 {dimension_numbers = #tpu.dot_dimension_numbers<[1], [1], [0], [0], [0, 0, 1, 0], [], []>} : vector<24x64xbf16>, vector<24x64xbf16>, vector<24x24xf32> -> vector<24x24xf32>
    %cst_29 = arith.constant 1.250000e-01 : f32
    %77 = vector.broadcast %cst_29 : f32 to vector<24x24xf32>
    %78 = arith.mulf %76, %77 : vector<24x24xf32>
    %cst_30 = arith.constant -1.000000e+30 : f32
    %79 = vector.broadcast %cst_30 : f32 to vector<24x24xf32>
    %80 = arith.select %10, %78, %79 : vector<24x24xi1>, vector<24x24xf32>
    %cst_31 = arith.constant dense<0xFF800000> : vector<24xf32>
    %81 = vector.multi_reduction <maximumf>, %80, %cst_31 [1] : vector<24x24xf32> to vector<24xf32>
    %82 = vector.shape_cast %81 : vector<24xf32> to vector<24x1xf32>
    %83 = vector.broadcast %82 : vector<24x1xf32> to vector<24x24xf32>
    %84 = arith.subf %80, %83 : vector<24x24xf32>
    %85 = math.exp %84 : vector<24x24xf32>
    %cst_32 = arith.constant 0.000000e+00 : f32
    %86 = vector.broadcast %cst_32 : f32 to vector<24x24xf32>
    %87 = arith.select %10, %85, %86 : vector<24x24xi1>, vector<24x24xf32>
    %cst_33 = arith.constant dense<0.000000e+00> : vector<24xf32>
    %88 = vector.multi_reduction <add>, %87, %cst_33 [1] : vector<24x24xf32> to vector<24xf32>
    %89 = vector.shape_cast %88 : vector<24xf32> to vector<24x1xf32>
    %90 = tpu.reciprocal %89 {approx = true} : vector<24x1xf32> -> vector<24x1xf32>
    %91 = vector.broadcast %90 : vector<24x1xf32> to vector<24x24xf32>
    %92 = arith.mulf %87, %91 : vector<24x24xf32>
    %93 = arith.truncf %92 : vector<24x24xf32> to vector<24x24xbf16>
    %94 = arith.truncf %73 : vector<24x64xf32> to vector<24x64xbf16>
    %cst_34 = arith.constant dense<0.000000e+00> : vector<24x64xf32>
    %95 = tpu.matmul %93, %94, %cst_34 {dimension_numbers = #tpu.dot_dimension_numbers<[1], [0], [0], [1], [0, 0, 1, 1], [], []>} : vector<24x24xbf16>, vector<24x64xbf16>, vector<24x64xf32> -> vector<24x64xf32>
    %96 = tpu.concatenate %70, %95 in 1 : vector<24x64xf32>, vector<24x64xf32> -> vector<24x128xf32>
    %97 = vector.extract_strided_slice %45 {offsets = [24, 0], sizes = [24, 64], strides = [1, 1]} : vector<48x384xf32> to vector<24x64xf32>
    %98 = vector.extract_strided_slice %45 {offsets = [24, 128], sizes = [24, 64], strides = [1, 1]} : vector<48x384xf32> to vector<24x64xf32>
    %99 = vector.extract_strided_slice %45 {offsets = [24, 256], sizes = [24, 64], strides = [1, 1]} : vector<48x384xf32> to vector<24x64xf32>
    %100 = arith.truncf %97 : vector<24x64xf32> to vector<24x64xbf16>
    %101 = arith.truncf %98 : vector<24x64xf32> to vector<24x64xbf16>
    %cst_35 = arith.constant dense<0.000000e+00> : vector<24x24xf32>
    %102 = tpu.matmul %100, %101, %cst_35 {dimension_numbers = #tpu.dot_dimension_numbers<[1], [1], [0], [0], [0, 0, 1, 0], [], []>} : vector<24x64xbf16>, vector<24x64xbf16>, vector<24x24xf32> -> vector<24x24xf32>
    %cst_36 = arith.constant 1.250000e-01 : f32
    %103 = vector.broadcast %cst_36 : f32 to vector<24x24xf32>
    %104 = arith.mulf %102, %103 : vector<24x24xf32>
    %cst_37 = arith.constant -1.000000e+30 : f32
    %105 = vector.broadcast %cst_37 : f32 to vector<24x24xf32>
    %106 = arith.select %10, %104, %105 : vector<24x24xi1>, vector<24x24xf32>
    %cst_38 = arith.constant dense<0xFF800000> : vector<24xf32>
    %107 = vector.multi_reduction <maximumf>, %106, %cst_38 [1] : vector<24x24xf32> to vector<24xf32>
    %108 = vector.shape_cast %107 : vector<24xf32> to vector<24x1xf32>
    %109 = vector.broadcast %108 : vector<24x1xf32> to vector<24x24xf32>
    %110 = arith.subf %106, %109 : vector<24x24xf32>
    %111 = math.exp %110 : vector<24x24xf32>
    %cst_39 = arith.constant 0.000000e+00 : f32
    %112 = vector.broadcast %cst_39 : f32 to vector<24x24xf32>
    %113 = arith.select %10, %111, %112 : vector<24x24xi1>, vector<24x24xf32>
    %cst_40 = arith.constant dense<0.000000e+00> : vector<24xf32>
    %114 = vector.multi_reduction <add>, %113, %cst_40 [1] : vector<24x24xf32> to vector<24xf32>
    %115 = vector.shape_cast %114 : vector<24xf32> to vector<24x1xf32>
    %116 = tpu.reciprocal %115 {approx = true} : vector<24x1xf32> -> vector<24x1xf32>
    %117 = vector.broadcast %116 : vector<24x1xf32> to vector<24x24xf32>
    %118 = arith.mulf %113, %117 : vector<24x24xf32>
    %119 = arith.truncf %118 : vector<24x24xf32> to vector<24x24xbf16>
    %120 = arith.truncf %99 : vector<24x64xf32> to vector<24x64xbf16>
    %cst_41 = arith.constant dense<0.000000e+00> : vector<24x64xf32>
    %121 = tpu.matmul %119, %120, %cst_41 {dimension_numbers = #tpu.dot_dimension_numbers<[1], [0], [0], [1], [0, 0, 1, 1], [], []>} : vector<24x24xbf16>, vector<24x64xbf16>, vector<24x64xf32> -> vector<24x64xf32>
    %122 = vector.extract_strided_slice %45 {offsets = [24, 64], sizes = [24, 64], strides = [1, 1]} : vector<48x384xf32> to vector<24x64xf32>
    %123 = vector.extract_strided_slice %45 {offsets = [24, 192], sizes = [24, 64], strides = [1, 1]} : vector<48x384xf32> to vector<24x64xf32>
    %124 = vector.extract_strided_slice %45 {offsets = [24, 320], sizes = [24, 64], strides = [1, 1]} : vector<48x384xf32> to vector<24x64xf32>
    %125 = arith.truncf %122 : vector<24x64xf32> to vector<24x64xbf16>
    %126 = arith.truncf %123 : vector<24x64xf32> to vector<24x64xbf16>
    %cst_42 = arith.constant dense<0.000000e+00> : vector<24x24xf32>
    %127 = tpu.matmul %125, %126, %cst_42 {dimension_numbers = #tpu.dot_dimension_numbers<[1], [1], [0], [0], [0, 0, 1, 0], [], []>} : vector<24x64xbf16>, vector<24x64xbf16>, vector<24x24xf32> -> vector<24x24xf32>
    %cst_43 = arith.constant 1.250000e-01 : f32
    %128 = vector.broadcast %cst_43 : f32 to vector<24x24xf32>
    %129 = arith.mulf %127, %128 : vector<24x24xf32>
    %cst_44 = arith.constant -1.000000e+30 : f32
    %130 = vector.broadcast %cst_44 : f32 to vector<24x24xf32>
    %131 = arith.select %10, %129, %130 : vector<24x24xi1>, vector<24x24xf32>
    %cst_45 = arith.constant dense<0xFF800000> : vector<24xf32>
    %132 = vector.multi_reduction <maximumf>, %131, %cst_45 [1] : vector<24x24xf32> to vector<24xf32>
    %133 = vector.shape_cast %132 : vector<24xf32> to vector<24x1xf32>
    %134 = vector.broadcast %133 : vector<24x1xf32> to vector<24x24xf32>
    %135 = arith.subf %131, %134 : vector<24x24xf32>
    %136 = math.exp %135 : vector<24x24xf32>
    %cst_46 = arith.constant 0.000000e+00 : f32
    %137 = vector.broadcast %cst_46 : f32 to vector<24x24xf32>
    %138 = arith.select %10, %136, %137 : vector<24x24xi1>, vector<24x24xf32>
    %cst_47 = arith.constant dense<0.000000e+00> : vector<24xf32>
    %139 = vector.multi_reduction <add>, %138, %cst_47 [1] : vector<24x24xf32> to vector<24xf32>
    %140 = vector.shape_cast %139 : vector<24xf32> to vector<24x1xf32>
    %141 = tpu.reciprocal %140 {approx = true} : vector<24x1xf32> -> vector<24x1xf32>
    %142 = vector.broadcast %141 : vector<24x1xf32> to vector<24x24xf32>
    %143 = arith.mulf %138, %142 : vector<24x24xf32>
    %144 = arith.truncf %143 : vector<24x24xf32> to vector<24x24xbf16>
    %145 = arith.truncf %124 : vector<24x64xf32> to vector<24x64xbf16>
    %cst_48 = arith.constant dense<0.000000e+00> : vector<24x64xf32>
    %146 = tpu.matmul %144, %145, %cst_48 {dimension_numbers = #tpu.dot_dimension_numbers<[1], [0], [0], [1], [0, 0, 1, 1], [], []>} : vector<24x24xbf16>, vector<24x64xbf16>, vector<24x64xf32> -> vector<24x64xf32>
    %147 = tpu.concatenate %121, %146 in 1 : vector<24x64xf32>, vector<24x64xf32> -> vector<24x128xf32>
    %148 = tpu.concatenate %96, %147 in 0 : vector<24x128xf32>, vector<24x128xf32> -> vector<48x128xf32>
    %149 = arith.truncf %148 : vector<48x128xf32> to vector<48x128xbf16>
    %c0_49 = arith.constant 0 : index
    %c0_50 = arith.constant 0 : index
    %c0_51 = arith.constant 0 : index
    %150 = vector.load %arg9[%c0_49, %c0_50, %c0_51] : memref<1x128x128xbf16, #tpu.memory_space<vmem>>, vector<1x128x128xbf16>
    %151 = vector.shape_cast %150 : vector<1x128x128xbf16> to vector<128x128xbf16>
    %cst_52 = arith.constant dense<0.000000e+00> : vector<48x128xf32>
    %152 = tpu.matmul %149, %151, %cst_52 {dimension_numbers = #tpu.dot_dimension_numbers<[1], [0], [0], [1], [0, 0, 1, 1], [], []>} : vector<48x128xbf16>, vector<128x128xbf16>, vector<48x128xf32> -> vector<48x128xf32>
    %153 = arith.addf %11, %152 : vector<48x128xf32>
    %c0_53 = arith.constant 0 : index
    %c0_54 = arith.constant 0 : index
    %c0_55 = arith.constant 0 : index
    %154 = vector.load %arg10[%c0_53, %c0_54, %c0_55] : memref<1x1x128xf32, #tpu.memory_space<vmem>>, vector<1x1x128xf32>
    %155 = vector.shape_cast %154 : vector<1x1x128xf32> to vector<1x128xf32>
    %156 = vector.broadcast %155 : vector<1x128xf32> to vector<48x128xf32>
    %157 = arith.addf %153, %156 : vector<48x128xf32>
    %c0_56 = arith.constant 0 : index
    %c0_57 = arith.constant 0 : index
    %c0_58 = arith.constant 0 : index
    %158 = vector.load %arg11[%c0_56, %c0_57, %c0_58] : memref<1x1x128xf32, #tpu.memory_space<vmem>>, vector<1x1x128xf32>
    %159 = vector.shape_cast %158 : vector<1x1x128xf32> to vector<1x128xf32>
    %c0_59 = arith.constant 0 : index
    %c0_60 = arith.constant 0 : index
    %c0_61 = arith.constant 0 : index
    %160 = vector.load %arg12[%c0_59, %c0_60, %c0_61] : memref<1x1x128xf32, #tpu.memory_space<vmem>>, vector<1x1x128xf32>
    %161 = vector.shape_cast %160 : vector<1x1x128xf32> to vector<1x128xf32>
    %cst_62 = arith.constant dense<0.000000e+00> : vector<48xf32>
    %162 = vector.multi_reduction <add>, %157, %cst_62 [1] : vector<48x128xf32> to vector<48xf32>
    %163 = vector.shape_cast %162 : vector<48xf32> to vector<48x1xf32>
    %cst_63 = arith.constant 1.280000e+02 : f32
    %164 = vector.broadcast %cst_63 : f32 to vector<48x1xf32>
    %165 = arith.divf %163, %164 : vector<48x1xf32>
    %166 = vector.broadcast %165 : vector<48x1xf32> to vector<48x128xf32>
    %167 = arith.subf %157, %166 : vector<48x128xf32>
    %168 = arith.mulf %167, %167 : vector<48x128xf32>
    %cst_64 = arith.constant dense<0.000000e+00> : vector<48xf32>
    %169 = vector.multi_reduction <add>, %168, %cst_64 [1] : vector<48x128xf32> to vector<48xf32>
    %170 = vector.shape_cast %169 : vector<48xf32> to vector<48x1xf32>
    %cst_65 = arith.constant 1.280000e+02 : f32
    %171 = vector.broadcast %cst_65 : f32 to vector<48x1xf32>
    %172 = arith.divf %170, %171 : vector<48x1xf32>
    %173 = vector.broadcast %165 : vector<48x1xf32> to vector<48x128xf32>
    %174 = arith.subf %157, %173 : vector<48x128xf32>
    %cst_66 = arith.constant 9.99999974E-6 : f32
    %175 = vector.broadcast %cst_66 : f32 to vector<48x1xf32>
    %176 = arith.addf %172, %175 : vector<48x1xf32>
    %177 = math.rsqrt %176 : vector<48x1xf32>
    %178 = vector.broadcast %177 : vector<48x1xf32> to vector<48x128xf32>
    %179 = arith.mulf %174, %178 : vector<48x128xf32>
    %180 = vector.broadcast %159 : vector<1x128xf32> to vector<48x128xf32>
    %181 = arith.mulf %179, %180 : vector<48x128xf32>
    %182 = vector.broadcast %161 : vector<1x128xf32> to vector<48x128xf32>
    %183 = arith.addf %181, %182 : vector<48x128xf32>
    %184 = arith.truncf %183 : vector<48x128xf32> to vector<48x128xbf16>
    %c0_67 = arith.constant 0 : index
    %c0_68 = arith.constant 0 : index
    %c0_69 = arith.constant 0 : index
    %185 = vector.load %arg13[%c0_67, %c0_68, %c0_69] : memref<1x128x512xbf16, #tpu.memory_space<vmem>>, vector<1x128x512xbf16>
    %186 = vector.shape_cast %185 : vector<1x128x512xbf16> to vector<128x512xbf16>
    %cst_70 = arith.constant dense<0.000000e+00> : vector<48x512xf32>
    %187 = tpu.matmul %184, %186, %cst_70 {dimension_numbers = #tpu.dot_dimension_numbers<[1], [0], [0], [1], [0, 0, 1, 1], [], []>} : vector<48x128xbf16>, vector<128x512xbf16>, vector<48x512xf32> -> vector<48x512xf32>
    %c0_71 = arith.constant 0 : index
    %c0_72 = arith.constant 0 : index
    %c0_73 = arith.constant 0 : index
    %188 = vector.load %arg14[%c0_71, %c0_72, %c0_73] : memref<1x1x512xf32, #tpu.memory_space<vmem>>, vector<1x1x512xf32>
    %189 = vector.shape_cast %188 : vector<1x1x512xf32> to vector<1x512xf32>
    %190 = vector.broadcast %189 : vector<1x512xf32> to vector<48x512xf32>
    %191 = arith.addf %187, %190 : vector<48x512xf32>
    %cst_74 = arith.constant 5.000000e-01 : f32
    %192 = vector.broadcast %cst_74 : f32 to vector<48x512xf32>
    %193 = arith.mulf %192, %191 : vector<48x512xf32>
    %cst_75 = arith.constant 4.471500e-02 : f32
    %194 = vector.broadcast %cst_75 : f32 to vector<48x512xf32>
    %195 = arith.mulf %194, %191 : vector<48x512xf32>
    %196 = arith.mulf %195, %191 : vector<48x512xf32>
    %197 = arith.mulf %196, %191 : vector<48x512xf32>
    %198 = arith.addf %191, %197 : vector<48x512xf32>
    %cst_76 = arith.constant 0.797884583 : f32
    %199 = vector.broadcast %cst_76 : f32 to vector<48x512xf32>
    %200 = arith.mulf %199, %198 : vector<48x512xf32>
    %201 = math.tanh %200 : vector<48x512xf32>
    %cst_77 = arith.constant 1.000000e+00 : f32
    %202 = vector.broadcast %cst_77 : f32 to vector<48x512xf32>
    %203 = arith.addf %202, %201 : vector<48x512xf32>
    %204 = arith.mulf %193, %203 : vector<48x512xf32>
    %205 = arith.truncf %204 : vector<48x512xf32> to vector<48x512xbf16>
    %c0_78 = arith.constant 0 : index
    %c0_79 = arith.constant 0 : index
    %c0_80 = arith.constant 0 : index
    %206 = vector.load %arg15[%c0_78, %c0_79, %c0_80] : memref<1x512x128xbf16, #tpu.memory_space<vmem>>, vector<1x512x128xbf16>
    %207 = vector.shape_cast %206 : vector<1x512x128xbf16> to vector<512x128xbf16>
    %cst_81 = arith.constant dense<0.000000e+00> : vector<48x128xf32>
    %208 = tpu.matmul %205, %207, %cst_81 {dimension_numbers = #tpu.dot_dimension_numbers<[1], [0], [0], [1], [0, 0, 1, 1], [], []>} : vector<48x512xbf16>, vector<512x128xbf16>, vector<48x128xf32> -> vector<48x128xf32>
    %c0_82 = arith.constant 0 : index
    %c0_83 = arith.constant 0 : index
    %c0_84 = arith.constant 0 : index
    %209 = vector.load %arg16[%c0_82, %c0_83, %c0_84] : memref<1x1x128xf32, #tpu.memory_space<vmem>>, vector<1x1x128xf32>
    %210 = vector.shape_cast %209 : vector<1x1x128xf32> to vector<1x128xf32>
    %211 = vector.broadcast %210 : vector<1x128xf32> to vector<48x128xf32>
    %212 = arith.addf %208, %211 : vector<48x128xf32>
    %213 = arith.addf %157, %212 : vector<48x128xf32>
    %c3_i32 = arith.constant 3 : i32
    %214 = arith.cmpi slt, %arg1, %c3_i32 : i32
    %215 = arith.extui %214 : i1 to i32
    %c0_i32_85 = arith.constant 0 : i32
    %216 = arith.cmpi ne, %215, %c0_i32_85 : i32
    scf.if %216 {
      %c0_88 = arith.constant 0 : index
      %c0_89 = arith.constant 0 : index
      %220 = vector.load %arg29[%c0_88, %c0_89] : memref<48x128xf32, #tpu.memory_space<vmem>>, vector<48x128xf32>
      tpu.vector_store %arg29[%c0_88, %c0_89], %213 {strides = array<i32>} : memref<48x128xf32, #tpu.memory_space<vmem>>, vector<48x128xf32>,
    } else {
    }
    %c3_i32_86 = arith.constant 3 : i32
    %217 = arith.cmpi eq, %arg1, %c3_i32_86 : i32
    %218 = arith.extui %217 : i1 to i32
    %c0_i32_87 = arith.constant 0 : i32
    %219 = arith.cmpi ne, %218, %c0_i32_87 : i32
    scf.if %219 {
      %c0_88 = arith.constant 0 : index
      %c0_89 = arith.constant 0 : index
      %220 = vector.load %arg21[%c0_88, %c0_89] : memref<1x128xf32, #tpu.memory_space<vmem>>, vector<1x128xf32>
      %c0_90 = arith.constant 0 : index
      %c0_91 = arith.constant 0 : index
      %221 = vector.load %arg22[%c0_90, %c0_91] : memref<1x128xf32, #tpu.memory_space<vmem>>, vector<1x128xf32>
      %cst_92 = arith.constant dense<0.000000e+00> : vector<48xf32>
      %222 = vector.multi_reduction <add>, %213, %cst_92 [1] : vector<48x128xf32> to vector<48xf32>
      %223 = vector.shape_cast %222 : vector<48xf32> to vector<48x1xf32>
      %cst_93 = arith.constant 1.280000e+02 : f32
      %224 = vector.broadcast %cst_93 : f32 to vector<48x1xf32>
      %225 = arith.divf %223, %224 : vector<48x1xf32>
      %226 = vector.broadcast %225 : vector<48x1xf32> to vector<48x128xf32>
      %227 = arith.subf %213, %226 : vector<48x128xf32>
      %228 = arith.mulf %227, %227 : vector<48x128xf32>
      %cst_94 = arith.constant dense<0.000000e+00> : vector<48xf32>
      %229 = vector.multi_reduction <add>, %228, %cst_94 [1] : vector<48x128xf32> to vector<48xf32>
      %230 = vector.shape_cast %229 : vector<48xf32> to vector<48x1xf32>
      %cst_95 = arith.constant 1.280000e+02 : f32
      %231 = vector.broadcast %cst_95 : f32 to vector<48x1xf32>
      %232 = arith.divf %230, %231 : vector<48x1xf32>
      %233 = vector.broadcast %225 : vector<48x1xf32> to vector<48x128xf32>
      %234 = arith.subf %213, %233 : vector<48x128xf32>
      %cst_96 = arith.constant 9.99999974E-6 : f32
      %235 = vector.broadcast %cst_96 : f32 to vector<48x1xf32>
      %236 = arith.addf %232, %235 : vector<48x1xf32>
      %237 = math.rsqrt %236 : vector<48x1xf32>
      %238 = vector.broadcast %237 : vector<48x1xf32> to vector<48x128xf32>
      %239 = arith.mulf %234, %238 : vector<48x128xf32>
      %240 = vector.broadcast %220 : vector<1x128xf32> to vector<48x128xf32>
      %241 = arith.mulf %239, %240 : vector<48x128xf32>
      %242 = vector.broadcast %221 : vector<1x128xf32> to vector<48x128xf32>
      %243 = arith.addf %241, %242 : vector<48x128xf32>
      %244 = arith.truncf %243 : vector<48x128xf32> to vector<48x128xbf16>
      %c0_97 = arith.constant 0 : index
      %c0_98 = arith.constant 0 : index
      %245 = vector.load %arg23[%c0_97, %c0_98] : memref<128x128xbf16, #tpu.memory_space<vmem>>, vector<128x128xbf16>
      %cst_99 = arith.constant dense<0.000000e+00> : vector<48x128xf32>
      %246 = tpu.matmul %244, %245, %cst_99 {dimension_numbers = #tpu.dot_dimension_numbers<[1], [0], [0], [1], [0, 0, 1, 1], [], []>} : vector<48x128xbf16>, vector<128x128xbf16>, vector<48x128xf32> -> vector<48x128xf32>
      %247 = arith.truncf %243 : vector<48x128xf32> to vector<48x128xbf16>
      %c0_100 = arith.constant 0 : index
      %c0_101 = arith.constant 0 : index
      %248 = vector.load %arg24[%c0_100, %c0_101] : memref<128x128xbf16, #tpu.memory_space<vmem>>, vector<128x128xbf16>
      %cst_102 = arith.constant dense<0.000000e+00> : vector<48x128xf32>
      %249 = tpu.matmul %247, %248, %cst_102 {dimension_numbers = #tpu.dot_dimension_numbers<[1], [0], [0], [1], [0, 0, 1, 1], [], []>} : vector<48x128xbf16>, vector<128x128xbf16>, vector<48x128xf32> -> vector<48x128xf32>
      %250 = vector.extract_strided_slice %246 {offsets = [0, 0], sizes = [16, 128], strides = [1, 1]} : vector<48x128xf32> to vector<16x128xf32>
      %251 = vector.extract_strided_slice %249 {offsets = [16, 0], sizes = [4, 128], strides = [1, 1]} : vector<48x128xf32> to vector<4x128xf32>
      %252 = arith.mulf %250, %250 : vector<16x128xf32>
      %cst_103 = arith.constant dense<0.000000e+00> : vector<16xf32>
      %253 = vector.multi_reduction <add>, %252, %cst_103 [1] : vector<16x128xf32> to vector<16xf32>
      %254 = vector.shape_cast %253 : vector<16xf32> to vector<16x1xf32>
      %255 = math.rsqrt %254 : vector<16x1xf32>
      %256 = vector.broadcast %255 : vector<16x1xf32> to vector<16x128xf32>
      %257 = arith.mulf %250, %256 : vector<16x128xf32>
      %258 = arith.mulf %251, %251 : vector<4x128xf32>
      %cst_104 = arith.constant dense<0.000000e+00> : vector<4xf32>
      %259 = vector.multi_reduction <add>, %258, %cst_104 [1] : vector<4x128xf32> to vector<4xf32>
      %260 = vector.shape_cast %259 : vector<4xf32> to vector<4x1xf32>
      %261 = math.rsqrt %260 : vector<4x1xf32>
      %262 = vector.broadcast %261 : vector<4x1xf32> to vector<4x128xf32>
      %263 = arith.mulf %251, %262 : vector<4x128xf32>
      %264 = arith.truncf %263 : vector<4x128xf32> to vector<4x128xbf16>
      %265 = arith.truncf %257 : vector<16x128xf32> to vector<16x128xbf16>
      %cst_105 = arith.constant dense<0.000000e+00> : vector<4x16xf32>
      %266 = tpu.matmul %264, %265, %cst_105 {dimension_numbers = #tpu.dot_dimension_numbers<[1], [1], [0], [0], [0, 0, 1, 0], [], []>} : vector<4x128xbf16>, vector<16x128xbf16>, vector<4x16xf32> -> vector<4x16xf32>
      %cst_106 = arith.constant dense<0.000000e+00> : vector<16xf32>
      %267 = vector.multi_reduction <add>, %266, %cst_106 [0] : vector<4x16xf32> to vector<16xf32>
      %268 = vector.shape_cast %267 : vector<16xf32> to vector<1x16xf32>
      %cst_107 = arith.constant 4.000000e+00 : f32
      %269 = vector.broadcast %cst_107 : f32 to vector<1x16xf32>
      %270 = arith.divf %268, %269 : vector<1x16xf32>
      %271 = vector.broadcast %270 : vector<1x16xf32> to vector<4x16xf32>
      %272 = arith.subf %266, %271 : vector<4x16xf32>
      %273 = arith.mulf %272, %272 : vector<4x16xf32>
      %cst_108 = arith.constant dense<0.000000e+00> : vector<16xf32>
      %274 = vector.multi_reduction <add>, %273, %cst_108 [0] : vector<4x16xf32> to vector<16xf32>
      %275 = vector.shape_cast %274 : vector<16xf32> to vector<1x16xf32>
      %cst_109 = arith.constant 4.000000e+00 : f32
      %276 = vector.broadcast %cst_109 : f32 to vector<1x16xf32>
      %277 = arith.divf %275, %276 : vector<1x16xf32>
      %278 = vector.broadcast %270 : vector<1x16xf32> to vector<4x16xf32>
      %279 = arith.subf %266, %278 : vector<4x16xf32>
      %cst_110 = arith.constant 9.99999974E-6 : f32
      %280 = vector.broadcast %cst_110 : f32 to vector<1x16xf32>
      %281 = arith.addf %277, %280 : vector<1x16xf32>
      %282 = math.rsqrt %281 : vector<1x16xf32>
      %283 = vector.broadcast %282 : vector<1x16xf32> to vector<4x16xf32>
      %284 = arith.mulf %279, %283 : vector<4x16xf32>
      %c0_111 = arith.constant 0 : index
      %c0_112 = arith.constant 0 : index
      %285 = vector.load %arg25[%c0_111, %c0_112] : memref<4x1xf32, #tpu.memory_space<vmem>>, vector<4x1xf32>
      %286 = vector.broadcast %285 : vector<4x1xf32> to vector<4x16xf32>
      %287 = arith.mulf %284, %286 : vector<4x16xf32>
      %c0_113 = arith.constant 0 : index
      %c0_114 = arith.constant 0 : index
      %288 = vector.load %arg26[%c0_113, %c0_114] : memref<4x1xf32, #tpu.memory_space<vmem>>, vector<4x1xf32>
      %289 = vector.broadcast %288 : vector<4x1xf32> to vector<4x16xf32>
      %290 = arith.addf %287, %289 : vector<4x16xf32>
      %291 = vector.extract_strided_slice %246 {offsets = [24, 0], sizes = [16, 128], strides = [1, 1]} : vector<48x128xf32> to vector<16x128xf32>
      %292 = vector.extract_strided_slice %249 {offsets = [40, 0], sizes = [4, 128], strides = [1, 1]} : vector<48x128xf32> to vector<4x128xf32>
      %293 = arith.mulf %291, %291 : vector<16x128xf32>
      %cst_115 = arith.constant dense<0.000000e+00> : vector<16xf32>
      %294 = vector.multi_reduction <add>, %293, %cst_115 [1] : vector<16x128xf32> to vector<16xf32>
      %295 = vector.shape_cast %294 : vector<16xf32> to vector<16x1xf32>
      %296 = math.rsqrt %295 : vector<16x1xf32>
      %297 = vector.broadcast %296 : vector<16x1xf32> to vector<16x128xf32>
      %298 = arith.mulf %291, %297 : vector<16x128xf32>
      %299 = arith.mulf %292, %292 : vector<4x128xf32>
      %cst_116 = arith.constant dense<0.000000e+00> : vector<4xf32>
      %300 = vector.multi_reduction <add>, %299, %cst_116 [1] : vector<4x128xf32> to vector<4xf32>
      %301 = vector.shape_cast %300 : vector<4xf32> to vector<4x1xf32>
      %302 = math.rsqrt %301 : vector<4x1xf32>
      %303 = vector.broadcast %302 : vector<4x1xf32> to vector<4x128xf32>
      %304 = arith.mulf %292, %303 : vector<4x128xf32>
      %305 = arith.truncf %304 : vector<4x128xf32> to vector<4x128xbf16>
      %306 = arith.truncf %298 : vector<16x128xf32> to vector<16x128xbf16>
      %cst_117 = arith.constant dense<0.000000e+00> : vector<4x16xf32>
      %307 = tpu.matmul %305, %306, %cst_117 {dimension_numbers = #tpu.dot_dimension_numbers<[1], [1], [0], [0], [0, 0, 1, 0], [], []>} : vector<4x128xbf16>, vector<16x128xbf16>, vector<4x16xf32> -> vector<4x16xf32>
      %cst_118 = arith.constant dense<0.000000e+00> : vector<16xf32>
      %308 = vector.multi_reduction <add>, %307, %cst_118 [0] : vector<4x16xf32> to vector<16xf32>
      %309 = vector.shape_cast %308 : vector<16xf32> to vector<1x16xf32>
      %cst_119 = arith.constant 4.000000e+00 : f32
      %310 = vector.broadcast %cst_119 : f32 to vector<1x16xf32>
      %311 = arith.divf %309, %310 : vector<1x16xf32>
      %312 = vector.broadcast %311 : vector<1x16xf32> to vector<4x16xf32>
      %313 = arith.subf %307, %312 : vector<4x16xf32>
      %314 = arith.mulf %313, %313 : vector<4x16xf32>
      %cst_120 = arith.constant dense<0.000000e+00> : vector<16xf32>
      %315 = vector.multi_reduction <add>, %314, %cst_120 [0] : vector<4x16xf32> to vector<16xf32>
      %316 = vector.shape_cast %315 : vector<16xf32> to vector<1x16xf32>
      %cst_121 = arith.constant 4.000000e+00 : f32
      %317 = vector.broadcast %cst_121 : f32 to vector<1x16xf32>
      %318 = arith.divf %316, %317 : vector<1x16xf32>
      %319 = vector.broadcast %311 : vector<1x16xf32> to vector<4x16xf32>
      %320 = arith.subf %307, %319 : vector<4x16xf32>
      %cst_122 = arith.constant 9.99999974E-6 : f32
      %321 = vector.broadcast %cst_122 : f32 to vector<1x16xf32>
      %322 = arith.addf %318, %321 : vector<1x16xf32>
      %323 = math.rsqrt %322 : vector<1x16xf32>
      %324 = vector.broadcast %323 : vector<1x16xf32> to vector<4x16xf32>
      %325 = arith.mulf %320, %324 : vector<4x16xf32>
      %c0_123 = arith.constant 0 : index
      %c0_124 = arith.constant 0 : index
      %326 = vector.load %arg25[%c0_123, %c0_124] : memref<4x1xf32, #tpu.memory_space<vmem>>, vector<4x1xf32>
      %327 = vector.broadcast %326 : vector<4x1xf32> to vector<4x16xf32>
      %328 = arith.mulf %325, %327 : vector<4x16xf32>
      %c0_125 = arith.constant 0 : index
      %c0_126 = arith.constant 0 : index
      %329 = vector.load %arg26[%c0_125, %c0_126] : memref<4x1xf32, #tpu.memory_space<vmem>>, vector<4x1xf32>
      %330 = vector.broadcast %329 : vector<4x1xf32> to vector<4x16xf32>
      %331 = arith.addf %328, %330 : vector<4x16xf32>
      %332 = tpu.concatenate %290, %331 in 0 : vector<4x16xf32>, vector<4x16xf32> -> vector<8x16xf32>
      %333 = arith.truncf %332 : vector<8x16xf32> to vector<8x16xbf16>
      %c0_127 = arith.constant 0 : index
      %c0_128 = arith.constant 0 : index
      %334 = vector.load %arg27[%c0_127, %c0_128] : memref<16x1024xbf16, #tpu.memory_space<vmem>>, vector<16x1024xbf16>
      %cst_129 = arith.constant dense<0.000000e+00> : vector<8x1024xf32>
      %335 = tpu.matmul %333, %334, %cst_129 {dimension_numbers = #tpu.dot_dimension_numbers<[1], [0], [0], [1], [0, 0, 1, 1], [], []>} : vector<8x16xbf16>, vector<16x1024xbf16>, vector<8x1024xf32> -> vector<8x1024xf32>
      %c0_130 = arith.constant 0 : index
      %c0_131 = arith.constant 0 : index
      %c0_132 = arith.constant 0 : index
      %336 = vector.load %arg28[%c0_130, %c0_131, %c0_132] : memref<1x8x1024xf32, #tpu.memory_space<vmem>>, vector<1x8x1024xf32>
      %337 = vector.shape_cast %336 : vector<1x8x1024xf32> to vector<8x1024xf32>
      %338 = vector.shape_cast %335 : vector<8x1024xf32> to vector<1x8x1024xf32>
      tpu.vector_store %arg28[%c0_130, %c0_131, %c0_132], %338 {strides = array<i32>} : memref<1x8x1024xf32, #tpu.memory_space<vmem>>, vector<1x8x1024xf32>,
    } else {
    }
    return
  }
  func.func @transform_0(%arg0: i32, %arg1: i32) -> (i32, i32, i32) {
    %c0_i32 = arith.constant 0 : i32
    %c0_i32_0 = arith.constant 0 : i32
    %c0_i32_1 = arith.constant 0 : i32
    return %arg0, %c0_i32, %c0_i32_0 : i32, i32, i32
  }
  func.func @transform_1(%arg0: i32, %arg1: i32) -> (i32, i32) {
    %c0_i32 = arith.constant 0 : i32
    %c0_i32_0 = arith.constant 0 : i32
    %c0_i32_1 = arith.constant 0 : i32
    return %c0_i32, %c0_i32_0 : i32, i32
  }
  func.func @transform_2(%arg0: i32, %arg1: i32) -> (i32, i32) {
    %c0_i32 = arith.constant 0 : i32
    %c0_i32_0 = arith.constant 0 : i32
    %c0_i32_1 = arith.constant 0 : i32
    return %c0_i32, %c0_i32_0 : i32, i32
  }
  func.func @transform_3(%arg0: i32, %arg1: i32) -> (i32, i32, i32) {
    %c0_i32 = arith.constant 0 : i32
    %c0_i32_0 = arith.constant 0 : i32
    %c0_i32_1 = arith.constant 0 : i32
    return %arg1, %c0_i32, %c0_i32_0 : i32, i32, i32
  }
  func.func @transform_4(%arg0: i32, %arg1: i32) -> (i32, i32, i32) {
    %c0_i32 = arith.constant 0 : i32
    %c0_i32_0 = arith.constant 0 : i32
    %c0_i32_1 = arith.constant 0 : i32
    return %arg1, %c0_i32, %c0_i32_0 : i32, i32, i32
  }
  func.func @transform_5(%arg0: i32, %arg1: i32) -> (i32, i32, i32) {
    %c0_i32 = arith.constant 0 : i32
    %c0_i32_0 = arith.constant 0 : i32
    %c0_i32_1 = arith.constant 0 : i32
    return %arg1, %c0_i32, %c0_i32_0 : i32, i32, i32
  }
  func.func @transform_6(%arg0: i32, %arg1: i32) -> (i32, i32, i32) {
    %c0_i32 = arith.constant 0 : i32
    %c0_i32_0 = arith.constant 0 : i32
    %c0_i32_1 = arith.constant 0 : i32
    return %arg1, %c0_i32, %c0_i32_0 : i32, i32, i32
  }
  func.func @transform_7(%arg0: i32, %arg1: i32) -> (i32, i32, i32) {
    %c0_i32 = arith.constant 0 : i32
    %c0_i32_0 = arith.constant 0 : i32
    %c0_i32_1 = arith.constant 0 : i32
    return %arg1, %c0_i32, %c0_i32_0 : i32, i32, i32
  }
  func.func @transform_8(%arg0: i32, %arg1: i32) -> (i32, i32, i32) {
    %c0_i32 = arith.constant 0 : i32
    %c0_i32_0 = arith.constant 0 : i32
    %c0_i32_1 = arith.constant 0 : i32
    return %arg1, %c0_i32, %c0_i32_0 : i32, i32, i32
  }
  func.func @transform_9(%arg0: i32, %arg1: i32) -> (i32, i32, i32) {
    %c0_i32 = arith.constant 0 : i32
    %c0_i32_0 = arith.constant 0 : i32
    %c0_i32_1 = arith.constant 0 : i32
    return %arg1, %c0_i32, %c0_i32_0 : i32, i32, i32
  }
  func.func @transform_10(%arg0: i32, %arg1: i32) -> (i32, i32, i32) {
    %c0_i32 = arith.constant 0 : i32
    %c0_i32_0 = arith.constant 0 : i32
    %c0_i32_1 = arith.constant 0 : i32
    return %arg1, %c0_i32, %c0_i32_0 : i32, i32, i32
  }
  func.func @transform_11(%arg0: i32, %arg1: i32) -> (i32, i32, i32) {
    %c0_i32 = arith.constant 0 : i32
    %c0_i32_0 = arith.constant 0 : i32
    %c0_i32_1 = arith.constant 0 : i32
    return %arg1, %c0_i32, %c0_i32_0 : i32, i32, i32
  }
  func.func @transform_12(%arg0: i32, %arg1: i32) -> (i32, i32, i32) {
    %c0_i32 = arith.constant 0 : i32
    %c0_i32_0 = arith.constant 0 : i32
    %c0_i32_1 = arith.constant 0 : i32
    return %arg1, %c0_i32, %c0_i32_0 : i32, i32, i32
  }
  func.func @transform_13(%arg0: i32, %arg1: i32) -> (i32, i32, i32) {
    %c0_i32 = arith.constant 0 : i32
    %c0_i32_0 = arith.constant 0 : i32
    %c0_i32_1 = arith.constant 0 : i32
    return %arg1, %c0_i32, %c0_i32_0 : i32, i32, i32
  }
  func.func @transform_14(%arg0: i32, %arg1: i32) -> (i32, i32, i32) {
    %c0_i32 = arith.constant 0 : i32
    %c0_i32_0 = arith.constant 0 : i32
    %c0_i32_1 = arith.constant 0 : i32
    return %arg1, %c0_i32, %c0_i32_0 : i32, i32, i32
  }
  func.func @transform_15(%arg0: i32, %arg1: i32) -> (i32, i32) {
    %c0_i32 = arith.constant 0 : i32
    %c0_i32_0 = arith.constant 0 : i32
    %c0_i32_1 = arith.constant 0 : i32
    return %c0_i32, %c0_i32_0 : i32, i32
  }
  func.func @transform_16(%arg0: i32, %arg1: i32) -> (i32, i32) {
    %c0_i32 = arith.constant 0 : i32
    %c0_i32_0 = arith.constant 0 : i32
    %c0_i32_1 = arith.constant 0 : i32
    return %c0_i32, %c0_i32_0 : i32, i32
  }
  func.func @transform_17(%arg0: i32, %arg1: i32) -> (i32, i32) {
    %c0_i32 = arith.constant 0 : i32
    %c0_i32_0 = arith.constant 0 : i32
    %c0_i32_1 = arith.constant 0 : i32
    return %c0_i32, %c0_i32_0 : i32, i32
  }
  func.func @transform_18(%arg0: i32, %arg1: i32) -> (i32, i32) {
    %c0_i32 = arith.constant 0 : i32
    %c0_i32_0 = arith.constant 0 : i32
    %c0_i32_1 = arith.constant 0 : i32
    return %c0_i32, %c0_i32_0 : i32, i32
  }
  func.func @transform_19(%arg0: i32, %arg1: i32) -> (i32, i32) {
    %c0_i32 = arith.constant 0 : i32
    %c0_i32_0 = arith.constant 0 : i32
    %c0_i32_1 = arith.constant 0 : i32
    return %c0_i32, %c0_i32_0 : i32, i32
  }
  func.func @transform_20(%arg0: i32, %arg1: i32) -> (i32, i32) {
    %c0_i32 = arith.constant 0 : i32
    %c0_i32_0 = arith.constant 0 : i32
    %c0_i32_1 = arith.constant 0 : i32
    return %c0_i32, %c0_i32_0 : i32, i32
  }
  func.func @transform_21(%arg0: i32, %arg1: i32) -> (i32, i32) {
    %c0_i32 = arith.constant 0 : i32
    %c0_i32_0 = arith.constant 0 : i32
    %c0_i32_1 = arith.constant 0 : i32
    return %c0_i32, %c0_i32_0 : i32, i32
  }
  func.func @transform_22(%arg0: i32, %arg1: i32) -> (i32, i32) {
    %c0_i32 = arith.constant 0 : i32
    %c0_i32_0 = arith.constant 0 : i32
    %c0_i32_1 = arith.constant 0 : i32
    return %c0_i32, %c0_i32_0 : i32, i32
  }
  func.func @transform_23(%arg0: i32, %arg1: i32) -> (i32, i32) {
    %c0_i32 = arith.constant 0 : i32
    %c0_i32_0 = arith.constant 0 : i32
    %c0_i32_1 = arith.constant 0 : i32
    return %c0_i32, %c0_i32_0 : i32, i32
  }
  func.func @transform_24(%arg0: i32, %arg1: i32) -> (i32, i32) {
    %c0_i32 = arith.constant 0 : i32
    %c0_i32_0 = arith.constant 0 : i32
    %c0_i32_1 = arith.constant 0 : i32
    return %c0_i32, %c0_i32_0 : i32, i32
  }
  func.func @transform_25(%arg0: i32, %arg1: i32) -> (i32, i32) {
    %c0_i32 = arith.constant 0 : i32
    %c0_i32_0 = arith.constant 0 : i32
    %c0_i32_1 = arith.constant 0 : i32
    return %c0_i32, %c0_i32_0 : i32, i32
  }
  func.func @transform_26(%arg0: i32, %arg1: i32) -> (i32, i32, i32) {
    %c0_i32 = arith.constant 0 : i32
    %c0_i32_0 = arith.constant 0 : i32
    %c0_i32_1 = arith.constant 0 : i32
    return %arg0, %c0_i32, %c0_i32_0 : i32, i32, i32
  }
}

</mosaic_0001>

<bundles_post_ra>
// kernel: vit_segment_forward.1
= control target key start
LH: loop header
LB: loop body
LE: loop exit
PB: predicated region body
PF: predicated region fallthrough
CT: control target
= control target key end

     0   :  { %s5930_s27 = smov 0   ;;  %s5936_s28 = smov 0   ;;  %s7170_s0 = inlined_call_operand.vmem [shape: f32[2,48,192], index: 0, kind: input, shape index: {}]   ;;  %s7171_s1 = inlined_call_operand.vmem [shape: bf16[192,128], index: 1, kind: input, shape index: {}]   ;;  %s7172_s2 = inlined_call_operand.vmem [shape: f32[48,128], index: 2, kind: input, shape index: {}]   ;;  %s7173_s3 = inlined_call_operand.vmem [shape: f32[4,1,128], index: 3, kind: input, shape index: {}, may-alias: {3,9}]   ;;  %s7174_s4 = inlined_call_operand.vmem [shape: f32[4,1,128], index: 4, kind: input, shape index: {}, may-alias: {4,8,10,14}]   ;;  %s7175_s5 = inlined_call_operand.vmem [shape: bf16[4,128,384], index: 5, kind: input, shape index: {}]   ;;  %s7176_s6 = inlined_call_operand.vmem [shape: f32[4,1,384], index: 6, kind: input, shape index: {}]   ;;  %s7177_s7 = inlined_call_operand.vmem [shape: bf16[4,128,128], index: 7, kind: input, shape index: {}]   ;;  %s7178_s8 = inlined_call_operand.vmem [shape: f32[4,1,128], index: 8, kind: input, shape index: {}, may-alias: {4,8,10,14}]   ;;  %s7179_s9 = inlined_call_operand.vmem [shape: f32[4,1,128], index: 9, kind: input, shape index: {}, may-alias: {3,9}]   ;;  %s7180_s10 = inlined_call_operand.vmem [shape: f32[4,1,128], index: 10, kind: input, shape index: {}, may-alias: {4,8,10,14}]   ;;  %s7181_s11 = inlined_call_operand.vmem [shape: bf16[4,128,512], index: 11, kind: input, shape index: {}]   ;;  %s7182_s12 = inlined_call_operand.vmem [shape: f32[4,1,512], index: 12, kind: input, shape index: {}]   ;;  %s7183_s13 = inlined_call_operand.vmem [shape: bf16[4,512,128], index: 13, kind: input, shape index: {}]   ;;  %s7184_s14 = inlined_call_operand.vmem [shape: f32[4,1,128], index: 14, kind: input, shape index: {}, may-alias: {4,8,10,14}]   ;;  %s7185_s15 = inlined_call_operand.vmem [shape: f32[1,128], index: 15, kind: input, shape index: {}, may-alias: {15,19}]   ;;  %s7186_s16 = inlined_call_operand.vmem [shape: f32[1,128], index: 16, kind: input, shape index: {}, may-alias: {16,20}]   ;;  %s7187_s17 = inlined_call_operand.vmem [shape: bf16[128,128], index: 17, kind: input, shape index: {}]   ;;  %s7188_s18 = inlined_call_operand.vmem [shape: f32[24,128], index: 18, kind: input, shape index: {}]   ;;  %s7189_s19 = inlined_call_operand.vmem [shape: f32[1,128], index: 19, kind: input, shape index: {}, may-alias: {15,19}]   ;;  %s7190_s20 = inlined_call_operand.vmem [shape: f32[1,128], index: 20, kind: input, shape index: {}, may-alias: {16,20}]   ;;  %s7191_s21 = inlined_call_operand.vmem [shape: bf16[128,128], index: 21, kind: input, shape index: {}]   ;;  %s7192_s22 = inlined_call_operand.vmem [shape: bf16[128,128], index: 22, kind: input, shape index: {}]   ;;  %s7193_s23 = inlined_call_operand.vmem [shape: f32[4,1], index: 23, kind: input, shape index: {}]   ;;  %s7194_s24 = inlined_call_operand.vmem [shape: f32[4,1], index: 24, kind: input, shape index: {}]   ;;  %s7195_s25 = inlined_call_operand.vmem [shape: bf16[16,1024], index: 25, kind: input, shape index: {}]   ;;  %s7196_s26 = inlined_call_operand.vmem [shape: f32[2,8,1024], index: 26, kind: output, shape index: {}]  }
   0x1   :  { %7208 = sst [smem:[#allocation9_spill]] %s7170_s0 }
   0x2   :  { %7209 = sst [smem:[#allocation10_spill]] %s7171_s1 }
   0x3   :  { %7210 = sst [smem:[#allocation11_spill]] %s7172_s2 }
   0x4   :  { %7211 = sst [smem:[#allocation12_spill]] %s7173_s3  ;;  %s5932_s3 = smov 0  }
   0x5   :  { %7212 = sst [smem:[#allocation13_spill]] %s7174_s4 }
   0x6   :  { %7213 = sst [smem:[#allocation14_spill]] %s7175_s5 }
   0x7   :  { %7214 = sst [smem:[#allocation15_spill]] %s7176_s6 }
   0x8   :  { %7215 = sst [smem:[#allocation16_spill]] %s7177_s7  ;;  %s5934_s7 = smov 0  }
   0x9   :  { %7216 = sst [smem:[#allocation17_spill]] %s7178_s8  ;;  %s5938_s8 = smov 0  }
   0xa   :  { %7217 = sst [smem:[#allocation18_spill]] %s7179_s9 }
   0xb   :  { %7218 = sst [smem:[#allocation19_spill]] %s7180_s10 }
   0xc   :  { %7219 = sst [smem:[#allocation20_spill]] %s7185_s15 }
   0xd   :  { %7220 = sst [smem:[#allocation21_spill]] %s7186_s16 }
   0xe   :  { %7221 = sst [smem:[#allocation22_spill]] %s7187_s17 }
   0xf   :  { %7222 = sst [smem:[#allocation23_spill]] %s7188_s18 }
  0x10   :  { %7223 = sst [smem:[#allocation24_spill]] %s7189_s19 }
  0x11   :  { %7224 = sst [smem:[#allocation25_spill]] %s7190_s20 }
  0x12   :  { %7225 = sst [smem:[#allocation26_spill]] %s7191_s21 }
  0x13   :  { %7226 = sst [smem:[#allocation27_spill]] %s7192_s22 }
  0x14   :  { %7227 = sst [smem:[#allocation28_spill]] %s7193_s23 }
  0x15   :  { %7228 = sst [smem:[#allocation29_spill]] %s7194_s24 }
  0x16   :  { %7229 = sst [smem:[#allocation30_spill]] %s7195_s25 }
  0x17 LB: > { %7230 = sst [smem:[#allocation3_spill]] %s5775_s7  ;;  %s45_s4 = sadd.s32 1, %s5775_s7  ;;  %s5783_s8 = sphi %s5938_s8, %s36_s8   ;;  %s5779_s28 = sphi %s5936_s28, %s7272_s28   ;;  %s5775_s7 = sphi %s5934_s7, %s7271_s7   ;;  %s5771_s3 = sphi %s5932_s3, %s7270_s3   ;;  %s5767_s27 = sphi %s5930_s27, %s7269_s27  }
  0x18   : > { %7231 = sst [smem:[#allocation4_spill]] %s5779_s28  ;;  %s48_s29 = sadd.s32 1, %s5779_s28 }
  0x19   : > { %7232 = sst [smem:[#allocation5_spill]] %s5783_s8  ;;  %p46_p0 = scmp.ge.s32.totalorder %s45_s4, 4 }
  0x1a   : > { %p4731_p1 = scmp.ge.s32.totalorder %s5783_s8, 1  ;;  %p830_p2 = scmp.lt.s32.totalorder %s5783_s8, 9 }
  0x1b   : > { %s7274_s4 = smov (%p46_p0, %s45_s4), 0  ;;  %s7276_s29 = smov (!%p46_p0, %s48_s29), %s5779_s28 }
  0x1c   : > { %7233 = sst [smem:[#allocation6_spill]] %s7274_s4  ;;  %p831_p3 = pnand %p4731_p1, %p830_p2 }
  0x1d   : > { %p50_p4 = scmp.ge.s32.totalorder %s7276_s29, 2 }
  0x1e   : > { %834 = sbr.rel (%p831_p3) target bundleno = 6193 (0x1831), region = 124 }
  0x1f   : > { %s7278_s29 = smov (%p50_p4, %s7276_s29), 0 }
  0x20   : > { %7234 = sst [smem:[#allocation7_spill]] %s7278_s29 }
  0x25   : > { %p946_p5 = scmp.lt.s32.totalorder %s5771_s3, 1  ;;  %p951_p6 = scmp.lt.s32.totalorder %s5767_s27, 3 }
  0x26   : > { %s7237_s25 = sld [smem:[#allocation9_spill]]  ;;  %s7240_s10 = sld [smem:[#allocation16_spill]] }
  0x27   : > { %s7280_s3 = smov (!%p946_p5, %s5771_s3), 1  ;;  %s7241_s1 = sld [smem:[#allocation15_spill]] }
  0x28   : > { %s5964_s0 = scalar_select %p951_p6, %s5767_s27, 3 }
  0x29   : > { %s5353_s9 = smul.u32 96, %s7280_s3  ;;  %s4925_s30 = sshll.u32 %s7280_s3, 6 }
  0x2a   : > { %s5354_s23 = smul.u32 192, %s5964_s0  ;;  %s4922_s19 = sshll.u32 %s5964_s0, 6 }
  0x2b   : > { %s5355_s20 = smul.u32 3, %s5964_s0  ;;  %s7238_s3 = sld [smem:[#allocation14_spill]] }
  0x2c   : > { %s5977_s24 = scalar_lea.vmem %s7237_s25, %s5353_s9  ;;  %s5990_s6 = scalar_lea.vmem %s7240_s10, %s4922_s19 }
  0x2d   : > { %s5995_s7 = scalar_lea.vmem %s7241_s1, %s5355_s20  ;;  %s7242_s9 = sld [smem:[#allocation17_spill]] }
  0x2e   : > { %s7243_s18 = sld [smem:[#allocation18_spill]]  ;;  %s4923_s2 = sshll.u32 %s5964_s0, 8 }
  0x2f   : > { %s4738_s19 = sshll.u32 %s5964_s0, 2  ;;  %s6014_s4 = scalar_lea.vmem %s7181_s11, %s4923_s2 }
  0x30   : > { %s6019_s1 = scalar_lea.vmem %s7182_s12, %s4738_s19  ;;  %s6024_s15 = scalar_lea.vmem %s7183_s13, %s4923_s2 }
  0x31   : > { %s5985_s16 = scalar_lea.vmem %s7238_s3, %s5354_s23  ;;  %s7244_s3 = sld [smem:[#allocation19_spill]] }
  0x32   : > { %7239 = sst [smem:[#allocation8_spill]] %s5985_s16  ;;  %p4743_p7 = scmp.ne.s32.totalorder %s5767_s27, 0 }
  0x33   : > { %s973_s28 = scalar_lea.vmem %s7242_s9, %s5964_s0  ;;  %s996_s9 = scalar_lea.vmem %s7184_s14, %s5964_s0  ;;  %v5785_v1 = vmov (!%p4743_p7), 0   ;;  %v1012_v5 = vld [vmem:[%s5977_s24 + $0x28] sm:$0xff] (!%p4743_p7)  ;;  %v1014_v6 = vld [vmem:[%s5977_s24 + $0x38] sm:$0xff] (!%p4743_p7)  ;;  %vm1127_vm0 = vcmask (!%p4743_p7), 523264   ;;  %v1011_v19 = vld [vmem:[%s5977_s24 + $0x20] sm:$0xff] (!%p4743_p7) }
  0x34   : > { %s976_s21 = scalar_lea.vmem %s7243_s18, %s5964_s0  ;;  %1006 = sbr.rel (%p4743_p7) target bundleno = 332 (0x14c), region = 128  ;;  %5301 = vmatprep.subr.bf16.mxu1 (!%p4743_p7), %v5785_v1  ;;  %1137 = vmatprep.subr.bf16.mxu0 (!%p4743_p7), %v5785_v1  ;;  %v1022_v7 = vpack.c.bf16 (!%p4743_p7), %v1014_v6, %v1012_v5  ;;  %v1008_v8 = vld [vmem:[%s5977_s24 + $0x8] sm:$0xff] (!%p4743_p7)  ;;  %v1010_v9 = vld [vmem:[%s5977_s24 + $0x18] sm:$0xff] (!%p4743_p7)  ;;  %v1013_v20 = vld [vmem:[%s5977_s24 + $0x30] sm:$0xff] (!%p4743_p7) }
  0x35   : > { %s7245_s10 = sld [smem:[#allocation10_spill]] (!%p4743_p7)  ;;  %v1020_v11 = vpack.c.bf16 (!%p4743_p7), %v1010_v9, %v1008_v8  ;;  %v1007_v21 = vld [vmem:[%s5977_s24] sm:$0xff] (!%p4743_p7)  ;;  %v1009_v22 = vld [vmem:[%s5977_s24 + $0x10] sm:$0xff] (!%p4743_p7)  ;;  %v1016_v23 = vld [vmem:[%s5977_s24 + $0x48] sm:$0xff] (!%p4743_p7)  ;;  %v1021_v25 = vpack.c.bf16 (!%p4743_p7), %v1013_v20, %v1011_v19  ;;  %s7246_s2 = sld [smem:[#allocation11_spill]] (!%p4743_p7) }
  0x36   : > { %4757 = vmatprep.mubr.msk.bf16.mxu1 (!%p4743_p7), %vm1127_vm0, %v1022_v7  ;;  %v1018_v24 = vld [vmem:[%s5977_s24 + $0x58] sm:$0xff] (!%p4743_p7)  ;;  %v1019_v26 = vpack.c.bf16 (!%p4743_p7), %v1009_v22, %v1007_v21  ;;  %v1015_v28 = vld [vmem:[%s5977_s24 + $0x40] sm:$0xff] (!%p4743_p7)  ;;  %v1017_v29 = vld [vmem:[%s5977_s24 + $0x50] sm:$0xff] (!%p4743_p7) }
  0x37   : > { %s979_s16 = scalar_lea.vmem %s7244_s3, %s5964_s0  ;;  %s6033_s3 = scalar_lea.vmem %s7196_s26, %s4925_s30  ;;  %4756 = vmatprep.mubr.msk.bf16.mxu0 (!%p4743_p7), %vm1127_vm0, %v1020_v11  ;;  %v1024_v27 = vpack.c.bf16 (!%p4743_p7), %v1018_v24, %v1016_v23  ;;  %v1023_v30 = vpack.c.bf16 (!%p4743_p7), %v1017_v29, %v1015_v28 }
  0x3b   : > { %v5406_v0 = vld [vmem:[%s7245_s10] sm:$0xff]   ;;  %v5407_v2 = vld [vmem:[%s7245_s10 + $0x8] sm:$0xff]   ;;  %v5408_v3 = vld [vmem:[%s7245_s10 + $0x10] sm:$0xff]  }
  0x3c   : > { %5313 = vmatpush1.bf16.msra.mxu1 %v5406_v0  ;;  %1138 = vmatpush1.bf16.msra.mxu0 %v5406_v0  ;;  %v5409_v4 = vld [vmem:[%s7245_s10 + $0x18] sm:$0xff]   ;;  %v5410_v10 = vld [vmem:[%s7245_s10 + $0x20] sm:$0xff]   ;;  %v5411_v12 = vld [vmem:[%s7245_s10 + $0x28] sm:$0xff]  }
  0x3d   : > { %5302 = vmatprep.subr.bf16.mxu1 %v5785_v1  ;;  %1139 = vmatprep.subr.bf16.mxu0 %v5785_v1  ;;  %v5412_v13 = vld [vmem:[%s7245_s10 + $0x30] sm:$0xff]   ;;  %v5413_v14 = vld [vmem:[%s7245_s10 + $0x38] sm:$0xff]   ;;  %v5414_v15 = vld [vmem:[%s7245_s10 + $0x40] sm:$0xff]  }
  0x3e   : > { %v5415_v16 = vld [vmem:[%s7245_s10 + $0x48] sm:$0xff]   ;;  %v5416_v17 = vld [vmem:[%s7245_s10 + $0x50] sm:$0xff]   ;;  %v5417_v18 = vld [vmem:[%s7245_s10 + $0x58] sm:$0xff]  }
  0x3f   : > { %v1051_v31 = vld [vmem:[%s7246_s2 + $0x10] sm:$0xff]  ;;  %v1049_v32 = vld [vmem:[%s7246_s2] sm:$0xff]  ;;  %v1052_v34 = vld [vmem:[%s7246_s2 + $0x18] sm:$0xff] }
  0x40   : > { %5314 = vmatpush1.bf16.msra.mxu1 %v5407_v2  ;;  %1140 = vmatpush1.bf16.msra.mxu0 %v5407_v2  ;;  %v1050_v36 = vld [vmem:[%s7246_s2 + $0x8] sm:$0xff]  ;;  %v1053_v47 = vld [vmem:[%s7246_s2 + $0x20] sm:$0xff] }
  0x41   : > { %5303 = vmatprep.subr.bf16.mxu1 %v5785_v1  ;;  %1141 = vmatprep.subr.bf16.mxu0 %v5785_v1  ;;  %v1054_v49 = vld [vmem:[%s7246_s2 + $0x28] sm:$0xff] }
  0x44   : > { %5315 = vmatpush1.bf16.msra.mxu1 %v5408_v3  ;;  %1142 = vmatpush1.bf16.msra.mxu0 %v5408_v3 }
  0x45   : > { %5304 = vmatprep.subr.bf16.mxu1 %v5785_v1  ;;  %1143 = vmatprep.subr.bf16.mxu0 %v5785_v1 }
  0x48   : > { %5316 = vmatpush1.bf16.msra.mxu1 %v5409_v4  ;;  %1144 = vmatpush1.bf16.msra.mxu0 %v5409_v4 }
  0x49   : > { %5305 = vmatprep.subr.bf16.mxu1 %v5785_v1  ;;  %1145 = vmatprep.subr.bf16.mxu0 %v5785_v1 }
  0x4c   : > { %5317 = vmatpush1.bf16.msra.mxu1 %v5410_v10  ;;  %1146 = vmatpush1.bf16.msra.mxu0 %v5410_v10 }
  0x4d   : > { %5306 = vmatprep.subr.bf16.mxu1 %v5785_v1  ;;  %1147 = vmatprep.subr.bf16.mxu0 %v5785_v1 }
  0x50   : > { %5318 = vmatpush1.bf16.msra.mxu1 %v5411_v12  ;;  %1148 = vmatpush1.bf16.msra.mxu0 %v5411_v12 }
  0x51   : > { %5307 = vmatprep.subr.bf16.mxu1 %v5785_v1  ;;  %1149 = vmatprep.subr.bf16.mxu0 %v5785_v1 }
  0x54   : > { %5319 = vmatpush1.bf16.msra.mxu1 %v5412_v13  ;;  %1150 = vmatpush1.bf16.msra.mxu0 %v5412_v13 }
  0x55   : > { %5308 = vmatprep.subr.bf16.mxu1 %v5785_v1  ;;  %1151 = vmatprep.subr.bf16.mxu0 %v5785_v1 }
  0x58   : > { %5320 = vmatpush1.bf16.msra.mxu1 %v5413_v14  ;;  %1152 = vmatpush1.bf16.msra.mxu0 %v5413_v14 }
  0x59   : > { %5309 = vmatprep.subr.bf16.mxu1 %v5785_v1  ;;  %1153 = vmatprep.subr.bf16.mxu0 %v5785_v1 }
  0x5c   : > { %5321 = vmatpush1.bf16.msra.mxu1 %v5414_v15  ;;  %1154 = vmatpush1.bf16.msra.mxu0 %v5414_v15 }
  0x5d   : > { %5310 = vmatprep.subr.bf16.mxu1 %v5785_v1  ;;  %1155 = vmatprep.subr.bf16.mxu0 %v5785_v1 }
  0x60   : > { %5322 = vmatpush1.bf16.msra.mxu1 %v5415_v16  ;;  %1156 = vmatpush1.bf16.msra.mxu0 %v5415_v16 }
  0x61   : > { %5311 = vmatprep.subr.bf16.mxu1 %v5785_v1  ;;  %1157 = vmatprep.subr.bf16.mxu0 %v5785_v1 }
  0x64   : > { %5323 = vmatpush1.bf16.msra.mxu1 %v5416_v17  ;;  %1158 = vmatpush1.bf16.msra.mxu0 %v5416_v17 }
  0x65   : > { %5312 = vmatprep.subr.bf16.mxu1 %v5785_v1  ;;  %1159 = vmatprep.subr.bf16.mxu0 %v5785_v1 }
  0x68   : > { %5324 = vmatpush1.bf16.msra.mxu1 %v5417_v18  ;;  %1160 = vmatpush1.bf16.msra.mxu0 %v5417_v18 }
  0x6b   : > { %1178 = vmatmul.mubr.bf16.vlgmr.msra.gmra.mrb[0].mxu1 %v1021_v25  ;;  %1170 = vmatmul.mubr.bf16.vlgmr.msra.gmra.mrb[0].mxu0 %v1019_v26 }
  0x6c   : > { %4758 = vmatprep.mubr.msk.bf16.mxu1 %vm1127_vm0, %v1024_v27 }
  0x73   : > { %1186 = vmatmul.mubr.bf16.gmra.mrb[4].mxu1 %v1023_v30 }
 0x13e   : > { %v1179_v33 = vpop.f32.mrb[0].mxu1  ;;  %v1171_v35 = vpop.f32.mrb[0].mxu0 }
 0x13f   : > { %v1180_v37 = vadd.f32 %v1179_v33, %v1051_v31  ;;  %v1181_v38 = vpop.f32.mrb[1].mxu1  ;;  %v1172_v39 = vadd.f32 %v1171_v35, %v1049_v32  ;;  %v1173_v40 = vpop.f32.mrb[1].mxu0 }
 0x140   : > { %v1182_v41 = vpop.f32.mrb[2].mxu1  ;;  %v1174_v42 = vpop.f32.mrb[2].mxu0 }
 0x141   : > { %1196 = vst [vmem:[#allocation2 + $0x10] sm:$0xff] %v1180_v37  ;;  %v1183_v43 = vadd.f32 %v1182_v41, %v1052_v34  ;;  %v1184_v44 = vpop.f32.mrb[3].mxu1  ;;  %1194 = vst [vmem:[#allocation2] sm:$0xff] %v1172_v39  ;;  %v1175_v45 = vadd.f32 %v1174_v42, %v1050_v36  ;;  %v1176_v46 = vpop.f32.mrb[3].mxu0 }
 0x143   : > { %1197 = vst [vmem:[#allocation2 + $0x18] sm:$0xff] %v1183_v43  ;;  %1195 = vst [vmem:[#allocation2 + $0x8] sm:$0xff] %v1175_v45 }
 0x146   : > { %v1187_v48 = vpop.f32.mrb[4].mxu1 }
 0x147   : > { %v1188_v50 = vadd.f32 %v1187_v48, %v1053_v47  ;;  %v1189_v51 = vpop.f32.mrb[5].mxu1 }
 0x148   : > { %v1190_v52 = vpop.f32.mrb[6].mxu1 }
 0x149   : > { %1198 = vst [vmem:[#allocation2 + $0x20] sm:$0xff] %v1188_v50  ;;  %v1191_v53 = vadd.f32 %v1190_v52, %v1054_v49  ;;  %v1192_v54 = vpop.f32.mrb[7].mxu1 }
 0x14b   : > { %1199 = vst [vmem:[#allocation2 + $0x28] sm:$0xff] %v1191_v53 }
 0x14c PF: > { %p4759_p8 = scmp.ne.s32.totalorder %s5767_s27, 2 }
 0x14d   : > { %v1206_v55 = vld [vmem:[#allocation2 + $0x10] sm:$0xff] (!%p4759_p8)  ;;  %s7247_s20 = sld [smem:[#allocation23_spill]] (!%p4759_p8)  ;;  %v1207_v57 = vld [vmem:[#allocation2 + $0x18] sm:$0xff] (!%p4759_p8)  ;;  %v1204_v58 = vld [vmem:[#allocation2] sm:$0xff] (!%p4759_p8)  ;;  %s7248_s25 = sld [smem:[#allocation22_spill]] (!%p4759_p8)  ;;  %v5786_v63 = vmov (!%p4759_p8), 0.0  }
 0x14e   : > { %1203 = sbr.rel (%p4759_p8) target bundleno = 877 (0x36d), region = 132  ;;  %1216 = vadd.xlane.f32.xlu0 (!%p4759_p8), %v1206_v55  ;;  %v1205_v59 = vld [vmem:[#allocation2 + $0x8] sm:$0xff] (!%p4759_p8)  ;;  %1212 = vadd.xlane.f32.xlu1 (!%p4759_p8), %v1204_v58  ;;  %vm5787_vm1 = vmmov (!%p4759_p8), 0   ;;  %s7249_s5 = sld [smem:[#allocation20_spill]] (!%p4759_p8)  ;;  %vm1431_vm2 = vcmask (!%p4759_p8), 1040384  }
 0x14f   : > { %5325 = vmatprep.subr.bf16.mxu1 (!%p4759_p8), %v5786_v63  ;;  %5085 = vmatprep.subr.bf16.mxu0 (!%p4759_p8), %v5786_v63  ;;  %s7250_s29 = sld [smem:[#allocation21_spill]] (!%p4759_p8) }
 0x150   : > { %v1208_v61 = vld [vmem:[#allocation2 + $0x20] sm:$0xff] (!%p4759_p8)  ;;  %5105 = vmatprep.mubr.msk.bf16.mxu1 (!%p4759_p8), %vm5787_vm1, %v5786_v63  ;;  %5101 = vmatprep.mubr.msk.bf16.mxu0 (!%p4759_p8), %vm5787_vm1, %v5786_v63 }
 0x152   : > { %v1209_v60 = vld [vmem:[#allocation2 + $0x28] sm:$0xff] (!%p4759_p8)  ;;  %1218 = vadd.xlane.f32.xlu0 (!%p4759_p8), %v1207_v57  ;;  %1214 = vadd.xlane.f32.xlu1 (!%p4759_p8), %v1205_v59 }
 0x153   : > { %v1444_v56 = vld [vmem:[%s7247_s20 + $0x10] sm:$0xff] (!%p4759_p8)  ;;  %v5418_v62 = vld [vmem:[%s7248_s25] sm:$0xff] (!%p4759_p8)   ;;  %v5419_v24 = vld [vmem:[%s7248_s25 + $0x8] sm:$0xff] (!%p4759_p8)  }
 0x154   : > { %1445 = vst [vmem:[#allocation2 + $0x10] sm:$0xff] (!%p4759_p8), %v1444_v56  ;;  %1463 = vst [vmem:[#allocation2 + $0x28] sm:$0xff] (!%p4759_p8), %v1444_v56  ;;  %5333 = vmatpush3.bf16.msra.mxu1 (!%p4759_p8), %v5418_v62  ;;  %5086 = vmatpush3.bf16.msra.mxu0 (!%p4759_p8), %v5418_v62  ;;  %v5420_v25 = vld [vmem:[%s7248_s25 + $0x10] sm:$0xff] (!%p4759_p8)   ;;  %v5421_v26 = vld [vmem:[%s7248_s25 + $0x18] sm:$0xff] (!%p4759_p8)  }
 0x155   : > { %5326 = vmatprep.subr.bf16.mxu1 %v5786_v63  ;;  %5087 = vmatprep.subr.bf16.mxu0 %v5786_v63  ;;  %v5422_v27 = vld [vmem:[%s7248_s25 + $0x20] sm:$0xff]   ;;  %v5423_v28 = vld [vmem:[%s7248_s25 + $0x28] sm:$0xff]   ;;  %v5424_v29 = vld [vmem:[%s7248_s25 + $0x30] sm:$0xff]  }
 0x156   : > { %1220 = vadd.xlane.f32.xlu0 %v1208_v61  ;;  %1222 = vadd.xlane.f32.xlu1 %v1209_v60  ;;  %v5425_v30 = vld [vmem:[%s7248_s25 + $0x38] sm:$0xff]   ;;  %v4760_v51 = vld [vmem:[%s7249_s5] ss:$0 sm:$0xff] }
 0x158   : > { %5334 = vmatpush3.bf16.msra.mxu1 %v5419_v24  ;;  %5088 = vmatpush3.bf16.msra.mxu0 %v5419_v24 }
 0x159   : > { %5327 = vmatprep.subr.bf16.mxu1 %v5786_v63  ;;  %5089 = vmatprep.subr.bf16.mxu0 %v5786_v63 }
 0x15c   : > { %5335 = vmatpush3.bf16.msra.mxu1 %v5420_v25  ;;  %5090 = vmatpush3.bf16.msra.mxu0 %v5420_v25 }
 0x15d   : > { %5328 = vmatprep.subr.bf16.mxu1 %v5786_v63  ;;  %5091 = vmatprep.subr.bf16.mxu0 %v5786_v63 }
 0x160   : > { %5336 = vmatpush3.bf16.msra.mxu1 %v5421_v26  ;;  %5092 = vmatpush3.bf16.msra.mxu0 %v5421_v26 }
 0x161   : > { %5329 = vmatprep.subr.bf16.mxu1 %v5786_v63  ;;  %5093 = vmatprep.subr.bf16.mxu0 %v5786_v63 }
 0x164   : > { %5337 = vmatpush3.bf16.msra.mxu1 %v5422_v27  ;;  %5094 = vmatpush3.bf16.msra.mxu0 %v5422_v27 }
 0x165   : > { %5330 = vmatprep.subr.bf16.mxu1 %v5786_v63  ;;  %5095 = vmatprep.subr.bf16.mxu0 %v5786_v63 }
 0x168   : > { %5338 = vmatpush3.bf16.msra.mxu1 %v5423_v28  ;;  %5096 = vmatpush3.bf16.msra.mxu0 %v5423_v28 }
 0x169   : > { %5331 = vmatprep.subr.bf16.mxu1 %v5786_v63  ;;  %5097 = vmatprep.subr.bf16.mxu0 %v5786_v63 }
 0x16c   : > { %5339 = vmatpush3.bf16.msra.mxu1 %v5424_v29  ;;  %5098 = vmatpush3.bf16.msra.mxu0 %v5424_v29 }
 0x16d   : > { %5332 = vmatprep.subr.bf16.mxu1 %v5786_v63  ;;  %5099 = vmatprep.subr.bf16.mxu0 %v5786_v63 }
 0x170   : > { %5340 = vmatpush3.bf16.msra.mxu1 %v5425_v30  ;;  %5100 = vmatpush3.bf16.msra.mxu0 %v5425_v30 }
 0x1db   : > { %v1217_v0 = vpop.xlane.xlu0 %1216  ;;  %v1213_v2 = vpop.xlane.xlu1 %1212 }
 0x1dc   : > { %v1227_v1 = vmul.f32 0.0078125, %v1217_v0  ;;  %v1225_v3 = vmul.f32 0.0078125, %v1213_v2 }
 0x1de   : > { %v6140_v4 = vsub.f32 %v1206_v55, %v1227_v1  ;;  %v6142_v6 = vsub.f32 %v1204_v58, %v1225_v3 }
 0x1df   : > { %v1219_v5 = vpop.xlane.xlu0 %1218  ;;  %v1215_v9 = vpop.xlane.xlu1 %1214 }
 0x1e0   : > { %v1228_v7 = vmul.f32 0.0078125, %v1219_v5  ;;  %v1239_v8 = vmul.f32 %v6140_v4, %v6140_v4  ;;  %v1226_v10 = vmul.f32 0.0078125, %v1215_v9  ;;  %v1237_v12 = vmul.f32 %v6142_v6, %v6142_v6 }
 0x1e2   : > { %v6146_v11 = vsub.f32 %v1207_v57, %v1228_v7  ;;  %1247 = vadd.xlane.f32.xlu0 %v1239_v8  ;;  %v6150_v14 = vsub.f32 %v1205_v59, %v1226_v10  ;;  %v4761_v57 = vld [vmem:[%s7250_s29] ss:$0 sm:$0xff] }
 0x1e3   : > { %v1221_v13 = vpop.xlane.xlu0 %1220  ;;  %v1223_v17 = vpop.xlane.xlu1 %1222 }
 0x1e4   : > { %v1229_v15 = vmul.f32 0.0078125, %v1221_v13  ;;  %v1240_v16 = vmul.f32 %v6146_v11, %v6146_v11  ;;  %v1230_v18 = vmul.f32 0.0078125, %v1223_v17  ;;  %v1238_v20 = vmul.f32 %v6150_v14, %v6150_v14 }
 0x1e6   : > { %v6154_v19 = vsub.f32 %v1208_v61, %v1229_v15  ;;  %1249 = vadd.xlane.f32.xlu1 %v1240_v16  ;;  %1243 = vadd.xlane.f32.xlu0 %v1237_v12  ;;  %v6158_v21 = vsub.f32 %v1209_v60, %v1230_v18  ;;  %v1446_v16 = vld [vmem:[%s7247_s20] sm:$0xff] }
 0x1e7   : > { %v1450_v18 = vrot.slane %v1446_v16, 7 }
 0x1e8   : > { %v1241_v22 = vmul.f32 %v6154_v19, %v6154_v19  ;;  %v1242_v23 = vmul.f32 %v6158_v21, %v6158_v21 }
 0x1ea   : > { %1251 = vadd.xlane.f32.xlu0 %v1241_v22  ;;  %1245 = vadd.xlane.f32.xlu1 %v1238_v20 }
 0x1ee   : > { %1253 = vadd.xlane.f32.xlu1 %v1242_v23 }
 0x26f   : > { %v1248_v31 = vpop.xlane.xlu0 %1247 }
 0x270   : > { %v1257_v32 = vmul.f32 0.0078125, %v1248_v31 }
 0x272   : > { %v1263_v33 = vadd.f32 1e-05, %v1257_v32 }
 0x273   : > { %v1244_v34 = vpop.xlane.xlu0 %1243  ;;  %v1250_v35 = vpop.xlane.xlu1 %1249 }
 0x274   : > { %5426 = vrsqrt.f32 %v1263_v33  ;;  %v1255_v36 = vmul.f32 0.0078125, %v1244_v34  ;;  %v1258_v37 = vmul.f32 0.0078125, %v1250_v35 }
 0x276   : > { %v1261_v38 = vadd.f32 1e-05, %v1255_v36  ;;  %v1264_v39 = vadd.f32 1e-05, %v1258_v37 }
 0x277   : > { %v1252_v40 = vpop.xlane.xlu0 %1251  ;;  %v1246_v41 = vpop.xlane.xlu1 %1245 }
 0x278   : > { %5428 = vrsqrt.f32 %v1261_v38  ;;  %v1259_v42 = vmul.f32 0.0078125, %v1252_v40  ;;  %v1256_v43 = vmul.f32 0.0078125, %v1246_v41 }
 0x279   : > { %5430 = vrsqrt.f32 %v1264_v39 }
 0x27a   : > { %v1265_v44 = vadd.f32 1e-05, %v1259_v42  ;;  %v1262_v45 = vadd.f32 1e-05, %v1256_v43 }
 0x27b   : > { %v1254_v46 = vpop.xlane.xlu1 %1253 }
 0x27c   : > { %5432 = vrsqrt.f32 %v1265_v44  ;;  %v1260_v47 = vmul.f32 0.0078125, %v1254_v46 }
 0x27d   : > { %5434 = vrsqrt.f32 %v1262_v45 }
 0x27e   : > { %v5427_v48 = vpop.eup %5426  ;;  %v1266_v49 = vadd.f32 1e-05, %v1260_v47 }
 0x27f   : > { %v1275_v50 = vmul.f32 %v5427_v48, %v6140_v4 }
 0x280   : > { %5436 = vrsqrt.f32 %v1266_v49 }
 0x281   : > { %v1287_v55 = vmul.f32 %v4760_v51, %v1275_v50 }
 0x282   : > { %v5429_v52 = vpop.eup %5428 }
 0x283   : > { %v5431_v53 = vpop.eup %5430  ;;  %v1273_v56 = vmul.f32 %v5429_v52, %v6142_v6  ;;  %v1299_v62 = vadd.f32 %v4761_v57, %v1287_v55 }
 0x284   : > { %v1276_v54 = vmul.f32 %v5431_v53, %v6146_v11 }
 0x285   : > { %v1285_v2 = vmul.f32 %v4760_v51, %v1273_v56 }
 0x286   : > { %v5433_v58 = vpop.eup %5432  ;;  %v1288_v59 = vmul.f32 %v4760_v51, %v1276_v54 }
 0x287   : > { %v5435_v60 = vpop.eup %5434  ;;  %v1277_v61 = vmul.f32 %v5433_v58, %v6154_v19  ;;  %v1297_v8 = vadd.f32 %v4761_v57, %v1285_v2 }
 0x288   : > { %v1300_v0 = vadd.f32 %v4761_v57, %v1288_v59  ;;  %v1274_v1 = vmul.f32 %v5435_v60, %v6150_v14  ;;  %v1428_v14 = vld [vmem:[%s7247_s20 + $0x8] sm:$0xff] }
 0x289   : > { %v1289_v6 = vmul.f32 %v4760_v51, %v1277_v61  ;;  %v1433_v17 = vrot.slane %v1428_v14, 7 }
 0x28a   : > { %v5437_v3 = vpop.eup %5436  ;;  %v1304_v4 = vpack.c.bf16 %v1300_v0, %v1299_v62  ;;  %v1286_v5 = vmul.f32 %v4760_v51, %v1274_v1 }
 0x28b   : > { %v1278_v7 = vmul.f32 %v5437_v3, %v6158_v21  ;;  %v1301_v12 = vadd.f32 %v4761_v57, %v1289_v6  ;;  %v1434_v25 = vsel %vm1431_vm2, %v1450_v18, %v1433_v17 }
 0x28c   : > { %5106 = vmatmul.mubr.bf16.vlgmr.msra.gmra.mrb[0].mxu1 %v1304_v4  ;;  %v1298_v9 = vadd.f32 %v4761_v57, %v1286_v5 }
 0x28d   : > { %5109 = vmatprep.mubr.msk.bf16.mxu1 %vm5787_vm1, %v5786_v63  ;;  %v1290_v10 = vmul.f32 %v4760_v51, %v1278_v7 }
 0x28e   : > { %v1303_v11 = vpack.c.bf16 %v1298_v9, %v1297_v8 }
 0x28f   : > { %v1302_v13 = vadd.f32 %v4761_v57, %v1290_v10 }
 0x290   : > { %5102 = vmatmul.mubr.bf16.vlgmr.msra.gmra.mrb[0].mxu0 %v1303_v11 }
 0x291   : > { %v1305_v15 = vpack.c.bf16 %v1302_v13, %v1301_v12 }
 0x294   : > { %5110 = vmatmul.mubr.bf16.gmra.mrb[4].mxu1 %v1305_v15 }
 0x35f   : > { %v1412_v19 = vpop.f32.mrb[0].mxu1 }
 0x360   : > { %v1440_v20 = vadd.f32 %v1433_v17, %v1412_v19  ;;  %v5107_v63 = vpop.f32.mrb[1].mxu1 }
 0x361   : > { %v1415_v21 = vpop.f32.mrb[2].mxu1 }
 0x362   : > { %1443 = vst [vmem:[#allocation2 + $0xf] sm:$0x1] %v1440_v20  ;;  %v1456_v22 = vadd.f32 %v1450_v18, %v1415_v21  ;;  %v5108_v23 = vpop.f32.mrb[3].mxu1 }
 0x363   : > { %v1404_v24 = vpop.f32.mrb[0].mxu0 }
 0x364   : > { %1459 = vst [vmem:[#allocation2 + $0x17] sm:$0xfe] %v1456_v22  ;;  %v1438_v26 = vadd.f32 %v1450_v18, %v1404_v24  ;;  %v5103_v27 = vpop.f32.mrb[1].mxu0 }
 0x365   : > { %v1407_v28 = vpop.f32.mrb[2].mxu0 }
 0x366   : > { %1441 = vst [vmem:[#allocation2 - $0x1] sm:$0xfe] %v1438_v26  ;;  %v1439_v29 = vadd.f32 %v1434_v25, %v1407_v28  ;;  %v5104_v30 = vpop.f32.mrb[3].mxu0 }
 0x367   : > { %v1420_v31 = vpop.f32.mrb[4].mxu1 }
 0x368   : > { %1442 = vst [vmem:[#allocation2 + $0x7] sm:$0xff] %v1439_v29  ;;  %v1457_v32 = vadd.f32 %v1434_v25, %v1420_v31  ;;  %v5111_v33 = vpop.f32.mrb[5].mxu1 }
 0x369   : > { %v1423_v34 = vpop.f32.mrb[6].mxu1 }
 0x36a   : > { %1460 = vst [vmem:[#allocation2 + $0x1f] sm:$0xff] %v1457_v32  ;;  %v1458_v35 = vadd.f32 %v1433_v17, %v1423_v34  ;;  %v5112_v36 = vpop.f32.mrb[7].mxu1 }
 0x36c   : > { %1461 = vst [vmem:[#allocation2 + $0x27] sm:$0x1] %v1458_v35 }
 0x36d PF: > { %s7251_s22 = sld [smem:[#allocation8_spill]]  ;;  %v5788_v43 = vmov 0.0   ;;  %v5789_v63 = vmov 0   ;;  %vm5790_vm3 = vmmov 0   ;;  %s7252_s19 = sld [smem:[#allocation12_spill]]  ;;  %vm1873_vm4 = vcmask 523264  }
 0x36e   : > { %5113 = vmatprep.subr.bf16.mxu1 %v5788_v43  ;;  %1781 = vmatprep.mubr.bf16.mxu0 %v5789_v63  ;;  %s7254_s17 = sld [smem:[#allocation13_spill]]  ;;  %vm1987_vm5 = vcmask 1043456   ;;  %p1464_p9 = scmp.lt.s32.totalorder %s5767_s27, 2  ;;  %vm1940_vm7 = vcmask 195584  }
 0x36f   : > { %v1470_v37 = vld [vmem:[#allocation2] sm:$0xff]  ;;  %v1471_v39 = vld [vmem:[#allocation2 + $0x8] sm:$0xff]  ;;  %5129 = vmatprep.mubr.msk.bf16.mxu1 %vm5790_vm3, %v5788_v43  ;;  %s5791_s18 = smov 64   ;;  %p4888_p10 = scmp.ge.s32.totalorder %s5767_s27, 3 }
 0x370   : > { %1478 = vadd.xlane.f32.xlu0 %v1470_v37 }
 0x371   : > { %v1473_v40 = vld [vmem:[#allocation2 + $0x18] sm:$0xff] }
 0x373   : > { %v1472_v38 = vld [vmem:[#allocation2 + $0x10] sm:$0xff]  ;;  %v5455_v42 = vld [vmem:[%s7251_s22] ss:$12 sps:$4 sm:$0xff]   ;;  %v5457_v45 = vld [vmem:[%s7251_s22 + $0x1c] ss:$12 sps:$4 sm:$0xff]   ;;  %s7253_s30 = scalar_lea.vmem %s7252_s19, %s5964_s0 }
 0x374   : > { %1482 = vadd.xlane.f32.xlu1 %v1472_v38  ;;  %1480 = vadd.xlane.f32.xlu0 %v1471_v39  ;;  %v5453_v41 = vld [vmem:[%s7251_s22 + $0x4] ss:$12 sps:$4 sm:$0xff]   ;;  %v5456_v44 = vld [vmem:[%s7251_s22 + $0x8] ss:$12 sps:$4 sm:$0xff]   ;;  %v5460_v2 = vld [vmem:[%s7251_s22 + $0x20] ss:$12 sps:$4 sm:$0xff]   ;;  %s7255_s24 = scalar_lea.vmem %s7254_s17, %s5964_s0 }
 0x375   : > { %1749 = vmatprep.subr.bf16.mxu0 %v5453_v41  ;;  %5114 = vmatpush3.bf16.msra.mxu1 %v5456_v44  ;;  %v6243_v62 = vld [vmem:[#allocation2 + $0x20] sm:$0xff]  ;;  %v6246_v0 = vld [vmem:[#allocation2 + $0x28] sm:$0xff]  ;;  %v5463_v4 = vld [vmem:[%s7251_s22 + $0x30] ss:$12 sps:$4 sm:$0xff]  }
 0x376   : > { %1750 = vmatpush1.bf16.msra.mxu0 %v5455_v42  ;;  %5115 = vmatprep.subr.bf16.mxu1 %v5788_v43  ;;  %v5459_v1 = vld [vmem:[%s7251_s22 + $0x18] ss:$12 sps:$4 sm:$0xff]   ;;  %v5461_v3 = vld [vmem:[%s7251_s22 + $0x34] ss:$12 sps:$4 sm:$0xff]   ;;  %v5468_v8 = vld [vmem:[%s7251_s22 + $0x50] ss:$12 sps:$4 sm:$0xff]  }
 0x377   : > { %1751 = vmatprep.subr.bf16.mxu0 %v5457_v45  ;;  %v5464_v5 = vld [vmem:[%s7251_s22 + $0x38] ss:$12 sps:$4 sm:$0xff]   ;;  %v5467_v6 = vld [vmem:[%s7251_s22 + $0x48] ss:$12 sps:$4 sm:$0xff]   ;;  %v5471_v10 = vld [vmem:[%s7251_s22 + $0x60] ss:$12 sps:$4 sm:$0xff]  }
 0x378   : > { %1484 = vadd.xlane.f32.xlu1 %v1473_v40  ;;  %v5465_v7 = vld [vmem:[%s7251_s22 + $0x4c] ss:$12 sps:$4 sm:$0xff]   ;;  %v5469_v9 = vld [vmem:[%s7251_s22 + $0x64] ss:$12 sps:$4 sm:$0xff]   ;;  %v5472_v11 = vld [vmem:[%s7251_s22 + $0x68] ss:$12 sps:$4 sm:$0xff]  }
 0x379   : > { %5116 = vmatpush3.bf16.msra.mxu1 %v5460_v2  ;;  %v5473_v12 = vld [vmem:[%s7251_s22 + $0x7c] ss:$12 sps:$4 sm:$0xff]   ;;  %v5475_v13 = vld [vmem:[%s7251_s22 + $0x78] ss:$12 sps:$4 sm:$0xff]   ;;  %v5476_v15 = vld [vmem:[%s7251_s22 + $0x80] ss:$12 sps:$4 sm:$0xff]  }
 0x37a   : > { %1752 = vmatpush1.bf16.msra.mxu0 %v5459_v1  ;;  %5117 = vmatprep.subr.bf16.mxu1 %v5788_v43  ;;  %v5477_v14 = vld [vmem:[%s7251_s22 + $0x94] ss:$12 sps:$4 sm:$0xff]   ;;  %v5479_v16 = vld [vmem:[%s7251_s22 + $0x90] ss:$12 sps:$4 sm:$0xff]   ;;  %v5480_v17 = vld [vmem:[%s7251_s22 + $0x98] ss:$12 sps:$4 sm:$0xff]  }
 0x37b   : > { %1753 = vmatprep.subr.bf16.mxu0 %v5461_v3  ;;  %v5481_v18 = vld [vmem:[%s7251_s22 + $0xac] ss:$12 sps:$4 sm:$0xff]   ;;  %v5483_v19 = vld [vmem:[%s7251_s22 + $0xa8] ss:$12 sps:$4 sm:$0xff]   ;;  %v5484_v20 = vld [vmem:[%s7251_s22 + $0xb0] ss:$12 sps:$4 sm:$0xff]  }
 0x37c   : > { %v4770_v44 = vld [vmem:[%s7253_s30] ss:$0 sm:$0xff] }
 0x37d   : > { %5118 = vmatpush3.bf16.msra.mxu1 %v5464_v5 }
 0x37e   : > { %1754 = vmatpush1.bf16.msra.mxu0 %v5463_v4  ;;  %5119 = vmatprep.subr.bf16.mxu1 %v5788_v43 }
 0x37f   : > { %1755 = vmatprep.subr.bf16.mxu0 %v5465_v7 }
 0x381   : > { %5120 = vmatpush3.bf16.msra.mxu1 %v5468_v8 }
 0x382   : > { %1756 = vmatpush1.bf16.msra.mxu0 %v5467_v6  ;;  %5121 = vmatprep.subr.bf16.mxu1 %v5788_v43 }
 0x383   : > { %1757 = vmatprep.subr.bf16.mxu0 %v5469_v9 }
 0x385   : > { %5122 = vmatpush3.bf16.msra.mxu1 %v5472_v11 }
 0x386   : > { %1758 = vmatpush1.bf16.msra.mxu0 %v5471_v10  ;;  %5123 = vmatprep.subr.bf16.mxu1 %v5788_v43 }
 0x387   : > { %1759 = vmatprep.subr.bf16.mxu0 %v5473_v12 }
 0x389   : > { %5124 = vmatpush3.bf16.msra.mxu1 %v5476_v15  ;;  %v1466_v15 = vlaneseq }
 0x38a   : > { %1760 = vmatpush1.bf16.msra.mxu0 %v5475_v13  ;;  %5125 = vmatprep.subr.bf16.mxu1 %v5788_v43 }
 0x38b   : > { %1761 = vmatprep.subr.bf16.mxu0 %v5477_v14  ;;  %v6301_v14 = vshrl.u32 %v1466_v15, 7 }
 0x38d   : > { %5126 = vmatpush3.bf16.msra.mxu1 %v5480_v17  ;;  %v1616_v17 = vsub.s32 2, %v6301_v14 }
 0x38e   : > { %1762 = vmatpush1.bf16.msra.mxu0 %v5479_v16  ;;  %5127 = vmatprep.subr.bf16.mxu1 %v5788_v43  ;;  %v1608_v16 = vsub.s32 0, %v6301_v14 }
 0x38f   : > { %1763 = vmatprep.subr.bf16.mxu0 %v5481_v18  ;;  %v1604_v18 = vld [vmem:[%s5995_s7] sm:$0x7]  ;;  %s1465_s7 = scalar_select %p1464_p9, 17, 20 }
 0x391   : > { %5128 = vmatpush3.bf16.msra.mxu1 %v5484_v20  ;;  %v6309_v20 = vrot.slane %v1604_v18, %v1608_v16 }
 0x392   : > { %1764 = vmatpush1.bf16.msra.mxu0 %v5483_v19  ;;  %v1612_v19 = vsub.s32 1, %v6301_v14 }
 0x3fd   : > { %v1479_v46 = vpop.xlane.xlu0 %1478 }
 0x3fe   : > { %v1491_v48 = vmul.f32 0.0078125, %v1479_v46 }
 0x400   : > { %v6227_v50 = vsub.f32 %v1470_v37, %v1491_v48 }
 0x401   : > { %v1483_v47 = vpop.xlane.xlu1 %1482  ;;  %v1481_v52 = vpop.xlane.xlu0 %1480 }
 0x402   : > { %v1493_v49 = vmul.f32 0.0078125, %v1483_v47  ;;  %v1492_v54 = vmul.f32 0.0078125, %v1481_v52  ;;  %v1503_v55 = vmul.f32 %v6227_v50, %v6227_v50 }
 0x404   : > { %v6229_v51 = vsub.f32 %v1472_v38, %v1493_v49  ;;  %v6233_v57 = vsub.f32 %v1471_v39, %v1492_v54  ;;  %1509 = vadd.xlane.f32.xlu0 %v1503_v55  ;;  %v4771_v49 = vld [vmem:[%s7255_s24] ss:$0 sm:$0xff] }
 0x405   : > { %v1485_v53 = vpop.xlane.xlu1 %1484 }
 0x406   : > { %v1494_v56 = vmul.f32 0.0078125, %v1485_v53  ;;  %v1505_v59 = vmul.f32 %v6229_v51, %v6229_v51  ;;  %v1504_v60 = vmul.f32 %v6233_v57, %v6233_v57 }
 0x408   : > { %v6235_v58 = vsub.f32 %v1473_v40, %v1494_v56  ;;  %1513 = vadd.xlane.f32.xlu0 %v1505_v59  ;;  %1511 = vadd.xlane.f32.xlu1 %v1504_v60 }
 0x40a   : > { %v1506_v61 = vmul.f32 %v6235_v58, %v6235_v58 }
 0x40c   : > { %1486 = vadd.xlane.f32.xlu0 %v6243_v62  ;;  %1515 = vadd.xlane.f32.xlu1 %v1506_v61 }
 0x410   : > { %1488 = vadd.xlane.f32.xlu1 %v6246_v0 }
 0x491   : > { %v1510_v21 = vpop.xlane.xlu0 %1509 }
 0x492   : > { %v1521_v22 = vmul.f32 0.0078125, %v1510_v21  ;;  %v6313_v21 = vrot.slane %v1604_v18, %v1616_v17 }
 0x494   : > { %v1527_v23 = vadd.f32 1e-05, %v1521_v22 }
 0x495   : > { %v1512_v24 = vpop.xlane.xlu1 %1511  ;;  %v1514_v25 = vpop.xlane.xlu0 %1513 }
 0x496   : > { %5573 = vrsqrt.f32 %v1527_v23  ;;  %v1522_v26 = vmul.f32 0.0078125, %v1512_v24  ;;  %v1523_v27 = vmul.f32 0.0078125, %v1514_v25  ;;  %v6317_v24 = vrot.slane %v1604_v18, %v1612_v19 }
 0x498   : > { %v1528_v28 = vadd.f32 1e-05, %v1522_v26  ;;  %v1529_v29 = vadd.f32 1e-05, %v1523_v27 }
 0x499   : > { %v1516_v30 = vpop.xlane.xlu1 %1515  ;;  %v1487_v31 = vpop.xlane.xlu0 %1486 }
 0x49a   : > { %5575 = vrsqrt.f32 %v1528_v28  ;;  %v1524_v32 = vmul.f32 0.0078125, %v1516_v30  ;;  %v1495_v33 = vmul.f32 0.0078125, %v1487_v31 }
 0x49b   : > { %5577 = vrsqrt.f32 %v1529_v29 }
 0x49c   : > { %v1530_v34 = vadd.f32 1e-05, %v1524_v32  ;;  %v1501_v35 = vsub.f32 %v6243_v62, %v1495_v33 }
 0x49d   : > { %v1489_v36 = vpop.xlane.xlu1 %1488 }
 0x49e   : > { %5579 = vrsqrt.f32 %v1530_v34  ;;  %v1496_v37 = vmul.f32 0.0078125, %v1489_v36  ;;  %v1507_v38 = vmul.f32 %v1501_v35, %v1501_v35 }
 0x4a0   : > { %v5574_v39 = vpop.eup %5573  ;;  %v1502_v40 = vsub.f32 %v6246_v0, %v1496_v37  ;;  %1517 = vadd.xlane.f32.xlu0 %v1507_v38 }
 0x4a1   : > { %v1539_v41 = vmul.f32 %v5574_v39, %v6227_v50 }
 0x4a2   : > { %v1508_v42 = vmul.f32 %v1502_v40, %v1502_v40 }
 0x4a3   : > { %v1551_v47 = vmul.f32 %v4770_v44, %v1539_v41 }
 0x4a4   : > { %v5576_v45 = vpop.eup %5575  ;;  %1519 = vadd.xlane.f32.xlu1 %v1508_v42 }
 0x4a5   : > { %v1540_v46 = vmul.f32 %v5576_v45, %v6233_v57  ;;  %v5578_v48 = vpop.eup %5577  ;;  %v1563_v50 = vadd.f32 %v4771_v49, %v1551_v47 }
 0x4a6   : > { %v1541_v55 = vmul.f32 %v5578_v48, %v6229_v51 }
 0x4a7   : > { %v1552_v52 = vmul.f32 %v4770_v44, %v1540_v46 }
 0x4a8   : > { %v5580_v53 = vpop.eup %5579  ;;  %v1553_v57 = vmul.f32 %v4770_v44, %v1541_v55 }
 0x4a9   : > { %v1564_v54 = vadd.f32 %v4771_v49, %v1552_v52  ;;  %v1542_v56 = vmul.f32 %v5580_v53, %v6235_v58 }
 0x4aa   : > { %v1565_v62 = vadd.f32 %v4771_v49, %v1553_v57 }
 0x4ab   : > { %v1569_v59 = vpack.c.bf16 %v1564_v54, %v1563_v50  ;;  %v1554_v60 = vmul.f32 %v4770_v44, %v1542_v56 }
 0x4ad   : > { %1782 = vmatmul.mubr.bf16.vlgmr.msra.gmra.mrb[0].mxu0 %v1569_v59  ;;  %5130 = vmatmul.mubr.bf16.vlgmr.msra.gmra.mrb[0].mxu1 %v1569_v59  ;;  %v1566_v61 = vadd.f32 %v4771_v49, %v1554_v60 }
 0x4ae   : > { %1791 = vmatprep.mubr.bf16.mxu0 %v5789_v63  ;;  %5133 = vmatprep.mubr.msk.bf16.mxu1 %vm5790_vm3, %v5788_v43 }
 0x4af   : > { %v1570_v0 = vpack.c.bf16 %v1566_v61, %v1565_v62 }
 0x4b5   : > { %1792 = vmatmul.mubr.bf16.gmra.mrb[4].mxu0 %v1570_v0  ;;  %5134 = vmatmul.mubr.bf16.gmra.mrb[4].mxu1 %v1570_v0 }
 0x4b6   : > { %1801 = vmatprep.mubr.bf16.mxu0 %v5789_v63  ;;  %5137 = vmatprep.mubr.msk.bf16.mxu1 %vm5790_vm3, %v5788_v43 }
 0x52d   : > { %v1518_v51 = vpop.xlane.xlu0 %1517 }
 0x52e   : > { %v1525_v58 = vmul.f32 0.0078125, %v1518_v51 }
 0x530   : > { %v1531_v1 = vadd.f32 1e-05, %v1525_v58 }
 0x531   : > { %v1520_v2 = vpop.xlane.xlu1 %1519 }
 0x532   : > { %5581 = vrsqrt.f32 %v1531_v1  ;;  %v1526_v3 = vmul.f32 0.0078125, %v1520_v2 }
 0x534   : > { %v1532_v4 = vadd.f32 1e-05, %v1526_v3 }
 0x536   : > { %5583 = vrsqrt.f32 %v1532_v4 }
 0x53c   : > { %v5582_v5 = vpop.eup %5581 }
 0x53d   : > { %v1543_v7 = vmul.f32 %v5582_v5, %v1501_v35 }
 0x53f   : > { %v1555_v9 = vmul.f32 %v4770_v44, %v1543_v7 }
 0x540   : > { %v5584_v6 = vpop.eup %5583 }
 0x541   : > { %v1544_v8 = vmul.f32 %v5584_v6, %v1502_v40  ;;  %v1567_v11 = vadd.f32 %v4771_v49, %v1555_v9 }
 0x543   : > { %v1556_v10 = vmul.f32 %v4770_v44, %v1544_v8 }
 0x545   : > { %v1568_v12 = vadd.f32 %v4771_v49, %v1556_v10 }
 0x547   : > { %v1571_v13 = vpack.c.bf16 %v1568_v12, %v1567_v11  ;;  %v1467_v12 = vand.u32 127, %v1466_v15 }
 0x549   : > { %1802 = vmatmul.mubr.bf16.gmra.mrb[8].mxu0 %v1571_v13  ;;  %5138 = vmatmul.mubr.bf16.gmra.mrb[8].mxu1 %v1571_v13  ;;  %v1468_v13 = vstv %s1465_s7 }
 0x54a   : > { %vm6378_vm6 = vcmp.lt.s32.totalorder %v1467_v12, %v1468_v13 }
 0x580   : > { %v1783_v22 = vpop.f32.mrb[0].mxu0  ;;  %v1846_v23 = vpop.f32.mrb[0].mxu1 }
 0x581   : > { %v1785_v25 = vpop.f32.mrb[1].mxu0  ;;  %v5131_v26 = vpop.f32.mrb[1].mxu1  ;;  %v1784_v29 = vadd.f32 %v1783_v22, %v6309_v20  ;;  %v1847_v30 = vadd.f32 %v1846_v23, %v6313_v21 }
 0x582   : > { %v1787_v27 = vpop.f32.mrb[2].mxu0  ;;  %v1849_v28 = vpop.f32.mrb[2].mxu1  ;;  %v1786_v35 = vadd.f32 %v1785_v25, %v6317_v24 }
 0x583   : > { %v1788_v31 = vadd.f32 %v1787_v27, %v6309_v20  ;;  %v1850_v32 = vadd.f32 %v1849_v28, %v6313_v21  ;;  %v1789_v33 = vpop.f32.mrb[3].mxu0  ;;  %v5132_v34 = vpop.f32.mrb[3].mxu1 }
 0x584   : > { %v1790_v36 = vadd.f32 %v1789_v33, %v6317_v24 }
 0x585   : > { %v6325_v37 = vpack.c.bf16 %v1788_v31, %v1784_v29  ;;  %v6327_v38 = vpack.c.bf16 %v1850_v32, %v1847_v30 }
 0x586   : > { %v6329_v39 = vpack.c.bf16 %v1790_v36, %v1786_v35 }
 0x587   : > { %5145 = vmatprep.mubr.msk.bf16.mxu0 %vm1873_vm4, %v6325_v37 }
 0x588   : > { %v1793_v40 = vpop.f32.mrb[4].mxu0  ;;  %v1854_v41 = vpop.f32.mrb[4].mxu1  ;;  %5341 = vmatprep.subr.msk.bf16.mxu0 %vm1873_vm4, %v6329_v39  ;;  %v1881_v42 = vsel %vm1873_vm4, %v6329_v39, 0 }
 0x589   : > { %v1795_v44 = vpop.f32.mrb[5].mxu0  ;;  %v5135_v45 = vpop.f32.mrb[5].mxu1  ;;  %5142 = vmatpush3.bf16.xpose.msra.mxu0 %v1881_v42  ;;  %v1794_v54 = vadd.f32 %v1793_v40, %v6309_v20  ;;  %v1855_v55 = vadd.f32 %v1854_v41, %v6313_v21 }
 0x58a   : > { %v1796_v46 = vadd.f32 %v1795_v44, %v6317_v24  ;;  %v1797_v47 = vpop.f32.mrb[6].mxu0  ;;  %v1857_v48 = vpop.f32.mrb[6].mxu1 }
 0x58b   : > { %v1799_v49 = vpop.f32.mrb[7].mxu0  ;;  %v5136_v52 = vpop.f32.mrb[7].mxu1  ;;  %v6347_v56 = vpack.c.bf16 %v1794_v54, %v1794_v54  ;;  %v6349_v59 = vpack.c.bf16 %v1855_v55, %v1855_v55  ;;  %v1798_v62 = vadd.f32 %v1797_v47, %v6309_v20  ;;  %v1858_v0 = vadd.f32 %v1857_v48, %v6313_v21 }
 0x58c   : > { %v6338_v53 = vpack.c.bf16 %v1796_v46, %v1796_v46  ;;  %v1800_v3 = vadd.f32 %v1799_v49, %v6317_v24 }
 0x58d   : > { %v1989_v60 = vsel %vm1987_vm5, %v6349_v59, 0 }
 0x58e   : > { %5342 = vmatprep.subr.msk.bf16.mxu0 %vm1873_vm4, %v6338_v53  ;;  %v1884_v50 = vsel %vm1873_vm4, %v6338_v53, 0 }
 0x591   : > { %5144 = vmatpush3.bf16.xpose.msra.mxu0 %v1884_v50 }
 0x592   : > { %5149 = vmatprep.subr.bf16.mxu0 %v6327_v38 }
 0x598   : > { %5146 = vmatmul.mubr.msk.bf16.vlgmr.msra.gmra.mrb[12].mxu0 %vm1873_vm4, %v6347_v56 }
 0x599   : > { %5150 = vmatpush3.bf16.msra.mxu0 %v6327_v38 }
 0x59a   : > { %5343 = vmatprep.subr.msk.bf16.mxu0 %vm1987_vm5, %v6349_v59 }
 0x59d   : > { %5152 = vmatpush3.bf16.msra.mxu0 %v1989_v60 }
 0x61c   : > { %v1803_v57 = vpop.f32.mrb[8].mxu0  ;;  %v1862_v61 = vpop.f32.mrb[8].mxu1 }
 0x61d   : > { %v1804_v51 = vadd.f32 %v1803_v57, %v6309_v20  ;;  %v1863_v58 = vadd.f32 %v1862_v61, %v6313_v21  ;;  %v1805_v1 = vpop.f32.mrb[9].mxu0  ;;  %v5139_v2 = vpop.f32.mrb[9].mxu1 }
 0x61e   : > { %v1806_v4 = vadd.f32 %v1805_v1, %v6317_v24  ;;  %v6364_v5 = vpop.f32.mrb[10].mxu0  ;;  %v6366_v7 = vpop.f32.mrb[10].mxu1 }
 0x61f   : > { %v6368_v6 = vpack.c.bf16 %v1804_v51, %v1798_v62  ;;  %v6370_v8 = vpack.c.bf16 %v1863_v58, %v1858_v0  ;;  %v6372_v9 = vpop.f32.mrb[11].mxu0  ;;  %v5140_v10 = vpop.f32.mrb[11].mxu1 }
 0x620   : > { %v6374_v11 = vpack.c.bf16 %v1806_v4, %v1800_v3 }
 0x66b   : > { %v5147_v18 = vpop.f32.mrb[12].mxu0 }
 0x66c   : > { %v1920_v23 = vpop.f32.mrb[13].mxu0  ;;  %v1936_v25 = vmul.f32 0.125, %v5147_v18 }
 0x66d   : > { %v1934_v26 = vmul.f32 0.125, %v1920_v23  ;;  %v5148_v27 = vpop.f32.mrb[14].mxu0  ;;  %v1866_v23 = vadd.f32 %v6366_v7, %v6313_v21 }
 0x66e   : > { %v1923_v28 = vpop.f32.mrb[15].mxu0  ;;  %v1939_v32 = vsel %vm6378_vm6, %v1936_v25, -1e+30 }
 0x66f   : > { %v1935_v29 = vmul.f32 0.125, %v1923_v28  ;;  %v1937_v30 = vsel %vm6378_vm6, %v1934_v26, -1e+30  ;;  %v1947_v34 = vsel %vm1940_vm7, %v1939_v32, -inf  ;;  %v6418_v26 = vpack.c.bf16 %v1866_v23, %v1866_v23 }
 0x670   : > { %v1941_v31 = vsel %vm1940_vm7, %v1937_v30, -inf }
 0x671   : > { %1942 = vmax.xlane.f32.xlu0 %v1941_v31  ;;  %v1938_v15 = vsel %vm6378_vm6, %v1935_v29, -1e+30  ;;  %v2351_v27 = vsel %vm1987_vm5, %v6418_v26, 0 }
 0x672   : > { %v1944_v33 = vsel %vm1940_vm7, %v1938_v15, -inf }
 0x673   : > { %1945 = vmax.xlane.f32.xlu1 %v1944_v33 }
 0x675   : > { %1948 = vmax.xlane.f32.xlu0 %v1947_v34 }
 0x6fe   : > { %v1943_v35 = vpop.xlane.xlu0 %1942 }
 0x6ff   : > { %v1950_v36 = vsub.f32 %v1937_v30, %v1943_v35 }
 0x700   : > { %v1946_v40 = vpop.xlane.xlu1 %1945 }
 0x701   : > { %v1953_v41 = vmul.f32 1.442695, %v1950_v36  ;;  %v1951_v42 = vsub.f32 %v1938_v15, %v1946_v40 }
 0x702   : > { %v1949_v44 = vpop.xlane.xlu0 %1948 }
 0x703   : > { %5585 = vpow2.f32 %v1953_v41  ;;  %v1955_v45 = vmul.f32 1.442695, %v1951_v42  ;;  %v1952_v46 = vsub.f32 %v1939_v32, %v1949_v44 }
 0x705   : > { %5587 = vpow2.f32 %v1955_v45  ;;  %v1957_v47 = vmul.f32 1.442695, %v1952_v46 }
 0x707   : > { %5589 = vpow2.f32 %v1957_v47 }
 0x70d   : > { %v5586_v48 = vpop.eup %5585 }
 0x70e   : > { %v1959_v49 = vsel %vm6378_vm6, %v5586_v48, 0.0 }
 0x70f   : > { %v5588_v52 = vpop.eup %5587  ;;  %v1962_v50 = vsel %vm1940_vm7, %v1959_v49, 0.0 }
 0x710   : > { %1963 = vadd.xlane.f32.xlu1 %v1962_v50  ;;  %v1960_v54 = vsel %vm6378_vm6, %v5588_v52, 0.0 }
 0x711   : > { %v5590_v55 = vpop.eup %5589  ;;  %v1965_v60 = vsel %vm1940_vm7, %v1960_v54, 0.0 }
 0x712   : > { %1966 = vadd.xlane.f32.xlu0 %v1965_v60  ;;  %v1961_v57 = vsel %vm6378_vm6, %v5590_v55, 0.0 }
 0x713   : > { %v1968_v61 = vsel %vm1940_vm7, %v1961_v57, 0.0 }
 0x714   : > { %1969 = vadd.xlane.f32.xlu1 %v1968_v61 }
 0x725   : > { %2049 = vrot.lane.b32.xlu1 %v6338_v53, %s5791_s18 }
 0x728   : > { %2047 = vrot.lane.b32.xlu0 %v6329_v39, %s5791_s18 }
 0x729   : > { %2041 = vrot.lane.b32.xlu1 %v6325_v37, %s5791_s18 }
 0x72d   : > { %2043 = vrot.lane.b32.xlu1 %v6347_v56, %s5791_s18 }
 0x79d   : > { %v1964_v62 = vpop.xlane.xlu1 %1963 }
 0x79e   : > { %5591 = vrcp.f32 %v1964_v62 }
 0x79f   : > { %v1967_v0 = vpop.xlane.xlu0 %1966 }
 0x7a0   : > { %5593 = vrcp.f32 %v1967_v0 }
 0x7a1   : > { %v1970_v51 = vpop.xlane.xlu1 %1969 }
 0x7a2   : > { %5595 = vrcp.f32 %v1970_v51 }
 0x7a3   : > { %v2048_v58 = vpop.permute.xlu0 %2047 }
 0x7a4   : > { %5344 = vmatprep.subr.msk.bf16.mxu0 %vm1873_vm4, %v2048_v58  ;;  %v2058_v12 = vsel %vm1873_vm4, %v2048_v58, 0 }
 0x7a5   : > { %v2050_v2 = vpop.permute.xlu1 %2049 }
 0x7a6   : > { %v2061_v18 = vsel %vm1873_vm4, %v2050_v2, 0 }
 0x7a8   : > { %v5592_v1 = vpop.eup %5591 }
 0x7a9   : > { %v1974_v3 = vmul.f32 %v5592_v1, %v1959_v49  ;;  %v2042_v13 = vpop.permute.xlu1 %2041 }
 0x7aa   : > { %v5594_v53 = vpop.eup %5593 }
 0x7ab   : > { %v1975_v39 = vmul.f32 %v5594_v53, %v1960_v54 }
 0x7ac   : > { %v5596_v4 = vpop.eup %5595 }
 0x7ad   : > { %v1976_v10 = vmul.f32 %v5596_v4, %v1961_v57  ;;  %v1977_v37 = vpack.c.bf16 %v1975_v39, %v1974_v3  ;;  %v2044_v25 = vpop.permute.xlu1 %2043 }
 0x7af   : > { %5153 = vmatprep.mubr.msk.bf16.mxu0 %vm1940_vm7, %v1977_v37  ;;  %v1978_v56 = vpack.c.bf16 %v1976_v10, %v1976_v10 }
 0x7b1   : > { %5154 = vmatmul.mubr.msk.bf16.vlgmr.msra.gmra.mrb[16].mxu0 %vm1940_vm7, %v1978_v56 }
 0x7b2   : > { %5158 = vmatpush3.bf16.xpose.msra.mxu0 %v2058_v12  ;;  %5161 = vmatprep.mubr.msk.bf16.mxu0 %vm1873_vm4, %v2042_v13 }
 0x7b3   : > { %5345 = vmatprep.subr.msk.bf16.mxu0 %vm1873_vm4, %v2050_v2 }
 0x7ba   : > { %5160 = vmatpush3.bf16.xpose.msra.mxu0 %v2061_v18 }
 0x7bb   : > { %5181 = vmatprep.subr.bf16.mxu0 %v6370_v8 }
 0x7c1   : > { %5162 = vmatmul.mubr.msk.bf16.vlgmr.msra.gmra.mrb[20].mxu0 %vm1873_vm4, %v2044_v25  ;;  %v1810_v25 = vadd.f32 %v6372_v9, %v6317_v24  ;;  %v1808_v24 = vadd.f32 %v6364_v5, %v6309_v20 }
 0x7c2   : > { %5182 = vmatpush3.bf16.msra.mxu0 %v6370_v8 }
 0x7c3   : > { %5349 = vmatprep.subr.msk.bf16.mxu0 %vm1987_vm5, %v6418_v26  ;;  %v2235_v9 = vpack.c.bf16 %v1808_v24, %v1808_v24 }
 0x7c6   : > { %5184 = vmatpush3.bf16.msra.mxu0 %v2351_v27 }
 0x884   : > { %v6426_v28 = vpop.f32.mrb[16].mxu0 }
 0x885   : > { %v6428_v29 = vpop.f32.mrb[17].mxu0 }
 0x886   : > { %v5156_v30 = vpop.f32.mrb[18].mxu0 }
 0x887   : > { %v6430_v21 = vpop.f32.mrb[19].mxu0 }
 0x894   : > { %v5163_v7 = vpop.f32.mrb[20].mxu0 }
 0x895   : > { %v2097_v31 = vpop.f32.mrb[21].mxu0  ;;  %v2113_v15 = vmul.f32 0.125, %v5163_v7  ;;  %v2237_v7 = vpack.c.bf16 %v1810_v25, %v1810_v25 }
 0x896   : > { %v2111_v32 = vmul.f32 0.125, %v2097_v31  ;;  %v5164_v33 = vpop.f32.mrb[22].mxu0  ;;  %v2245_v31 = vsel %vm1873_vm4, %v6374_v11, 0 }
 0x897   : > { %v2100_v34 = vpop.f32.mrb[23].mxu0  ;;  %v2116_v42 = vsel %vm6378_vm6, %v2113_v15, -1e+30  ;;  %v2248_v15 = vsel %vm1873_vm4, %v2237_v7, 0 }
 0x898   : > { %v2112_v35 = vmul.f32 0.125, %v2100_v34  ;;  %v2114_v36 = vsel %vm6378_vm6, %v2111_v32, -1e+30  ;;  %v2123_v45 = vsel %vm1940_vm7, %v2116_v42, -inf }
 0x899   : > { %v2117_v40 = vsel %vm1940_vm7, %v2114_v36, -inf }
 0x89a   : > { %2118 = vmax.xlane.f32.xlu0 %v2117_v40  ;;  %v2115_v41 = vsel %vm6378_vm6, %v2112_v35, -1e+30 }
 0x89b   : > { %v2120_v44 = vsel %vm1940_vm7, %v2115_v41, -inf }
 0x89c   : > { %2121 = vmax.xlane.f32.xlu1 %v2120_v44 }
 0x89e   : > { %2124 = vmax.xlane.f32.xlu0 %v2123_v45 }
 0x927   : > { %v2119_v46 = vpop.xlane.xlu0 %2118 }
 0x928   : > { %v2126_v47 = vsub.f32 %v2114_v36, %v2119_v46 }
 0x929   : > { %v2122_v48 = vpop.xlane.xlu1 %2121 }
 0x92a   : > { %v2129_v49 = vmul.f32 1.442695, %v2126_v47  ;;  %v2127_v52 = vsub.f32 %v2115_v41, %v2122_v48 }
 0x92b   : > { %v2125_v50 = vpop.xlane.xlu0 %2124 }
 0x92c   : > { %5597 = vpow2.f32 %v2129_v49  ;;  %v2131_v54 = vmul.f32 1.442695, %v2127_v52  ;;  %v2128_v55 = vsub.f32 %v2116_v42, %v2125_v50 }
 0x92e   : > { %5599 = vpow2.f32 %v2131_v54  ;;  %v2133_v60 = vmul.f32 1.442695, %v2128_v55 }
 0x930   : > { %5601 = vpow2.f32 %v2133_v60 }
 0x936   : > { %v5598_v57 = vpop.eup %5597 }
 0x937   : > { %v2135_v61 = vsel %vm6378_vm6, %v5598_v57, 0.0 }
 0x938   : > { %v5600_v62 = vpop.eup %5599  ;;  %v2138_v0 = vsel %vm1940_vm7, %v2135_v61, 0.0 }
 0x939   : > { %2139 = vadd.xlane.f32.xlu0 %v2138_v0  ;;  %v2136_v51 = vsel %vm6378_vm6, %v5600_v62, 0.0 }
 0x93a   : > { %v5602_v58 = vpop.eup %5601  ;;  %v2141_v2 = vsel %vm1940_vm7, %v2136_v51, 0.0 }
 0x93b   : > { %v2137_v1 = vsel %vm6378_vm6, %v5602_v58, 0.0 }
 0x93c   : > { %v2144_v53 = vsel %vm1940_vm7, %v2137_v1, 0.0 }
 0x93d   : > { %2145 = vadd.xlane.f32.xlu1 %v2144_v53  ;;  %2142 = vadd.xlane.f32.xlu0 %v2141_v2 }
 0x94e   : > { %2159 = vrot.lane.b32.xlu1 %v6349_v59, %s5791_s18 }
 0x953   : > { %2157 = vrot.lane.b32.xlu0 %v6327_v38, %s5791_s18 }
 0x9c6   : > { %v2140_v3 = vpop.xlane.xlu0 %2139 }
 0x9c7   : > { %5603 = vrcp.f32 %v2140_v3 }
 0x9ca   : > { %v2143_v39 = vpop.xlane.xlu0 %2142  ;;  %v2146_v4 = vpop.xlane.xlu1 %2145 }
 0x9cb   : > { %5605 = vrcp.f32 %v2143_v39 }
 0x9cc   : > { %5607 = vrcp.f32 %v2146_v4 }
 0x9ce   : > { %v2158_v10 = vpop.permute.xlu0 %2157  ;;  %v2160_v37 = vpop.permute.xlu1 %2159 }
 0x9cf   : > { %5165 = vmatprep.subr.bf16.mxu1 %v2158_v10  ;;  %v2169_v12 = vsel %vm1987_vm5, %v2160_v37, 0 }
 0x9d0   : > { %5166 = vmatpush3.bf16.msra.mxu1 %v2158_v10 }
 0x9d1   : > { %5346 = vmatprep.subr.msk.bf16.mxu1 %vm1987_vm5, %v2160_v37  ;;  %v5604_v56 = vpop.eup %5603 }
 0x9d2   : > { %v2150_v13 = vmul.f32 %v5604_v56, %v2135_v61 }
 0x9d4   : > { %5168 = vmatpush3.bf16.msra.mxu1 %v2169_v12 }
 0x9d5   : > { %v5606_v59 = vpop.eup %5605  ;;  %5347 = vmatprep.subr.msk.bf16.mxu1 %vm1873_vm4, %v6374_v11 }
 0x9d6   : > { %v5608_v38 = vpop.eup %5607  ;;  %v2151_v18 = vmul.f32 %v5606_v59, %v2136_v51 }
 0x9d7   : > { %v2152_v23 = vmul.f32 %v5608_v38, %v2137_v1 }
 0x9d8   : > { %v2153_v27 = vpack.c.bf16 %v2151_v18, %v2150_v13 }
 0x9d9   : > { %v2154_v30 = vpack.c.bf16 %v2152_v23, %v2152_v23 }
 0x9da   : > { %5169 = vmatprep.mubr.msk.bf16.mxu1 %vm1940_vm7, %v2153_v27 }
 0x9db   : > { %5170 = vmatmul.mubr.msk.bf16.vlgmr.msra.gmra.mrb[12].mxu1 %vm1940_vm7, %v2154_v30 }
 0x9dc   : > { %5177 = vmatprep.mubr.msk.bf16.mxu1 %vm1873_vm4, %v6368_v6 }
 0x9dd   : > { %5174 = vmatpush3.bf16.xpose.msra.mxu1 %v2245_v31 }
 0x9de   : > { %5348 = vmatprep.subr.msk.bf16.mxu1 %vm1873_vm4, %v2237_v7 }
 0x9e5   : > { %5176 = vmatpush3.bf16.xpose.msra.mxu1 %v2248_v15 }
 0x9ec   : > { %5178 = vmatmul.mubr.msk.bf16.vlgmr.msra.gmra.mrb[16].mxu1 %vm1873_vm4, %v2235_v9 }
 0xaae   : > { %v6471_v32 = vpop.f32.mrb[12].mxu1 }
 0xaaf   : > { %v6473_v33 = vpop.f32.mrb[13].mxu1 }
 0xab0   : > { %v5172_v34 = vpop.f32.mrb[14].mxu1 }
 0xab1   : > { %v6475_v35 = vpop.f32.mrb[15].mxu1 }
 0xab2   : > { %v5438_v36 = vpack.i.bf16 %v6475_v35, %v6473_v33 }
 0xabf   : > { %v5179_v40 = vpop.f32.mrb[16].mxu1 }
 0xac0   : > { %v2284_v41 = vpop.f32.mrb[17].mxu1  ;;  %v2300_v46 = vmul.f32 0.125, %v5179_v40 }
 0xac1   : > { %v2298_v42 = vmul.f32 0.125, %v2284_v41  ;;  %v5180_v44 = vpop.f32.mrb[18].mxu1 }
 0xac2   : > { %v2287_v45 = vpop.f32.mrb[19].mxu1  ;;  %v2303_v52 = vsel %vm6378_vm6, %v2300_v46, -1e+30 }
 0xac3   : > { %v2299_v20 = vmul.f32 0.125, %v2287_v45  ;;  %v2301_v5 = vsel %vm6378_vm6, %v2298_v42, -1e+30  ;;  %v2310_v50 = vsel %vm1940_vm7, %v2303_v52, -inf }
 0xac4   : > { %v2304_v47 = vsel %vm1940_vm7, %v2301_v5, -inf }
 0xac5   : > { %2305 = vmax.xlane.f32.xlu1 %v2304_v47  ;;  %v2302_v48 = vsel %vm6378_vm6, %v2299_v20, -1e+30 }
 0xac6   : > { %v2307_v49 = vsel %vm1940_vm7, %v2302_v48, -inf }
 0xac7   : > { %2308 = vmax.xlane.f32.xlu0 %v2307_v49 }
 0xacb   : > { %2311 = vmax.xlane.f32.xlu0 %v2310_v50 }
 0xb52   : > { %v2306_v54 = vpop.xlane.xlu1 %2305 }
 0xb53   : > { %v2313_v55 = vsub.f32 %v2301_v5, %v2306_v54 }
 0xb54   : > { %v2309_v60 = vpop.xlane.xlu0 %2308 }
 0xb55   : > { %v2316_v57 = vmul.f32 1.442695, %v2313_v55  ;;  %v2314_v61 = vsub.f32 %v2302_v48, %v2309_v60 }
 0xb57   : > { %5609 = vpow2.f32 %v2316_v57  ;;  %v2318_v62 = vmul.f32 1.442695, %v2314_v61 }
 0xb58   : > { %v2312_v0 = vpop.xlane.xlu0 %2311 }
 0xb59   : > { %5611 = vpow2.f32 %v2318_v62  ;;  %v2315_v51 = vsub.f32 %v2303_v52, %v2312_v0 }
 0xb5b   : > { %v2320_v58 = vmul.f32 1.442695, %v2315_v51 }
 0xb5d   : > { %5613 = vpow2.f32 %v2320_v58 }
 0xb61   : > { %v5610_v1 = vpop.eup %5609 }
 0xb62   : > { %v2322_v53 = vsel %vm6378_vm6, %v5610_v1, 0.0 }
 0xb63   : > { %v5612_v2 = vpop.eup %5611  ;;  %v2325_v3 = vsel %vm1940_vm7, %v2322_v53, 0.0 }
 0xb64   : > { %2326 = vadd.xlane.f32.xlu1 %v2325_v3  ;;  %v2323_v39 = vsel %vm6378_vm6, %v5612_v2, 0.0 }
 0xb65   : > { %v2328_v4 = vsel %vm1940_vm7, %v2323_v39, 0.0 }
 0xb66   : > { %2329 = vadd.xlane.f32.xlu0 %v2328_v4 }
 0xb67   : > { %v5614_v10 = vpop.eup %5613 }
 0xb68   : > { %v2324_v37 = vsel %vm6378_vm6, %v5614_v10, 0.0 }
 0xb69   : > { %v2331_v56 = vsel %vm1940_vm7, %v2324_v37, 0.0 }
 0xb6a   : > { %2332 = vadd.xlane.f32.xlu1 %v2331_v56 }
 0xb7b   : > { %2411 = vrot.lane.b32.xlu1 %v2237_v7, %s5791_s18 }
 0xb7c   : > { %2409 = vrot.lane.b32.xlu0 %v6374_v11, %s5791_s18 }
 0xb7f   : > { %2403 = vrot.lane.b32.xlu1 %v6368_v6, %s5791_s18 }
 0xb83   : > { %2405 = vrot.lane.b32.xlu1 %v2235_v9, %s5791_s18 }
 0xbf1   : > { %v2327_v12 = vpop.xlane.xlu1 %2326 }
 0xbf2   : > { %5615 = vrcp.f32 %v2327_v12 }
 0xbf3   : > { %v2330_v59 = vpop.xlane.xlu0 %2329 }
 0xbf4   : > { %5617 = vrcp.f32 %v2330_v59 }
 0xbf7   : > { %v2333_v38 = vpop.xlane.xlu1 %2332  ;;  %v2410_v13 = vpop.permute.xlu0 %2409 }
 0xbf8   : > { %5619 = vrcp.f32 %v2333_v38  ;;  %5350 = vmatprep.subr.msk.bf16.mxu0 %vm1873_vm4, %v2410_v13  ;;  %v2420_v15 = vsel %vm1873_vm4, %v2410_v13, 0 }
 0xbfb   : > { %v2412_v30 = vpop.permute.xlu1 %2411 }
 0xbfc   : > { %v5616_v18 = vpop.eup %5615  ;;  %v2423_v9 = vsel %vm1873_vm4, %v2412_v30, 0 }
 0xbfd   : > { %v2337_v25 = vmul.f32 %v5616_v18, %v2322_v53 }
 0xbfe   : > { %v5618_v23 = vpop.eup %5617 }
 0xbff   : > { %v2338_v27 = vmul.f32 %v5618_v23, %v2323_v39  ;;  %v2404_v24 = vpop.permute.xlu1 %2403 }
 0xc01   : > { %v2340_v11 = vpack.c.bf16 %v2338_v27, %v2337_v25 }
 0xc02   : > { %v5620_v7 = vpop.eup %5619 }
 0xc03   : > { %v2339_v31 = vmul.f32 %v5620_v7, %v2324_v37  ;;  %5185 = vmatprep.mubr.msk.bf16.mxu0 %vm1940_vm7, %v2340_v11  ;;  %v2406_v34 = vpop.permute.xlu1 %2405 }
 0xc05   : > { %v2341_v6 = vpack.c.bf16 %v2339_v31, %v2339_v31 }
 0xc07   : > { %5186 = vmatmul.mubr.msk.bf16.vlgmr.msra.gmra.mrb[24].mxu0 %vm1940_vm7, %v2341_v6 }
 0xc08   : > { %5190 = vmatpush3.bf16.xpose.msra.mxu0 %v2420_v15  ;;  %5193 = vmatprep.mubr.msk.bf16.mxu0 %vm1873_vm4, %v2404_v24 }
 0xc09   : > { %5351 = vmatprep.subr.msk.bf16.mxu0 %vm1873_vm4, %v2412_v30 }
 0xc10   : > { %5192 = vmatpush3.bf16.xpose.msra.mxu0 %v2423_v9 }
 0xc17   : > { %5194 = vmatmul.mubr.msk.bf16.vlgmr.msra.gmra.mrb[28].mxu0 %vm1873_vm4, %v2406_v34 }
 0xc18   : > { %3080 = vmatprep.mubr.bf16.mxu0 %v5789_v63 }
 0xcda   : > { %v6512_v40 = vpop.f32.mrb[24].mxu0 }
 0xcdb   : > { %v6514_v41 = vpop.f32.mrb[25].mxu0 }
 0xcdc   : > { %v5188_v42 = vpop.f32.mrb[26].mxu0 }
 0xcdd   : > { %v6516_v44 = vpop.f32.mrb[27].mxu0  ;;  %v5485_v42 = vld [vmem:[%s5990_s6] sm:$0xff]  }
 0xcea   : > { %v5195_v45 = vpop.f32.mrb[28].mxu0 }
 0xceb   : > { %v2459_v46 = vpop.f32.mrb[29].mxu0  ;;  %v2475_v20 = vmul.f32 0.125, %v5195_v45 }
 0xcec   : > { %v2473_v5 = vmul.f32 0.125, %v2459_v46  ;;  %v5196_v47 = vpop.f32.mrb[30].mxu0  ;;  %v5488_v46 = vld [vmem:[%s5990_s6 + $0x18] sm:$0xff]  }
 0xced   : > { %v2462_v48 = vpop.f32.mrb[31].mxu0  ;;  %v2478_v55 = vsel %vm6378_vm6, %v2475_v20, -1e+30  ;;  %v5489_v20 = vld [vmem:[%s5990_s6 + $0x20] sm:$0xff]   ;;  %v5491_v47 = vld [vmem:[%s5990_s6 + $0x30] sm:$0xff]  }
 0xcee   : > { %v2474_v49 = vmul.f32 0.125, %v2462_v48  ;;  %v2476_v52 = vsel %vm6378_vm6, %v2473_v5, -1e+30  ;;  %v2485_v57 = vsel %vm1940_vm7, %v2478_v55, -inf  ;;  %v5490_v5 = vld [vmem:[%s5990_s6 + $0x28] sm:$0xff]   ;;  %v5492_v48 = vld [vmem:[%s5990_s6 + $0x38] sm:$0xff]  }
 0xcef   : > { %v2479_v50 = vsel %vm1940_vm7, %v2476_v52, -inf }
 0xcf0   : > { %2480 = vmax.xlane.f32.xlu0 %v2479_v50  ;;  %v2477_v54 = vsel %vm6378_vm6, %v2474_v49, -1e+30 }
 0xcf1   : > { %v2482_v60 = vsel %vm1940_vm7, %v2477_v54, -inf }
 0xcf2   : > { %2483 = vmax.xlane.f32.xlu1 %v2482_v60 }
 0xcf4   : > { %2486 = vmax.xlane.f32.xlu0 %v2485_v57 }
 0xd7d   : > { %v2481_v61 = vpop.xlane.xlu0 %2480 }
 0xd7e   : > { %v2488_v62 = vsub.f32 %v2476_v52, %v2481_v61 }
 0xd7f   : > { %v2484_v0 = vpop.xlane.xlu1 %2483 }
 0xd80   : > { %v2491_v51 = vmul.f32 1.442695, %v2488_v62  ;;  %v2489_v58 = vsub.f32 %v2477_v54, %v2484_v0  ;;  %v5693_v62 = vld [vmem:[#allocation2] sm:$0xff] }
 0xd81   : > { %v2487_v1 = vpop.xlane.xlu0 %2486 }
 0xd82   : > { %5621 = vpow2.f32 %v2491_v51  ;;  %v2493_v53 = vmul.f32 1.442695, %v2489_v58  ;;  %v2490_v2 = vsub.f32 %v2478_v55, %v2487_v1  ;;  %v4820_v58 = vld [vmem:[%s973_s28] ss:$0 sm:$0xff]  ;;  %v5694_v1 = vld [vmem:[#allocation2 + $0x8] sm:$0xff] }
 0xd84   : > { %5623 = vpow2.f32 %v2493_v53  ;;  %v2495_v3 = vmul.f32 1.442695, %v2490_v2 }
 0xd86   : > { %5625 = vpow2.f32 %v2495_v3 }
 0xd8c   : > { %v5622_v39 = vpop.eup %5621 }
 0xd8d   : > { %v2497_v4 = vsel %vm6378_vm6, %v5622_v39, 0.0 }
 0xd8e   : > { %v5624_v10 = vpop.eup %5623  ;;  %v2500_v37 = vsel %vm1940_vm7, %v2497_v4, 0.0 }
 0xd8f   : > { %2501 = vadd.xlane.f32.xlu0 %v2500_v37  ;;  %v2498_v56 = vsel %vm6378_vm6, %v5624_v10, 0.0 }
 0xd90   : > { %v5626_v12 = vpop.eup %5625  ;;  %v2503_v13 = vsel %vm1940_vm7, %v2498_v56, 0.0 }
 0xd91   : > { %v2499_v59 = vsel %vm6378_vm6, %v5626_v12, 0.0 }
 0xd92   : > { %v2506_v38 = vsel %vm1940_vm7, %v2499_v59, 0.0 }
 0xd93   : > { %2507 = vadd.xlane.f32.xlu1 %v2506_v38  ;;  %2504 = vadd.xlane.f32.xlu0 %v2503_v13 }
 0xda4   : > { %2521 = vrot.lane.b32.xlu1 %v6418_v26, %s5791_s18 }
 0xda8   : > { %5439 = vrot.lane.b32.xlu1 %v5438_v36, %s5791_s18 }
 0xda9   : > { %2519 = vrot.lane.b32.xlu0 %v6370_v8, %s5791_s18 }
 0xe1c   : > { %v2502_v18 = vpop.xlane.xlu0 %2501 }
 0xe1d   : > { %5627 = vrcp.f32 %v2502_v18 }
 0xe20   : > { %v2505_v22 = vpop.xlane.xlu0 %2504  ;;  %v2508_v23 = vpop.xlane.xlu1 %2507 }
 0xe21   : > { %5629 = vrcp.f32 %v2505_v22 }
 0xe22   : > { %5631 = vrcp.f32 %v2508_v23 }
 0xe24   : > { %v2520_v25 = vpop.permute.xlu0 %2519  ;;  %v2522_v27 = vpop.permute.xlu1 %2521 }
 0xe25   : > { %5197 = vmatprep.subr.bf16.mxu1 %v2520_v25  ;;  %v2531_v33 = vsel %vm1987_vm5, %v2522_v27, 0 }
 0xe26   : > { %5198 = vmatpush3.bf16.msra.mxu1 %v2520_v25 }
 0xe27   : > { %5352 = vmatprep.subr.msk.bf16.mxu1 %vm1987_vm5, %v2522_v27  ;;  %v5628_v30 = vpop.eup %5627 }
 0xe28   : > { %v5440_v26 = vpop.permute.xlu1 %5439  ;;  %v2512_v15 = vmul.f32 %v5628_v30, %v2497_v4 }
 0xe29   : > { %v5442_v35 = vunpack.i.h.bf16 %v5440_v26  ;;  %v5441_v36 = vunpack.i.l.bf16 %v5440_v26 }
 0xe2a   : > { %5200 = vmatpush3.bf16.msra.mxu1 %v2531_v33  ;;  %v5696_v33 = vld [vmem:[#allocation2 + $0x18] sm:$0xff] }
 0xe2b   : > { %v5630_v8 = vpop.eup %5629  ;;  %v2232_v11 = vsel %vm1873_vm4, %v6430_v21, %v5442_v35  ;;  %v2231_v7 = vsel %vm1873_vm4, %v6428_v29, %v5441_v36  ;;  %5205 = vmatprep.subr.bf16.mxu1 %v5788_v43  ;;  %v5486_v29 = vld [vmem:[%s5990_s6 + $0x8] sm:$0xff]   ;;  %v5487_v21 = vld [vmem:[%s5990_s6 + $0x10] sm:$0xff]  }
 0xe2c   : > { %v5632_v31 = vpop.eup %5631  ;;  %v2596_v6 = vpack.c.bf16 %v2232_v11, %v2231_v7  ;;  %v2513_v24 = vmul.f32 %v5630_v8, %v2498_v56 }
 0xe2d   : > { %v2514_v9 = vmul.f32 %v5632_v31, %v2499_v59  ;;  %v5697_v31 = vld [vmem:[#allocation2 + $0x20] sm:$0xff] }
 0xe2e   : > { %v2515_v34 = vpack.c.bf16 %v2513_v24, %v2512_v15 }
 0xe2f   : > { %v2516_v45 = vpack.c.bf16 %v2514_v9, %v2514_v9 }
 0xe30   : > { %5201 = vmatprep.mubr.msk.bf16.mxu1 %vm1940_vm7, %v2515_v34 }
 0xe31   : > { %5202 = vmatmul.mubr.msk.bf16.vlgmr.msra.gmra.mrb[20].mxu1 %vm1940_vm7, %v2516_v45 }
 0xe32   : > { %5206 = vmatpush3.bf16.msra.mxu1 %v5485_v42  ;;  %5221 = vmatprep.mubr.msk.bf16.mxu1 %vm5790_vm3, %v5788_v43  ;;  %v5698_v42 = vld [vmem:[#allocation2 + $0x28] sm:$0xff] }
 0xe33   : > { %5207 = vmatprep.subr.bf16.mxu1 %v5788_v43 }
 0xe36   : > { %5208 = vmatpush3.bf16.msra.mxu1 %v5486_v29 }
 0xe37   : > { %5209 = vmatprep.subr.bf16.mxu1 %v5788_v43 }
 0xe3a   : > { %5210 = vmatpush3.bf16.msra.mxu1 %v5487_v21 }
 0xe3b   : > { %5211 = vmatprep.subr.bf16.mxu1 %v5788_v43 }
 0xe3e   : > { %5212 = vmatpush3.bf16.msra.mxu1 %v5488_v46 }
 0xe3f   : > { %5213 = vmatprep.subr.bf16.mxu1 %v5788_v43 }
 0xe42   : > { %5214 = vmatpush3.bf16.msra.mxu1 %v5489_v20 }
 0xe43   : > { %5215 = vmatprep.subr.bf16.mxu1 %v5788_v43 }
 0xe46   : > { %5216 = vmatpush3.bf16.msra.mxu1 %v5490_v5 }
 0xe47   : > { %5217 = vmatprep.subr.bf16.mxu1 %v5788_v43 }
 0xe4a   : > { %5218 = vmatpush3.bf16.msra.mxu1 %v5491_v47  ;;  %v5495_v47 = vld [vmem:[%s6014_s4 + $0x4] ss:$16 sps:$4 sm:$0xff]  }
 0xe4b   : > { %5219 = vmatprep.subr.bf16.mxu1 %v5788_v43  ;;  %3048 = vmatprep.subr.bf16.mxu0 %v5495_v47 }
 0xe4e   : > { %5220 = vmatpush3.bf16.msra.mxu1 %v5492_v48  ;;  %v5498_v48 = vld [vmem:[%s6014_s4 + $0xc] ss:$16 sps:$4 sm:$0xff]  }
 0xe4f   : > { %3111 = vmatprep.subr.bf16.mxu1 %v5498_v48 }
 0xe51   : > { %5222 = vmatmul.mubr.bf16.vlgmr.msra.gmra.mrb[24].mxu1 %v2596_v6 }
 0xe52   : > { %5225 = vmatprep.mubr.msk.bf16.mxu1 %vm5790_vm3, %v5788_v43 }
 0xf04   : > { %v5203_v49 = vpop.f32.mrb[20].mxu1 }
 0xf05   : > { %v2567_v52 = vpop.f32.mrb[21].mxu1 }
 0xf06   : > { %v5443_v50 = vpack.i.bf16 %v2567_v52, %v6471_v32  ;;  %v5204_v54 = vpop.f32.mrb[22].mxu1  ;;  %v5496_v52 = vld [vmem:[%s6014_s4 + $0x8] ss:$16 sps:$4 sm:$0xff]  }
 0xf07   : > { %v2570_v55 = vpop.f32.mrb[23].mxu1  ;;  %3112 = vmatpush1.bf16.msra.mxu1 %v5496_v52  ;;  %v5504_v54 = vld [vmem:[%s6014_s4 + $0x2c] ss:$16 sps:$4 sm:$0xff]  }
 0xf08   : > { %v5448_v60 = vpack.i.bf16 %v5203_v49, %v2570_v55  ;;  %5444 = vrot.lane.b32.xlu1 %v5443_v50, %s5791_s18  ;;  %v5493_v49 = vld [vmem:[%s6014_s4] ss:$16 sps:$4 sm:$0xff]   ;;  %v5501_v50 = vld [vmem:[%s6014_s4 + $0x24] ss:$16 sps:$4 sm:$0xff]   ;;  %3113 = vmatprep.subr.bf16.mxu1 %v5504_v54 }
 0xf09   : > { %3049 = vmatpush1.bf16.msra.mxu0 %v5493_v49  ;;  %v5499_v55 = vld [vmem:[%s6014_s4 + $0x20] ss:$16 sps:$4 sm:$0xff]  }
 0xf0a   : > { %5449 = vrot.lane.b32.xlu0 %v5448_v60, %s5791_s18  ;;  %v5502_v60 = vld [vmem:[%s6014_s4 + $0x28] ss:$16 sps:$4 sm:$0xff]   ;;  %3050 = vmatprep.subr.bf16.mxu0 %v5501_v50  ;;  %v6676_v50 = vld [vmem:[%s976_s21] ss:$0 sm:$0xff] }
 0xf0b   : > { %3114 = vmatpush1.bf16.msra.mxu1 %v5502_v60 }
 0xf0d   : > { %3051 = vmatpush1.bf16.msra.mxu0 %v5499_v55 }
 0xf24   : > { %v2697_v57 = vpop.f32.mrb[24].mxu1 }
 0xf25   : > { %v5223_v61 = vpop.f32.mrb[25].mxu1  ;;  %v2720_v0 = vadd.f32 %v5693_v62, %v2697_v57  ;;  %v5507_v57 = vld [vmem:[%s6014_s4 + $0x44] ss:$16 sps:$4 sm:$0xff]   ;;  %v5505_v62 = vld [vmem:[%s6014_s4 + $0x40] ss:$16 sps:$4 sm:$0xff]  }
 0xf26   : > { %v2700_v51 = vpop.f32.mrb[26].mxu1  ;;  %v5510_v61 = vld [vmem:[%s6014_s4 + $0x4c] ss:$16 sps:$4 sm:$0xff]   ;;  %3052 = vmatprep.subr.bf16.mxu0 %v5507_v57 }
 0xf27   : > { %v2721_v53 = vadd.f32 %v5694_v1, %v2700_v51  ;;  %v5224_v32 = vpop.f32.mrb[27].mxu1  ;;  %v6582_v3 = vadd.f32 %v4820_v58, %v2720_v0  ;;  %v5508_v0 = vld [vmem:[%s6014_s4 + $0x48] ss:$16 sps:$4 sm:$0xff]   ;;  %3115 = vmatprep.subr.bf16.mxu1 %v5510_v61  ;;  %3053 = vmatpush1.bf16.msra.mxu0 %v5505_v62  ;;  %v5513_v51 = vld [vmem:[%s6014_s4 + $0x64] ss:$16 sps:$4 sm:$0xff]  }
 0xf28   : > { %3116 = vmatpush1.bf16.msra.mxu1 %v5508_v0  ;;  %v5511_v1 = vld [vmem:[%s6014_s4 + $0x60] ss:$16 sps:$4 sm:$0xff]   ;;  %3054 = vmatprep.subr.bf16.mxu0 %v5513_v51  ;;  %v5519_v32 = vld [vmem:[%s6014_s4 + $0x84] ss:$16 sps:$4 sm:$0xff]  }
 0xf29   : > { %v6580_v2 = vadd.f32 %v4820_v58, %v2721_v53  ;;  %v5514_v53 = vld [vmem:[%s6014_s4 + $0x68] ss:$16 sps:$4 sm:$0xff]   ;;  %v6686_v61 = vld [vmem:[%s979_s16] ss:$0 sm:$0xff] }
 0xf2b   : > { %2743 = vadd.xlane.f32.xlu0 %v6580_v2  ;;  %3055 = vmatpush1.bf16.msra.mxu0 %v5511_v1  ;;  %v5543_v1 = vld [vmem:[%s6024_s15] sm:$0xff]  }
 0xf2c   : > { %2741 = vadd.xlane.f32.xlu1 %v6582_v3  ;;  %3056 = vmatprep.subr.bf16.mxu0 %v5519_v32  ;;  %v5545_v32 = vld [vmem:[%s6024_s15 + $0x48] sm:$0xff]  }
 0xf7a   : > { %v5445_v39 = vpop.permute.xlu1 %5444 }
 0xf7b   : > { %v5447_v4 = vunpack.i.h.bf16 %v5445_v39  ;;  %v5446_v10 = vunpack.i.l.bf16 %v5445_v39  ;;  %v5522_v39 = vld [vmem:[%s6014_s4 + $0x8c] ss:$16 sps:$4 sm:$0xff]  }
 0xf7c   : > { %v5450_v37 = vpop.permute.xlu0 %5449 }
 0xf7d   : > { %v5452_v56 = vunpack.i.h.bf16 %v5450_v37  ;;  %v5451_v12 = vunpack.i.l.bf16 %v5450_v37  ;;  %v2233_v59 = vsel %vm1873_vm4, %v6426_v28, %v5446_v10  ;;  %v2593_v38 = vsel %vm1873_vm4, %v6514_v41, %v5447_v4  ;;  %v5695_v28 = vld [vmem:[#allocation2 + $0x10] sm:$0xff]  ;;  %v5520_v10 = vld [vmem:[%s6014_s4 + $0x88] ss:$16 sps:$4 sm:$0xff]  }
 0xf7e   : > { %v2597_v13 = vpack.c.bf16 %v2593_v38, %v2233_v59  ;;  %v5517_v4 = vld [vmem:[%s6014_s4 + $0x80] ss:$16 sps:$4 sm:$0xff]   ;;  %v5525_v37 = vld [vmem:[%s6014_s4 + $0xa4] ss:$16 sps:$4 sm:$0xff]   ;;  %v5526_v59 = vld [vmem:[%s6014_s4 + $0xa8] ss:$16 sps:$4 sm:$0xff]  }
 0xf7f   : > { %v2594_v18 = vsel %vm1873_vm4, %v6516_v44, %v5451_v12  ;;  %v2595_v22 = vsel %vm1873_vm4, %v6512_v40, %v5452_v56  ;;  %3057 = vmatpush1.bf16.msra.mxu0 %v5517_v4  ;;  %v5528_v56 = vld [vmem:[%s6014_s4 + $0xac] ss:$16 sps:$4 sm:$0xff]   ;;  %v5523_v12 = vld [vmem:[%s6014_s4 + $0xa0] ss:$16 sps:$4 sm:$0xff]   ;;  %v5531_v38 = vld [vmem:[%s6014_s4 + $0xc4] ss:$16 sps:$4 sm:$0xff]  }
 0xf80   : > { %5226 = vmatmul.mubr.bf16.gmra.mrb[28].mxu1 %v2597_v13  ;;  %v2598_v23 = vpack.c.bf16 %v2595_v22, %v2594_v18  ;;  %3058 = vmatprep.subr.bf16.mxu0 %v5525_v37  ;;  %v5534_v13 = vld [vmem:[%s6014_s4 + $0xcc] ss:$16 sps:$4 sm:$0xff]   ;;  %v5529_v18 = vld [vmem:[%s6014_s4 + $0xc0] ss:$16 sps:$4 sm:$0xff]   ;;  %v5532_v22 = vld [vmem:[%s6014_s4 + $0xc8] ss:$16 sps:$4 sm:$0xff]  }
 0xf81   : > { %5229 = vmatprep.mubr.msk.bf16.mxu1 %vm5790_vm3, %v5788_v43  ;;  %v5547_v4 = vld [vmem:[%s6024_s15 + $0x8] sm:$0xff]   ;;  %v5549_v37 = vld [vmem:[%s6024_s15 + $0x50] sm:$0xff]  }
 0xf83   : > { %3059 = vmatpush1.bf16.msra.mxu0 %v5523_v12  ;;  %v5551_v12 = vld [vmem:[%s6024_s15 + $0x10] sm:$0xff]  }
 0xf84   : > { %3060 = vmatprep.subr.bf16.mxu0 %v5531_v38  ;;  %v5553_v38 = vld [vmem:[%s6024_s15 + $0x58] sm:$0xff]  }
 0xf87   : > { %3061 = vmatpush1.bf16.msra.mxu0 %v5529_v18  ;;  %v5555_v18 = vld [vmem:[%s6024_s15 + $0x18] sm:$0xff]  }
 0xf88   : > { %5230 = vmatmul.mubr.bf16.gmra.mrb[32].mxu1 %v2598_v23  ;;  %v5537_v23 = vld [vmem:[%s6014_s4 + $0xe4] ss:$16 sps:$4 sm:$0xff]  }
 0xf89   : > { %3143 = vmatprep.mubr.bf16.mxu1 %v5789_v63  ;;  %3062 = vmatprep.subr.bf16.mxu0 %v5537_v23  ;;  %v5557_v23 = vld [vmem:[%s6024_s15 + $0x60] sm:$0xff]  }
 0xfb8   : > { %v2744_v40 = vpop.xlane.xlu0 %2743 }
 0xfb9   : > { %v2742_v36 = vpop.xlane.xlu1 %2741  ;;  %v2754_v7 = vmul.f32 0.0078125, %v2744_v40 }
 0xfba   : > { %v2753_v8 = vmul.f32 0.0078125, %v2742_v36 }
 0xfbb   : > { %v6609_v21 = vsub.f32 %v6580_v2, %v2754_v7 }
 0xfbc   : > { %v6604_v9 = vsub.f32 %v6582_v3, %v2753_v8 }
 0xfbd   : > { %v2766_v5 = vmul.f32 %v6609_v21, %v6609_v21 }
 0xfbe   : > { %v2765_v20 = vmul.f32 %v6604_v9, %v6604_v9 }
0x1053   : > { %v2705_v25 = vpop.f32.mrb[28].mxu1 }
0x1054   : > { %v2722_v27 = vadd.f32 %v5695_v28, %v2705_v25  ;;  %v5227_v26 = vpop.f32.mrb[29].mxu1  ;;  %v5540_v25 = vld [vmem:[%s6014_s4 + $0xec] ss:$16 sps:$4 sm:$0xff]   ;;  %v5535_v28 = vld [vmem:[%s6014_s4 + $0xe0] ss:$16 sps:$4 sm:$0xff]  }
0x1055   : > { %v2708_v41 = vpop.f32.mrb[30].mxu1  ;;  %3063 = vmatpush1.bf16.msra.mxu0 %v5535_v28  ;;  %v5559_v28 = vld [vmem:[%s6024_s15 + $0x20] sm:$0xff]  }
0x1056   : > { %v6597_v30 = vadd.f32 %v4820_v58, %v2722_v27  ;;  %v2723_v44 = vadd.f32 %v5696_v33, %v2708_v41  ;;  %v5228_v35 = vpop.f32.mrb[31].mxu1  ;;  %v5538_v27 = vld [vmem:[%s6014_s4 + $0xe8] ss:$16 sps:$4 sm:$0xff]  }
0x1058   : > { %2745 = vadd.xlane.f32.xlu0 %v6597_v30  ;;  %v6600_v11 = vadd.f32 %v4820_v58, %v2723_v44 }
0x105b   : > { %v2713_v43 = vpop.f32.mrb[32].mxu1 }
0x105c   : > { %v2724_v6 = vadd.f32 %v5697_v31, %v2713_v43  ;;  %2747 = vadd.xlane.f32.xlu0 %v6600_v11  ;;  %v5231_v15 = vpop.f32.mrb[33].mxu1 }
0x105d   : > { %v2716_v24 = vpop.f32.mrb[34].mxu1 }
0x105e   : > { %v6606_v34 = vadd.f32 %v4820_v58, %v2724_v6  ;;  %v2725_v45 = vadd.f32 %v5698_v42, %v2716_v24  ;;  %v5232_v29 = vpop.f32.mrb[35].mxu1 }
0x1060   : > { %v6611_v46 = vadd.f32 %v4820_v58, %v2725_v45  ;;  %2749 = vadd.xlane.f32.xlu1 %v6606_v34  ;;  %v5516_v58 = vld [vmem:[%s6014_s4 + $0x6c] ss:$16 sps:$4 sm:$0xff]  }
0x1061   : > { %3117 = vmatprep.subr.bf16.mxu1 %v5516_v58  ;;  %v5542_v58 = vld [vmem:[%s6024_s15 + $0xc0] sm:$0xff]  }
0x1062   : > { %2751 = vadd.xlane.f32.xlu0 %v6611_v46  ;;  %3118 = vmatpush1.bf16.msra.mxu1 %v5514_v53  ;;  %v5544_v53 = vld [vmem:[%s6024_s15 + $0x80] sm:$0xff]  }
0x1063   : > { %3119 = vmatprep.subr.bf16.mxu1 %v5522_v39  ;;  %v5546_v39 = vld [vmem:[%s6024_s15 + $0xc8] sm:$0xff]  }
0x1064   : > { %2771 = vadd.xlane.f32.xlu1 %v2765_v20 }
0x1066   : > { %2773 = vadd.xlane.f32.xlu0 %v2766_v5  ;;  %3120 = vmatpush1.bf16.msra.mxu1 %v5520_v10  ;;  %v5548_v10 = vld [vmem:[%s6024_s15 + $0x88] sm:$0xff]  }
0x1067   : > { %3121 = vmatprep.subr.bf16.mxu1 %v5528_v56  ;;  %v5550_v56 = vld [vmem:[%s6024_s15 + $0xd0] sm:$0xff]  }
0x106a   : > { %3122 = vmatpush1.bf16.msra.mxu1 %v5526_v59  ;;  %v5552_v59 = vld [vmem:[%s6024_s15 + $0x90] sm:$0xff]  }
0x106b   : > { %3123 = vmatprep.subr.bf16.mxu1 %v5534_v13  ;;  %v5554_v13 = vld [vmem:[%s6024_s15 + $0xd8] sm:$0xff]  }
0x106e   : > { %3124 = vmatpush1.bf16.msra.mxu1 %v5532_v22  ;;  %v5556_v22 = vld [vmem:[%s6024_s15 + $0x98] sm:$0xff]  }
0x106f   : > { %3125 = vmatprep.subr.bf16.mxu1 %v5540_v25  ;;  %v5558_v25 = vld [vmem:[%s6024_s15 + $0xe0] sm:$0xff]  }
0x1072   : > { %3126 = vmatpush1.bf16.msra.mxu1 %v5538_v27  ;;  %v5560_v27 = vld [vmem:[%s6024_s15 + $0xa0] sm:$0xff]  }
0x1073   : > { %5025 = vmatprep.subr.bf16.mxu1 %v5542_v58 }
0x10e5   : > { %v2746_v26 = vpop.xlane.xlu0 %2745 }
0x10e6   : > { %v2755_v41 = vmul.f32 0.0078125, %v2746_v26  ;;  %v5561_v26 = vld [vmem:[%s6024_s15 + $0x68] sm:$0xff]  }
0x10e8   : > { %v6652_v33 = vsub.f32 %v6597_v30, %v2755_v41  ;;  %v5562_v41 = vld [vmem:[%s6024_s15 + $0xe8] sm:$0xff]  }
0x10e9   : > { %v2748_v44 = vpop.xlane.xlu0 %2747 }
0x10ea   : > { %v2756_v35 = vmul.f32 0.0078125, %v2748_v44  ;;  %v2767_v36 = vmul.f32 %v6652_v33, %v6652_v33  ;;  %v5563_v44 = vld [vmem:[%s6024_s15 + $0x28] sm:$0xff]  }
0x10ec   : > { %v6657_v40 = vsub.f32 %v6600_v11, %v2756_v35  ;;  %2775 = vadd.xlane.f32.xlu1 %v2767_v36  ;;  %v5564_v35 = vld [vmem:[%s6024_s15 + $0xa8] sm:$0xff]   ;;  %v5565_v36 = vld [vmem:[%s6024_s15 + $0x70] sm:$0xff]  }
0x10ed   : > { %v2750_v8 = vpop.xlane.xlu1 %2749 }
0x10ee   : > { %v2757_v43 = vmul.f32 0.0078125, %v2750_v8  ;;  %v2768_v7 = vmul.f32 %v6657_v40, %v6657_v40  ;;  %v5566_v8 = vld [vmem:[%s6024_s15 + $0xf0] sm:$0xff]  }
0x10ef   : > { %v2752_v31 = vpop.xlane.xlu0 %2751 }
0x10f0   : > { %v6662_v6 = vsub.f32 %v6606_v34, %v2757_v43  ;;  %v2758_v15 = vmul.f32 0.0078125, %v2752_v31  ;;  %2777 = vadd.xlane.f32.xlu0 %v2768_v7  ;;  %v5567_v43 = vld [vmem:[%s6024_s15 + $0x30] sm:$0xff]  }
0x10f1   : > { %v2772_v24 = vpop.xlane.xlu1 %2771  ;;  %v5568_v7 = vld [vmem:[%s6024_s15 + $0xb0] sm:$0xff]  }
0x10f2   : > { %v6665_v42 = vsub.f32 %v6611_v46, %v2758_v15  ;;  %v2783_v45 = vmul.f32 0.0078125, %v2772_v24  ;;  %v2769_v29 = vmul.f32 %v6662_v6, %v6662_v6  ;;  %v5569_v15 = vld [vmem:[%s6024_s15 + $0x78] sm:$0xff]  }
0x10f3   : > { %v2774_v20 = vpop.xlane.xlu0 %2773  ;;  %v5570_v24 = vld [vmem:[%s6024_s15 + $0xf8] sm:$0xff]  }
0x10f4   : > { %v2789_v5 = vadd.f32 1e-05, %v2783_v45  ;;  %v2784_v47 = vmul.f32 0.0078125, %v2774_v20  ;;  %2779 = vadd.xlane.f32.xlu1 %v2769_v29  ;;  %v2770_v48 = vmul.f32 %v6665_v42, %v6665_v42  ;;  %v5571_v20 = vld [vmem:[%s6024_s15 + $0x38] sm:$0xff]  }
0x10f6   : > { %5633 = vrsqrt.f32 %v2789_v5  ;;  %v2790_v49 = vadd.f32 1e-05, %v2784_v47  ;;  %2781 = vadd.xlane.f32.xlu0 %v2770_v48  ;;  %v5572_v5 = vld [vmem:[%s6024_s15 + $0xb8] sm:$0xff]  }
0x10f8   : > { %5635 = vrsqrt.f32 %v2790_v49 }
0x1100   : > { %v5634_v52 = vpop.eup %5633 }
0x1101   : > { %v2801_v54 = vmul.f32 %v5634_v52, %v6604_v9 }
0x1102   : > { %v5636_v55 = vpop.eup %5635 }
0x1103   : > { %v2802_v60 = vmul.f32 %v5636_v55, %v6609_v21  ;;  %v2813_v57 = vmul.f32 %v6676_v50, %v2801_v54  ;;  %v5541_v21 = vld [vmem:[%s6024_s15 + $0x40] sm:$0xff]  }
0x1104   : > { %4991 = vmatprep.subr.bf16.mxu0 %v5541_v21 }
0x1105   : > { %v2814_v62 = vmul.f32 %v6676_v50, %v2802_v60  ;;  %v2825_v0 = vadd.f32 %v6686_v61, %v2813_v57 }
0x1107   : > { %v2826_v9 = vadd.f32 %v6686_v61, %v2814_v62 }
0x1109   : > { %v2831_v51 = vpack.c.bf16 %v2826_v9, %v2825_v0 }
0x110b   : > { %3081 = vmatmul.mubr.bf16.vlgmr.msra.gmra.mrb[32].mxu0 %v2831_v51  ;;  %3144 = vmatmul.mubr.bf16.vlgmr.msra.gmra.mrb[36].mxu1 %v2831_v51 }
0x110c   : > { %3090 = vmatprep.mubr.bf16.mxu0 %v5789_v63  ;;  %3153 = vmatprep.mubr.bf16.mxu1 %v5789_v63 }
0x110d   : > { %4992 = vmatpush3.bf16.msra.mxu0 %v5543_v1  ;;  %5026 = vmatpush3.bf16.msra.mxu1 %v5544_v53 }
0x110e   : > { %4993 = vmatprep.subr.bf16.mxu0 %v5545_v32  ;;  %5027 = vmatprep.subr.bf16.mxu1 %v5546_v39 }
0x1111   : > { %4994 = vmatpush3.bf16.msra.mxu0 %v5547_v4  ;;  %5028 = vmatpush3.bf16.msra.mxu1 %v5548_v10 }
0x1112   : > { %4995 = vmatprep.subr.bf16.mxu0 %v5549_v37  ;;  %5029 = vmatprep.subr.bf16.mxu1 %v5550_v56 }
0x1115   : > { %4996 = vmatpush3.bf16.msra.mxu0 %v5551_v12  ;;  %5030 = vmatpush3.bf16.msra.mxu1 %v5552_v59 }
0x1116   : > { %4997 = vmatprep.subr.bf16.mxu0 %v5553_v38  ;;  %5031 = vmatprep.subr.bf16.mxu1 %v5554_v13 }
0x1119   : > { %4998 = vmatpush3.bf16.msra.mxu0 %v5555_v18  ;;  %5032 = vmatpush3.bf16.msra.mxu1 %v5556_v22 }
0x111a   : > { %4999 = vmatprep.subr.bf16.mxu0 %v5557_v23  ;;  %5033 = vmatprep.subr.bf16.mxu1 %v5558_v25 }
0x111d   : > { %5000 = vmatpush3.bf16.msra.mxu0 %v5559_v28  ;;  %5034 = vmatpush3.bf16.msra.mxu1 %v5560_v27 }
0x111e   : > { %5001 = vmatprep.subr.bf16.mxu0 %v5561_v26  ;;  %5035 = vmatprep.subr.bf16.mxu1 %v5562_v41 }
0x1121   : > { %5002 = vmatpush3.bf16.msra.mxu0 %v5563_v44  ;;  %5036 = vmatpush3.bf16.msra.mxu1 %v5564_v35 }
0x1122   : > { %5003 = vmatprep.subr.bf16.mxu0 %v5565_v36  ;;  %5037 = vmatprep.subr.bf16.mxu1 %v5566_v8 }
0x1125   : > { %5004 = vmatpush3.bf16.msra.mxu0 %v5567_v43  ;;  %5038 = vmatpush3.bf16.msra.mxu1 %v5568_v7 }
0x1126   : > { %5005 = vmatprep.subr.bf16.mxu0 %v5569_v15  ;;  %5039 = vmatprep.subr.bf16.mxu1 %v5570_v24 }
0x1129   : > { %5006 = vmatpush3.bf16.msra.mxu0 %v5571_v20  ;;  %5040 = vmatpush3.bf16.msra.mxu1 %v5572_v5 }
0x1179   : > { %v2776_v31 = vpop.xlane.xlu1 %2775 }
0x117a   : > { %v2785_v45 = vmul.f32 0.0078125, %v2776_v31 }
0x117c   : > { %v2791_v29 = vadd.f32 1e-05, %v2785_v45 }
0x117d   : > { %v2778_v47 = vpop.xlane.xlu0 %2777 }
0x117e   : > { %5637 = vrsqrt.f32 %v2791_v29  ;;  %v2786_v48 = vmul.f32 0.0078125, %v2778_v47 }
0x1180   : > { %v2792_v49 = vadd.f32 1e-05, %v2786_v48 }
0x1181   : > { %v2780_v52 = vpop.xlane.xlu1 %2779 }
0x1182   : > { %5639 = vrsqrt.f32 %v2792_v49  ;;  %v2787_v54 = vmul.f32 0.0078125, %v2780_v52 }
0x1183   : > { %v2782_v55 = vpop.xlane.xlu0 %2781 }
0x1184   : > { %v2793_v60 = vadd.f32 1e-05, %v2787_v54  ;;  %v2788_v57 = vmul.f32 0.0078125, %v2782_v55 }
0x1186   : > { %5641 = vrsqrt.f32 %v2793_v60  ;;  %v2794_v62 = vadd.f32 1e-05, %v2788_v57 }
0x1188   : > { %v5638_v0 = vpop.eup %5637  ;;  %5643 = vrsqrt.f32 %v2794_v62 }
0x1189   : > { %v2803_v9 = vmul.f32 %v5638_v0, %v6652_v33 }
0x118b   : > { %v2815_v58 = vmul.f32 %v6676_v50, %v2803_v9 }
0x118c   : > { %v5640_v51 = vpop.eup %5639 }
0x118d   : > { %v2804_v21 = vmul.f32 %v5640_v51, %v6657_v40  ;;  %v2827_v32 = vadd.f32 %v6686_v61, %v2815_v58 }
0x118f   : > { %v2816_v1 = vmul.f32 %v6676_v50, %v2804_v21 }
0x1190   : > { %v5642_v53 = vpop.eup %5641 }
0x1191   : > { %v2828_v39 = vadd.f32 %v6686_v61, %v2816_v1  ;;  %v2805_v4 = vmul.f32 %v5642_v53, %v6662_v6  ;;  %v2866_v6 = vld [vmem:[%s6019_s1] sm:$0xf] }
0x1192   : > { %v5644_v10 = vpop.eup %5643  ;;  %v6743_v13 = vrot.slane %v2866_v6, %v1608_v16 }
0x1193   : > { %v2832_v37 = vpack.c.bf16 %v2828_v39, %v2827_v32  ;;  %v2806_v56 = vmul.f32 %v5644_v10, %v6665_v42  ;;  %v2817_v33 = vmul.f32 %v6676_v50, %v2805_v4  ;;  %v2882_v42 = vsub.s32 3, %v6301_v14 }
0x1195   : > { %3091 = vmatmul.mubr.bf16.gmra.mrb[36].mxu0 %v2832_v37  ;;  %3154 = vmatmul.mubr.bf16.gmra.mrb[40].mxu1 %v2832_v37  ;;  %v2818_v40 = vmul.f32 %v6676_v50, %v2806_v56  ;;  %v2829_v59 = vadd.f32 %v6686_v61, %v2817_v33  ;;  %v6747_v50 = vrot.slane %v2866_v6, %v1616_v17 }
0x1196   : > { %3100 = vmatprep.mubr.bf16.mxu0 %v5789_v63  ;;  %3163 = vmatprep.mubr.bf16.mxu1 %v5789_v63  ;;  %v6751_v63 = vrot.slane %v2866_v6, %v1612_v19  ;;  %v6753_v18 = vrot.slane %v2866_v6, %v2882_v42 }
0x1197   : > { %v2830_v12 = vadd.f32 %v6686_v61, %v2818_v40 }
0x1199   : > { %v2833_v38 = vpack.c.bf16 %v2830_v12, %v2829_v59 }
0x119d   : > { %3101 = vmatmul.mubr.bf16.gmra.mrb[40].mxu0 %v2833_v38  ;;  %3164 = vmatmul.mubr.bf16.gmra.mrb[44].mxu1 %v2833_v38 }
0x11de   : > { %v3082_v61 = vpop.f32.mrb[32].mxu0  ;;  %v3145_v22 = vpop.f32.mrb[36].mxu1 }
0x11df   : > { %v6756_v23 = vadd.f32 %v3082_v61, %v6743_v13  ;;  %v6759_v25 = vadd.f32 %v3145_v22, %v6747_v50  ;;  %v3084_v16 = vpop.f32.mrb[33].mxu0  ;;  %v3147_v28 = vpop.f32.mrb[37].mxu1 }
0x11e0   : > { %v6762_v27 = vadd.f32 %v3084_v16, %v6751_v63  ;;  %v6765_v17 = vadd.f32 %v3147_v28, %v6753_v18  ;;  %v3086_v14 = vpop.f32.mrb[34].mxu0  ;;  %v3149_v19 = vpop.f32.mrb[38].mxu1 }
0x11e1   : > { %v3198_v26 = vmul.f32 0.044715, %v6756_v23  ;;  %v3200_v41 = vmul.f32 0.044715, %v6759_v25  ;;  %v3087_v36 = vadd.f32 %v3086_v14, %v6743_v13  ;;  %v3150_v8 = vadd.f32 %v3149_v19, %v6747_v50  ;;  %v3088_v43 = vpop.f32.mrb[35].mxu0  ;;  %v3151_v7 = vpop.f32.mrb[39].mxu1 }
0x11e2   : > { %v3199_v44 = vmul.f32 0.044715, %v6762_v27  ;;  %v3201_v35 = vmul.f32 0.044715, %v6765_v17  ;;  %v3089_v24 = vadd.f32 %v3088_v43, %v6751_v63  ;;  %v6777_v45 = vadd.f32 %v3151_v7, %v6753_v18 }
0x11e3   : > { %v3222_v31 = vmul.f32 %v3198_v26, %v6756_v23  ;;  %v3224_v15 = vmul.f32 %v3200_v41, %v6759_v25  ;;  %v3202_v5 = vmul.f32 0.044715, %v3087_v36  ;;  %v3204_v49 = vmul.f32 0.044715, %v3150_v8 }
0x11e4   : > { %v3223_v29 = vmul.f32 %v3199_v44, %v6762_v27  ;;  %v3225_v20 = vmul.f32 %v3201_v35, %v6765_v17  ;;  %v3203_v55 = vmul.f32 0.044715, %v3089_v24  ;;  %v3205_v0 = vmul.f32 0.044715, %v6777_v45 }
0x11e5   : > { %v3246_v47 = vmul.f32 %v3222_v31, %v6756_v23  ;;  %v3248_v48 = vmul.f32 %v3224_v15, %v6759_v25  ;;  %v3226_v54 = vmul.f32 %v3202_v5, %v3087_v36  ;;  %v3228_v62 = vmul.f32 %v3204_v49, %v3150_v8 }
0x11e6   : > { %v3247_v52 = vmul.f32 %v3223_v29, %v6762_v27  ;;  %v3249_v9 = vmul.f32 %v3225_v20, %v6765_v17  ;;  %v3227_v21 = vmul.f32 %v3203_v55, %v3089_v24  ;;  %v3229_v32 = vmul.f32 %v3205_v0, %v6777_v45 }
0x11e7   : > { %v3270_v60 = vadd.f32 %v3246_v47, %v6756_v23  ;;  %v3272_v57 = vadd.f32 %v3248_v48, %v6759_v25  ;;  %v3250_v51 = vmul.f32 %v3226_v54, %v3087_v36  ;;  %v3252_v53 = vmul.f32 %v3228_v62, %v3150_v8 }
0x11e8   : > { %v3251_v4 = vmul.f32 %v3227_v21, %v3089_v24  ;;  %v3271_v10 = vadd.f32 %v3247_v52, %v6762_v27  ;;  %v3253_v56 = vmul.f32 %v3229_v32, %v6777_v45  ;;  %v3273_v38 = vadd.f32 %v3249_v9, %v6765_v17 }
0x11e9   : > { %v3294_v58 = vmul.f32 0.7978846, %v3270_v60  ;;  %v3296_v1 = vmul.f32 0.7978846, %v3272_v57  ;;  %v3274_v39 = vadd.f32 %v3250_v51, %v3087_v36  ;;  %v3276_v37 = vadd.f32 %v3252_v53, %v3150_v8 }
0x11ea   : > { %v3275_v40 = vadd.f32 %v3251_v4, %v3089_v24  ;;  %v3295_v12 = vmul.f32 0.7978846, %v3271_v10  ;;  %v3277_v6 = vadd.f32 %v3253_v56, %v6777_v45  ;;  %v3297_v61 = vmul.f32 0.7978846, %v3273_v38 }
0x11eb   : > { %5645 = vtanh.f32 %v3294_v58  ;;  %v3298_v33 = vmul.f32 0.7978846, %v3274_v39  ;;  %v3300_v59 = vmul.f32 0.7978846, %v3276_v37  ;;  %v3174_v44 = vmul.f32 0.5, %v6756_v23 }
0x11ec   : > { %5647 = vtanh.f32 %v3296_v1  ;;  %v3299_v42 = vmul.f32 0.7978846, %v3275_v40  ;;  %v3301_v22 = vmul.f32 0.7978846, %v3277_v6  ;;  %v3178_v35 = vmul.f32 0.5, %v3087_v36 }
0x11ed   : > { %5649 = vtanh.f32 %v3298_v33  ;;  %v3176_v31 = vmul.f32 0.5, %v6759_v25  ;;  %v3180_v15 = vmul.f32 0.5, %v3150_v8  ;;  %v3175_v5 = vmul.f32 0.5, %v6762_v27 }
0x11ee   : > { %5651 = vtanh.f32 %v3300_v59  ;;  %v3179_v54 = vmul.f32 0.5, %v3089_v24  ;;  %v3177_v23 = vmul.f32 0.5, %v6765_v17  ;;  %v3181_v36 = vmul.f32 0.5, %v6777_v45 }
0x11ef   : > { %5653 = vtanh.f32 %v3295_v12 }
0x11f0   : > { %5655 = vtanh.f32 %v3299_v42 }
0x11f1   : > { %5657 = vtanh.f32 %v3297_v61 }
0x11f2   : > { %5659 = vtanh.f32 %v3301_v22 }
0x11f5   : > { %v5646_v16 = vpop.eup %5645 }
0x11f6   : > { %v5648_v28 = vpop.eup %5647  ;;  %v3342_v14 = vadd.f32 1.0, %v5646_v16 }
0x11f7   : > { %v5650_v19 = vpop.eup %5649  ;;  %v3344_v26 = vadd.f32 1.0, %v5648_v28 }
0x11f8   : > { %v5652_v41 = vpop.eup %5651  ;;  %v3346_v43 = vadd.f32 1.0, %v5650_v19  ;;  %v3366_v48 = vmul.f32 %v3342_v14, %v3174_v44 }
0x11f9   : > { %v5654_v7 = vpop.eup %5653  ;;  %v3348_v29 = vadd.f32 1.0, %v5652_v41  ;;  %v3368_v60 = vmul.f32 %v3344_v26, %v3176_v31 }
0x11fa   : > { %v5656_v20 = vpop.eup %5655  ;;  %v3343_v47 = vadd.f32 1.0, %v5654_v7  ;;  %v3370_v49 = vmul.f32 %v3346_v43, %v3178_v35 }
0x11fb   : > { %v5658_v52 = vpop.eup %5657  ;;  %v3347_v55 = vadd.f32 1.0, %v5656_v20  ;;  %v3372_v57 = vmul.f32 %v3348_v29, %v3180_v15 }
0x11fc   : > { %v5660_v62 = vpop.eup %5659  ;;  %v3345_v0 = vadd.f32 1.0, %v5658_v52  ;;  %v3390_v25 = vpack.c.bf16 %v3370_v49, %v3366_v48  ;;  %v3367_v8 = vmul.f32 %v3343_v47, %v3175_v5 }
0x11fd   : > { %v3371_v9 = vmul.f32 %v3347_v55, %v3179_v54  ;;  %v3349_v51 = vadd.f32 1.0, %v5660_v62  ;;  %v3392_v21 = vpack.c.bf16 %v3372_v57, %v3368_v60 }
0x11fe   : > { %v3369_v58 = vmul.f32 %v3345_v0, %v3177_v23 }
0x11ff   : > { %v3391_v27 = vpack.c.bf16 %v3371_v9, %v3367_v8  ;;  %v3373_v1 = vmul.f32 %v3349_v51, %v3181_v36 }
0x1201   : > { %3697 = vmatprep.mubr.bf16.mxu0 %v3391_v27  ;;  %v3393_v53 = vpack.c.bf16 %v3373_v1, %v3369_v58 }
0x1202   : > { %3698 = vmatmul.mubr.bf16.vlgmr.msra.gmra.mrb[44].mxu0 %v3390_v25 }
0x1203   : > { %3754 = vmatprep.mubr.bf16.mxu1 %v3393_v53 }
0x1204   : > { %3755 = vmatmul.mubr.bf16.vlgmr.msra.gmra.mrb[48].mxu1 %v3392_v21 }
0x1268   : > { %v3092_v24 = vpop.f32.mrb[36].mxu0  ;;  %v3155_v32 = vpop.f32.mrb[40].mxu1 }
0x1269   : > { %v6799_v17 = vadd.f32 %v3092_v24, %v6743_v13  ;;  %v3094_v45 = vpop.f32.mrb[37].mxu0  ;;  %v3157_v39 = vpop.f32.mrb[41].mxu1  ;;  %v6802_v4 = vadd.f32 %v3155_v32, %v6747_v50 }
0x126a   : > { %v6805_v10 = vadd.f32 %v3094_v45, %v6751_v63  ;;  %v3096_v37 = vpop.f32.mrb[38].mxu0  ;;  %v3159_v56 = vpop.f32.mrb[42].mxu1  ;;  %v6808_v33 = vadd.f32 %v3157_v39, %v6753_v18 }
0x126b   : > { %v3098_v40 = vpop.f32.mrb[39].mxu0  ;;  %v3161_v12 = vpop.f32.mrb[43].mxu1  ;;  %v3206_v59 = vmul.f32 0.044715, %v6799_v17  ;;  %v6812_v38 = vadd.f32 %v3096_v37, %v6743_v13  ;;  %v6822_v22 = vadd.f32 %v3159_v56, %v6747_v50  ;;  %v3208_v16 = vmul.f32 0.044715, %v6802_v4 }
0x126c   : > { %v6815_v6 = vadd.f32 %v3098_v40, %v6751_v63  ;;  %v6818_v42 = vadd.f32 %v3161_v12, %v6753_v18  ;;  %v3207_v61 = vmul.f32 0.044715, %v6805_v10  ;;  %v3209_v14 = vmul.f32 0.044715, %v6808_v33 }
0x126d   : > { %v3230_v26 = vmul.f32 %v3206_v59, %v6799_v17  ;;  %v3210_v41 = vmul.f32 0.044715, %v6812_v38  ;;  %v3212_v7 = vmul.f32 0.044715, %v6822_v22  ;;  %v3232_v5 = vmul.f32 %v3208_v16, %v6802_v4 }
0x126e   : > { %v3211_v28 = vmul.f32 0.044715, %v6815_v6  ;;  %v3213_v19 = vmul.f32 0.044715, %v6818_v42  ;;  %v3231_v43 = vmul.f32 %v3207_v61, %v6805_v10  ;;  %v3233_v55 = vmul.f32 %v3209_v14, %v6808_v33 }
0x126f   : > { %v3234_v0 = vmul.f32 %v3210_v41, %v6812_v38  ;;  %v3254_v45 = vmul.f32 %v3230_v26, %v6799_v17  ;;  %v3256_v39 = vmul.f32 %v3232_v5, %v6802_v4 }
0x1270   : > { %v3102_v44 = vpop.f32.mrb[40].mxu0  ;;  %v3165_v35 = vpop.f32.mrb[44].mxu1  ;;  %v3235_v47 = vmul.f32 %v3211_v28, %v6815_v6  ;;  %v3237_v60 = vmul.f32 %v3213_v19, %v6818_v42  ;;  %v3255_v51 = vmul.f32 %v3231_v43, %v6805_v10  ;;  %v3257_v53 = vmul.f32 %v3233_v55, %v6808_v33 }
0x1271   : > { %v6833_v31 = vadd.f32 %v3102_v44, %v6743_v13  ;;  %v6836_v15 = vadd.f32 %v3165_v35, %v6747_v50  ;;  %v3104_v29 = vpop.f32.mrb[41].mxu0  ;;  %v3167_v20 = vpop.f32.mrb[45].mxu1  ;;  %v3258_v40 = vmul.f32 %v3234_v0, %v6812_v38 }
0x1272   : > { %v6841_v48 = vadd.f32 %v3104_v29, %v6751_v63  ;;  %v6844_v49 = vadd.f32 %v3167_v20, %v6753_v18  ;;  %v3106_v52 = vpop.f32.mrb[42].mxu0  ;;  %v3169_v54 = vpop.f32.mrb[46].mxu1  ;;  %v3259_v27 = vmul.f32 %v3235_v47, %v6815_v6  ;;  %v3279_v14 = vadd.f32 %v3255_v51, %v6805_v10 }
0x1273   : > { %v6849_v57 = vadd.f32 %v3106_v52, %v6743_v13  ;;  %v6852_v62 = vadd.f32 %v3169_v54, %v6747_v50  ;;  %v3108_v23 = vpop.f32.mrb[43].mxu0  ;;  %v3171_v36 = vpop.f32.mrb[47].mxu1  ;;  %v3236_v13 = vmul.f32 %v3212_v7, %v6822_v22  ;;  %v3214_v21 = vmul.f32 0.044715, %v6833_v31 }
0x1274   : > { %v3215_v25 = vmul.f32 0.044715, %v6841_v48  ;;  %v6857_v8 = vadd.f32 %v3108_v23, %v6751_v63  ;;  %v6860_v9 = vadd.f32 %v3171_v36, %v6753_v18  ;;  %v3216_v50 = vmul.f32 0.044715, %v6836_v15 }
0x1275   : > { %v3217_v58 = vmul.f32 0.044715, %v6844_v49  ;;  %v3261_v18 = vmul.f32 %v3237_v60, %v6818_v42  ;;  %v3218_v24 = vmul.f32 0.044715, %v6849_v57  ;;  %v3220_v32 = vmul.f32 0.044715, %v6852_v62 }
0x1276   : > { %v3219_v1 = vmul.f32 0.044715, %v6857_v8  ;;  %v3221_v63 = vmul.f32 0.044715, %v6860_v9  ;;  %v3239_v37 = vmul.f32 %v3215_v25, %v6841_v48  ;;  %v3260_v12 = vmul.f32 %v3236_v13, %v6822_v22 }
0x1277   : > { %v3238_v59 = vmul.f32 %v3214_v21, %v6833_v31  ;;  %v3240_v61 = vmul.f32 %v3216_v50, %v6836_v15  ;;  %v3241_v16 = vmul.f32 %v3217_v58, %v6844_v49  ;;  %v3283_v19 = vadd.f32 %v3259_v27, %v6815_v6 }
0x1278   : > { %v3243_v56 = vmul.f32 %v3219_v1, %v6857_v8  ;;  %v3245_v28 = vmul.f32 %v3221_v63, %v6860_v9  ;;  %v3242_v26 = vmul.f32 %v3218_v24, %v6849_v57  ;;  %v3244_v41 = vmul.f32 %v3220_v32, %v6852_v62 }
0x1279   : > { %v3281_v44 = vadd.f32 %v3257_v53, %v6808_v33  ;;  %v3285_v35 = vadd.f32 %v3261_v18, %v6818_v42  ;;  %v3263_v43 = vmul.f32 %v3239_v37, %v6841_v48  ;;  %v3303_v29 = vmul.f32 0.7978846, %v3279_v14 }
0x127a   : > { %v3267_v7 = vmul.f32 %v3243_v56, %v6857_v8  ;;  %v3307_v20 = vmul.f32 0.7978846, %v3283_v19  ;;  %v3278_v52 = vadd.f32 %v3254_v45, %v6799_v17  ;;  %v3282_v54 = vadd.f32 %v3258_v40, %v6812_v38 }
0x127b   : > { %v3305_v5 = vmul.f32 0.7978846, %v3281_v44  ;;  %v3309_v47 = vmul.f32 0.7978846, %v3285_v35  ;;  %v3265_v55 = vmul.f32 %v3241_v16, %v6844_v49  ;;  %v3269_v60 = vmul.f32 %v3245_v28, %v6860_v9 }
0x127c   : > { %5661 = vtanh.f32 %v3303_v29  ;;  %v3280_v23 = vadd.f32 %v3256_v39, %v6802_v4  ;;  %v3302_v36 = vmul.f32 0.7978846, %v3278_v52  ;;  %v3306_v0 = vmul.f32 0.7978846, %v3282_v54 }
0x127d   : > { %5663 = vtanh.f32 %v3307_v20  ;;  %v3284_v25 = vadd.f32 %v3260_v12, %v6822_v22  ;;  %v3262_v51 = vmul.f32 %v3238_v59, %v6833_v31  ;;  %v3266_v13 = vmul.f32 %v3242_v26, %v6849_v57 }
0x127e   : > { %5665 = vtanh.f32 %v3305_v5  ;;  %v3304_v21 = vmul.f32 0.7978846, %v3280_v23  ;;  %v3287_v27 = vadd.f32 %v3263_v43, %v6841_v48  ;;  %v3291_v58 = vadd.f32 %v3267_v7, %v6857_v8 }
0x127f   : > { %5667 = vtanh.f32 %v3309_v47  ;;  %v3308_v50 = vmul.f32 0.7978846, %v3284_v25  ;;  %v3264_v1 = vmul.f32 %v3240_v61, %v6836_v15  ;;  %v3268_v63 = vmul.f32 %v3244_v41, %v6852_v62 }
0x1280   : > { %5669 = vtanh.f32 %v3302_v36  ;;  %v3289_v53 = vadd.f32 %v3265_v55, %v6844_v49  ;;  %v3311_v18 = vmul.f32 0.7978846, %v3287_v27  ;;  %v3315_v24 = vmul.f32 0.7978846, %v3291_v58 }
0x1281   : > { %5671 = vtanh.f32 %v3306_v0  ;;  %v3293_v32 = vadd.f32 %v3269_v60, %v6860_v9  ;;  %v3286_v37 = vadd.f32 %v3262_v51, %v6833_v31  ;;  %v3290_v56 = vadd.f32 %v3266_v13, %v6849_v57 }
0x1282   : > { %5673 = vtanh.f32 %v3304_v21  ;;  %v3313_v45 = vmul.f32 0.7978846, %v3289_v53  ;;  %v3288_v40 = vadd.f32 %v3264_v1, %v6836_v15  ;;  %v3292_v61 = vadd.f32 %v3268_v63, %v6852_v62 }
0x1283   : > { %5675 = vtanh.f32 %v3308_v50  ;;  %v3317_v39 = vmul.f32 0.7978846, %v3293_v32  ;;  %v3310_v12 = vmul.f32 0.7978846, %v3286_v37  ;;  %v3314_v59 = vmul.f32 0.7978846, %v3290_v56 }
0x1284   : > { %5677 = vtanh.f32 %v3311_v18  ;;  %v3312_v28 = vmul.f32 0.7978846, %v3288_v40  ;;  %v3316_v26 = vmul.f32 0.7978846, %v3292_v61  ;;  %v3183_v44 = vmul.f32 0.5, %v6805_v10 }
0x1285   : > { %5679 = vtanh.f32 %v3315_v24  ;;  %v3187_v35 = vmul.f32 0.5, %v6815_v6  ;;  %v3185_v29 = vmul.f32 0.5, %v6808_v33  ;;  %v3189_v20 = vmul.f32 0.5, %v6818_v42 }
0x1286   : > { %v5662_v16 = vpop.eup %5661  ;;  %5681 = vtanh.f32 %v3313_v45  ;;  %v3182_v23 = vmul.f32 0.5, %v6799_v17  ;;  %v3186_v10 = vmul.f32 0.5, %v6812_v38  ;;  %v3184_v13 = vmul.f32 0.5, %v6802_v4 }
0x1287   : > { %v5664_v14 = vpop.eup %5663  ;;  %v3351_v19 = vadd.f32 1.0, %v5662_v16  ;;  %5683 = vtanh.f32 %v3317_v39  ;;  %v3188_v21 = vmul.f32 0.5, %v6822_v22  ;;  %v3191_v53 = vmul.f32 0.5, %v6841_v48 }
0x1288   : > { %v5666_v41 = vpop.eup %5665  ;;  %v3355_v43 = vadd.f32 1.0, %v5664_v14  ;;  %5685 = vtanh.f32 %v3310_v12  ;;  %v3195_v18 = vmul.f32 0.5, %v6857_v8  ;;  %v3193_v56 = vmul.f32 0.5, %v6844_v49 }
0x1289   : > { %v5668_v7 = vpop.eup %5667  ;;  %v3353_v5 = vadd.f32 1.0, %v5666_v41  ;;  %5687 = vtanh.f32 %v3314_v59  ;;  %v3375_v52 = vmul.f32 %v3351_v19, %v3183_v44  ;;  %v3197_v40 = vmul.f32 0.5, %v6860_v9 }
0x128a   : > { %v5670_v47 = vpop.eup %5669  ;;  %v3379_v54 = vmul.f32 %v3355_v43, %v3187_v35  ;;  %v3357_v55 = vadd.f32 1.0, %v5668_v7  ;;  %5689 = vtanh.f32 %v3312_v28  ;;  %v3190_v14 = vmul.f32 0.5, %v6833_v31 }
0x128b   : > { %v5672_v60 = vpop.eup %5671  ;;  %v3350_v6 = vadd.f32 1.0, %v5670_v47  ;;  %5691 = vtanh.f32 %v3316_v26  ;;  %v3377_v25 = vmul.f32 %v3353_v5, %v3185_v29  ;;  %v3194_v19 = vmul.f32 0.5, %v6849_v57 }
0x128c   : > { %v5674_v36 = vpop.eup %5673  ;;  %v3395_v0 = vpack.c.bf16 %v3379_v54, %v3375_v52  ;;  %v3381_v33 = vmul.f32 %v3357_v55, %v3189_v20  ;;  %v3354_v51 = vadd.f32 1.0, %v5672_v60  ;;  %v3192_v7 = vmul.f32 0.5, %v6836_v15  ;;  %v4855_v15 = vld [vmem:[%s996_s9] ss:$0 sm:$0xff] }
0x128d   : > { %v5676_v42 = vpop.eup %5675  ;;  %v3352_v50 = vadd.f32 1.0, %v5674_v36  ;;  %v3374_v1 = vmul.f32 %v3350_v6, %v3182_v23  ;;  %v3196_v29 = vmul.f32 0.5, %v6852_v62 }
0x128e   : > { %v5678_v27 = vpop.eup %5677  ;;  %3705 = vmatprep.mubr.bf16.mxu0 %v3395_v0  ;;  %v3397_v58 = vpack.c.bf16 %v3381_v33, %v3377_v25  ;;  %v3378_v17 = vmul.f32 %v3354_v51, %v3186_v10  ;;  %v3356_v63 = vadd.f32 1.0, %v5676_v42 }
0x128f   : > { %v5680_v38 = vpop.eup %5679  ;;  %v3359_v24 = vadd.f32 1.0, %v5678_v27  ;;  %v3376_v39 = vmul.f32 %v3352_v50, %v3184_v13 }
0x1290   : > { %v5682_v32 = vpop.eup %5681  ;;  %3762 = vmatprep.mubr.bf16.mxu1 %v3397_v58  ;;  %v3394_v45 = vpack.c.bf16 %v3378_v17, %v3374_v1  ;;  %v3380_v4 = vmul.f32 %v3356_v63, %v3188_v21  ;;  %v3363_v37 = vadd.f32 1.0, %v5680_v38 }
0x1291   : > { %v5684_v22 = vpop.eup %5683  ;;  %v3361_v12 = vadd.f32 1.0, %v5682_v32  ;;  %v3383_v16 = vmul.f32 %v3359_v24, %v3191_v53 }
0x1292   : > { %v5686_v59 = vpop.eup %5685  ;;  %3706 = vmatmul.mubr.bf16.gmra.mrb[48].mxu0 %v3394_v45  ;;  %v3396_v61 = vpack.c.bf16 %v3380_v4, %v3376_v39  ;;  %v3387_v48 = vmul.f32 %v3363_v37, %v3195_v18  ;;  %v3365_v28 = vadd.f32 1.0, %v5684_v22 }
0x1293   : > { %v5688_v8 = vpop.eup %5687  ;;  %v3358_v26 = vadd.f32 1.0, %v5686_v59  ;;  %v3385_v35 = vmul.f32 %v3361_v12, %v3193_v56 }
0x1294   : > { %v5690_v41 = vpop.eup %5689  ;;  %3763 = vmatmul.mubr.bf16.gmra.mrb[52].mxu1 %v3396_v61  ;;  %v3399_v44 = vpack.c.bf16 %v3387_v48, %v3383_v16  ;;  %v3389_v49 = vmul.f32 %v3365_v28, %v3197_v40  ;;  %v3362_v43 = vadd.f32 1.0, %v5688_v8 }
0x1295   : > { %v5692_v9 = vpop.eup %5691  ;;  %v3360_v20 = vadd.f32 1.0, %v5690_v41  ;;  %v3382_v47 = vmul.f32 %v3358_v26, %v3190_v14 }
0x1296   : > { %3713 = vmatprep.mubr.bf16.mxu0 %v3399_v44  ;;  %v3401_v5 = vpack.c.bf16 %v3389_v49, %v3385_v35  ;;  %v3386_v31 = vmul.f32 %v3362_v43, %v3194_v19  ;;  %v3364_v52 = vadd.f32 1.0, %v5692_v9 }
0x1297   : > { %v3384_v54 = vmul.f32 %v3360_v20, %v3192_v7 }
0x1298   : > { %3770 = vmatprep.mubr.bf16.mxu1 %v3401_v5  ;;  %v3398_v57 = vpack.c.bf16 %v3386_v31, %v3382_v47  ;;  %v3388_v55 = vmul.f32 %v3364_v52, %v3196_v29 }
0x129a   : > { %3714 = vmatmul.mubr.bf16.gmra.mrb[52].mxu0 %v3398_v57  ;;  %v3400_v60 = vpack.c.bf16 %v3388_v55, %v3384_v54 }
0x129c   : > { %3771 = vmatmul.mubr.bf16.gmra.mrb[56].mxu1 %v3400_v60 }
0x12d5   : > { %v5007_v23 = vpop.f32.mrb[44].mxu0 }
0x12d6   : > { %v5008_v62 = vpop.f32.mrb[45].mxu0 }
0x12d7   : > { %v5041_v10 = vpop.f32.mrb[48].mxu1  ;;  %v5009_v6 = vadd.f32 %v5008_v62, %v5007_v23  ;;  %v5010_v36 = vpop.f32.mrb[46].mxu0 }
0x12d8   : > { %v5042_v0 = vpop.f32.mrb[49].mxu1  ;;  %v5011_v25 = vpop.f32.mrb[47].mxu0 }
0x12d9   : > { %v3700_v33 = vadd.f32 %v5009_v6, %v4855_v15  ;;  %v5043_v51 = vadd.f32 %v5042_v0, %v5041_v10  ;;  %v5044_v42 = vpop.f32.mrb[50].mxu1  ;;  %v5012_v13 = vadd.f32 %v5011_v25, %v5010_v36 }
0x12da   : > { %v5045_v21 = vpop.f32.mrb[51].mxu1 }
0x12db   : > { %v3757_v50 = vadd.f32 %v5043_v51, %v3700_v33  ;;  %v3703_v27 = vadd.f32 %v5012_v13, %v4855_v15  ;;  %v5046_v58 = vadd.f32 %v5045_v21, %v5044_v42 }
0x12dd   : > { %v6932_v1 = vadd.f32 %v3757_v50, %v6582_v3  ;;  %v3760_v17 = vadd.f32 %v5046_v58, %v3703_v27 }
0x12df   : > { %v6935_v63 = vadd.f32 %v3760_v17, %v6580_v2  ;;  %3789 = vst [vmem:[#allocation2] sm:$0xff] (!%p4888_p10), %v6932_v1 }
0x12e1   : > { %3790 = vst [vmem:[#allocation2 + $0x8] sm:$0xff] (!%p4888_p10), %v6935_v63 }
0x1365   : > { %v5013_v38 = vpop.f32.mrb[48].mxu0 }
0x1366   : > { %v5014_v53 = vpop.f32.mrb[49].mxu0 }
0x1367   : > { %v5047_v18 = vpop.f32.mrb[52].mxu1  ;;  %v5015_v24 = vadd.f32 %v5014_v53, %v5013_v38  ;;  %v5016_v32 = vpop.f32.mrb[50].mxu0 }
0x1368   : > { %v5048_v45 = vpop.f32.mrb[53].mxu1  ;;  %v5017_v39 = vpop.f32.mrb[51].mxu0 }
0x1369   : > { %v3708_v4 = vadd.f32 %v5015_v24, %v4855_v15  ;;  %v5049_v37 = vadd.f32 %v5048_v45, %v5047_v18  ;;  %v5050_v22 = vpop.f32.mrb[54].mxu1  ;;  %v5018_v56 = vadd.f32 %v5017_v39, %v5016_v32 }
0x136a   : > { %v5051_v40 = vpop.f32.mrb[55].mxu1 }
0x136b   : > { %v3765_v12 = vadd.f32 %v5049_v37, %v3708_v4  ;;  %v3711_v59 = vadd.f32 %v5018_v56, %v4855_v15  ;;  %v5052_v3 = vadd.f32 %v5051_v40, %v5050_v22 }
0x136d   : > { %v3781_v61 = vadd.f32 %v3765_v12, %v6597_v30  ;;  %v3768_v16 = vadd.f32 %v5052_v3, %v3711_v59  ;;  %v5019_v2 = vpop.f32.mrb[52].mxu0 }
0x136e   : > { %v5020_v48 = vpop.f32.mrb[53].mxu0 }
0x136f   : > { %v3782_v28 = vadd.f32 %v3768_v16, %v6600_v11  ;;  %v5053_v8 = vpop.f32.mrb[56].mxu1  ;;  %v5021_v14 = vadd.f32 %v5020_v48, %v5019_v2  ;;  %v5022_v19 = vpop.f32.mrb[54].mxu0  ;;  %3791 = vst [vmem:[#allocation2 + $0x10] sm:$0xff] (!%p4888_p10), %v3781_v61 }
0x1370   : > { %v5054_v26 = vpop.f32.mrb[57].mxu1  ;;  %v5023_v41 = vpop.f32.mrb[55].mxu0 }
0x1371   : > { %v3716_v44 = vadd.f32 %v5021_v14, %v4855_v15  ;;  %v5055_v35 = vadd.f32 %v5054_v26, %v5053_v8  ;;  %v5056_v49 = vpop.f32.mrb[58].mxu1  ;;  %v5024_v43 = vadd.f32 %v5023_v41, %v5022_v19  ;;  %3788 = sbr.rel (%p4888_p10) target bundleno = 4986 (0x137a), region = 136  ;;  %3792 = vst [vmem:[#allocation2 + $0x18] sm:$0xff] (!%p4888_p10), %v3782_v28 }
0x1372   : > { %v5057_v9 = vpop.f32.mrb[59].mxu1 }
0x1373   : > { %v3773_v7 = vadd.f32 %v5055_v35, %v3716_v44  ;;  %v3719_v29 = vadd.f32 %v5024_v43, %v4855_v15  ;;  %v5058_v20 = vadd.f32 %v5057_v9, %v5056_v49 }
0x1375   : > { %v3783_v30 = vadd.f32 %v3773_v7, %v6606_v34  ;;  %v3776_v5 = vadd.f32 %v5058_v20, %v3719_v29 }
0x1377   : > { %v3784_v47 = vadd.f32 %v3776_v5, %v6611_v46  ;;  %3793 = vst [vmem:[#allocation2 + $0x20] sm:$0xff] (!%p4888_p10), %v3783_v30 }
0x1379   : > { %3794 = vst [vmem:[#allocation2 + $0x28] sm:$0xff] %v3784_v47 }
0x137a PF: > { %p4889_p11 = scmp.ne.s32.totalorder %s5767_s27, 3 }
0x137b   : > { %3801 = vadd.xlane.f32.xlu0 (!%p4889_p11), %v6932_v1  ;;  %3805 = vadd.xlane.f32.xlu1 (!%p4889_p11), %v3781_v61  ;;  %s7261_s15 = sld [smem:[#allocation26_spill]] (!%p4889_p11)  ;;  %s7262_s17 = sld [smem:[#allocation27_spill]] (!%p4889_p11)  ;;  %v5792_v46 = vmov (!%p4889_p11), 0.0   ;;  %vm5793_vm8 = vmmov (!%p4889_p11), 0   ;;  %vm4188_vm9 = vcmask (!%p4889_p11), 125952   ;;  %vm4359_vm10 = vcmask (!%p4889_p11), 130048  }
0x137c   : > { %3798 = sbr.rel (%p4889_p11) target bundleno = 6193 (0x1831), region = 140  ;;  %5233 = vmatprep.subr.bf16.mxu0 (!%p4889_p11), %v5792_v46  ;;  %5261 = vmatprep.subr.bf16.mxu1 (!%p4889_p11), %v5792_v46  ;;  %s7263_s30 = sld [smem:[#allocation24_spill]] (!%p4889_p11) }
0x137d   : > { %5249 = vmatprep.mubr.msk.bf16.mxu0 (!%p4889_p11), %vm5793_vm8, %v5792_v46  ;;  %5277 = vmatprep.mubr.msk.bf16.mxu1 (!%p4889_p11), %vm5793_vm8, %v5792_v46  ;;  %s7264_s21 = sld [smem:[#allocation25_spill]] (!%p4889_p11)  ;;  %s7265_s9 = sld [smem:[#allocation28_spill]] (!%p4889_p11) }
0x137e   : > { %s7266_s24 = sld [smem:[#allocation29_spill]] (!%p4889_p11)  ;;  %s7267_s6 = sld [smem:[#allocation30_spill]] (!%p4889_p11) }
0x137f   : > { %3803 = vadd.xlane.f32.xlu0 (!%p4889_p11), %v6935_v63  ;;  %3807 = vadd.xlane.f32.xlu1 (!%p4889_p11), %v3782_v28 }
0x1381   : > { %v5701_v11 = vld [vmem:[%s7261_s15] sm:$0xff] (!%p4889_p11)   ;;  %v5704_v38 = vld [vmem:[%s7262_s17 + $0x8] sm:$0xff] (!%p4889_p11)   ;;  %v5705_v53 = vld [vmem:[%s7261_s15 + $0x10] sm:$0xff] (!%p4889_p11)  }
0x1382   : > { %v5702_v34 = vld [vmem:[%s7262_s17] sm:$0xff] (!%p4889_p11)   ;;  %5234 = vmatpush3.bf16.msra.mxu0 (!%p4889_p11), %v5701_v11  ;;  %v5706_v18 = vld [vmem:[%s7262_s17 + $0x10] sm:$0xff] (!%p4889_p11)   ;;  %v5707_v24 = vld [vmem:[%s7261_s15 + $0x18] sm:$0xff] (!%p4889_p11)  }
0x1383   : > { %3809 = vadd.xlane.f32.xlu0 %v3783_v30  ;;  %3811 = vadd.xlane.f32.xlu1 %v3784_v47  ;;  %v5708_v32 = vld [vmem:[%s7262_s17 + $0x18] sm:$0xff]   ;;  %v5709_v45 = vld [vmem:[%s7261_s15 + $0x20] sm:$0xff]   ;;  %v5711_v4 = vld [vmem:[%s7261_s15 + $0x28] sm:$0xff]  }
0x1384   : > { %5262 = vmatpush3.bf16.msra.mxu1 %v5702_v34  ;;  %5235 = vmatprep.subr.bf16.mxu0 %v5792_v46  ;;  %v5710_v39 = vld [vmem:[%s7262_s17 + $0x20] sm:$0xff]   ;;  %v5712_v37 = vld [vmem:[%s7262_s17 + $0x28] sm:$0xff]   ;;  %v5713_v22 = vld [vmem:[%s7261_s15 + $0x30] sm:$0xff]  }
0x1385   : > { %5263 = vmatprep.subr.bf16.mxu1 %v5792_v46  ;;  %v5714_v56 = vld [vmem:[%s7262_s17 + $0x30] sm:$0xff]   ;;  %v5715_v40 = vld [vmem:[%s7261_s15 + $0x38] sm:$0xff]  }
0x1386   : > { %v5716_v12 = vld [vmem:[%s7262_s17 + $0x38] sm:$0xff]  }
0x1388   : > { %5264 = vmatpush3.bf16.msra.mxu1 %v5704_v38 }
0x1389   : > { %5265 = vmatprep.subr.bf16.mxu1 %v5792_v46 }
0x138c   : > { %5266 = vmatpush3.bf16.msra.mxu1 %v5706_v18 }
0x138d   : > { %5267 = vmatprep.subr.bf16.mxu1 %v5792_v46 }
0x1390   : > { %5268 = vmatpush3.bf16.msra.mxu1 %v5708_v32 }
0x1391   : > { %5269 = vmatprep.subr.bf16.mxu1 %v5792_v46 }
0x1394   : > { %5270 = vmatpush3.bf16.msra.mxu1 %v5710_v39 }
0x1395   : > { %5271 = vmatprep.subr.bf16.mxu1 %v5792_v46 }
0x1398   : > { %5272 = vmatpush3.bf16.msra.mxu1 %v5712_v37 }
0x1399   : > { %5273 = vmatprep.subr.bf16.mxu1 %v5792_v46 }
0x139c   : > { %5274 = vmatpush3.bf16.msra.mxu1 %v5714_v56 }
0x139d   : > { %5275 = vmatprep.subr.bf16.mxu1 %v5792_v46 }
0x13a0   : > { %5276 = vmatpush3.bf16.msra.mxu1 %v5716_v12 }
0x13a1   : > { %5295 = vmatprep.subr.bf16.mxu1 %v5792_v46 }
0x1408   : > { %v3802_v31 = vpop.xlane.xlu0 %3801  ;;  %v3806_v52 = vpop.xlane.xlu1 %3805 }
0x1409   : > { %v3813_v57 = vmul.f32 0.0078125, %v3802_v31  ;;  %v3815_v54 = vmul.f32 0.0078125, %v3806_v52  ;;  %v4891_v31 = vld [vmem:[%s7264_s21] ss:$0 sm:$0xff] }
0x140b   : > { %v6958_v55 = vsub.f32 %v6932_v1, %v3813_v57  ;;  %v6960_v60 = vsub.f32 %v3781_v61, %v3815_v54 }
0x140c   : > { %v3804_v23 = vpop.xlane.xlu0 %3803  ;;  %v3808_v15 = vpop.xlane.xlu1 %3807 }
0x140d   : > { %v3814_v62 = vmul.f32 0.0078125, %v3804_v23  ;;  %v3825_v10 = vmul.f32 %v6958_v55, %v6958_v55  ;;  %v3816_v6 = vmul.f32 0.0078125, %v3808_v15  ;;  %v3827_v25 = vmul.f32 %v6960_v60, %v6960_v60 }
0x140f   : > { %v6965_v36 = vsub.f32 %v6935_v63, %v3814_v62  ;;  %3831 = vadd.xlane.f32.xlu0 %v3825_v10  ;;  %v6967_v0 = vsub.f32 %v3782_v28, %v3816_v6  ;;  %v5703_v63 = vld [vmem:[%s7261_s15 + $0x8] sm:$0xff]  }
0x1410   : > { %v3810_v33 = vpop.xlane.xlu0 %3809  ;;  %v3812_v51 = vpop.xlane.xlu1 %3811  ;;  %5236 = vmatpush3.bf16.msra.mxu0 %v5703_v63 }
0x1411   : > { %v3817_v42 = vmul.f32 0.0078125, %v3810_v33  ;;  %v3826_v13 = vmul.f32 %v6965_v36, %v6965_v36  ;;  %v3818_v21 = vmul.f32 0.0078125, %v3812_v51  ;;  %v3828_v58 = vmul.f32 %v6967_v0, %v6967_v0  ;;  %5237 = vmatprep.subr.bf16.mxu0 %v5792_v46 }
0x1413   : > { %v6973_v50 = vsub.f32 %v3783_v30, %v3817_v42  ;;  %3835 = vadd.xlane.f32.xlu0 %v3827_v25  ;;  %3833 = vadd.xlane.f32.xlu1 %v3826_v13  ;;  %v6975_v27 = vsub.f32 %v3784_v47, %v3818_v21  ;;  %v4890_v30 = vld [vmem:[%s7263_s30] ss:$0 sm:$0xff] }
0x1414   : > { %5238 = vmatpush3.bf16.msra.mxu0 %v5705_v53 }
0x1415   : > { %v3829_v1 = vmul.f32 %v6973_v50, %v6973_v50  ;;  %v3830_v17 = vmul.f32 %v6975_v27, %v6975_v27  ;;  %5239 = vmatprep.subr.bf16.mxu0 %v5792_v46 }
0x1417   : > { %3837 = vadd.xlane.f32.xlu1 %v3828_v58  ;;  %3839 = vadd.xlane.f32.xlu0 %v3829_v1 }
0x1418   : > { %5240 = vmatpush3.bf16.msra.mxu0 %v5707_v24 }
0x1419   : > { %5241 = vmatprep.subr.bf16.mxu0 %v5792_v46 }
0x141b   : > { %3841 = vadd.xlane.f32.xlu1 %v3830_v17 }
0x141c   : > { %5242 = vmatpush3.bf16.msra.mxu0 %v5709_v45 }
0x141d   : > { %5243 = vmatprep.subr.bf16.mxu0 %v5792_v46 }
0x1420   : > { %5244 = vmatpush3.bf16.msra.mxu0 %v5711_v4 }
0x1421   : > { %5245 = vmatprep.subr.bf16.mxu0 %v5792_v46 }
0x1424   : > { %5246 = vmatpush3.bf16.msra.mxu0 %v5713_v22 }
0x1425   : > { %5247 = vmatprep.subr.bf16.mxu0 %v5792_v46 }
0x1428   : > { %5248 = vmatpush3.bf16.msra.mxu0 %v5715_v40 }
0x1429   : > { %5289 = vmatprep.subr.bf16.mxu0 %v5792_v46 }
0x149c   : > { %v3832_v59 = vpop.xlane.xlu0 %3831 }
0x149d   : > { %v3843_v3 = vmul.f32 0.0078125, %v3832_v59 }
0x149f   : > { %v3849_v61 = vadd.f32 1e-05, %v3843_v3 }
0x14a0   : > { %v3834_v16 = vpop.xlane.xlu1 %3833  ;;  %v3836_v2 = vpop.xlane.xlu0 %3835 }
0x14a1   : > { %5717 = vrsqrt.f32 %v3849_v61  ;;  %v3844_v48 = vmul.f32 0.0078125, %v3834_v16  ;;  %v3845_v28 = vmul.f32 0.0078125, %v3836_v2 }
0x14a3   : > { %v3850_v8 = vadd.f32 1e-05, %v3844_v48  ;;  %v3851_v14 = vadd.f32 1e-05, %v3845_v28 }
0x14a4   : > { %v3838_v19 = vpop.xlane.xlu1 %3837  ;;  %v3840_v26 = vpop.xlane.xlu0 %3839 }
0x14a5   : > { %5719 = vrsqrt.f32 %v3850_v8  ;;  %v3846_v41 = vmul.f32 0.0078125, %v3838_v19  ;;  %v3847_v35 = vmul.f32 0.0078125, %v3840_v26 }
0x14a6   : > { %5721 = vrsqrt.f32 %v3851_v14 }
0x14a7   : > { %v3852_v44 = vadd.f32 1e-05, %v3846_v41  ;;  %v3853_v7 = vadd.f32 1e-05, %v3847_v35 }
0x14a8   : > { %v3842_v49 = vpop.xlane.xlu1 %3841 }
0x14a9   : > { %5723 = vrsqrt.f32 %v3852_v44  ;;  %v3848_v43 = vmul.f32 0.0078125, %v3842_v49 }
0x14ab   : > { %v5718_v9 = vpop.eup %5717  ;;  %v3854_v29 = vadd.f32 1e-05, %v3848_v43  ;;  %v4211_v43 = vld [vmem:[%s7265_s9] sm:$0xf] }
0x14ac   : > { %v3861_v20 = vmul.f32 %v5718_v9, %v6958_v55  ;;  %v4218_v9 = vld [vmem:[%s7266_s24] sm:$0xf] }
0x14ad   : > { %5725 = vrsqrt.f32 %v3854_v29 }
0x14ae   : > { %5727 = vrsqrt.f32 %v3853_v7  ;;  %v3873_v11 = vmul.f32 %v4890_v30, %v3861_v20  ;;  %v5794_v7 = vmov 0  }
0x14af   : > { %v5720_v5 = vpop.eup %5719  ;;  %5699 = vset.pattern.permute.xlu0 %v5794_v7  ;;  %5700 = vset.pattern.permute.xlu1 %v5794_v7 }
0x14b0   : > { %v3862_v47 = vmul.f32 %v5720_v5, %v6965_v36  ;;  %v5722_v34 = vpop.eup %5721  ;;  %v3885_v54 = vadd.f32 %v4891_v31, %v3873_v11 }
0x14b1   : > { %v3863_v55 = vmul.f32 %v5722_v34, %v6960_v60 }
0x14b2   : > { %v3874_v52 = vmul.f32 %v4890_v30, %v3862_v47 }
0x14b3   : > { %v5724_v57 = vpop.eup %5723  ;;  %v3875_v36 = vmul.f32 %v4890_v30, %v3863_v55 }
0x14b4   : > { %v3886_v23 = vadd.f32 %v4891_v31, %v3874_v52  ;;  %v3864_v15 = vmul.f32 %v5724_v57, %v6967_v0 }
0x14b5   : > { %v3887_v42 = vadd.f32 %v4891_v31, %v3875_v36 }
0x14b6   : > { %v3891_v62 = vpack.c.bf16 %v3886_v23, %v3885_v54  ;;  %v3876_v10 = vmul.f32 %v4890_v30, %v3864_v15 }
0x14b7   : > { %v5726_v6 = vpop.eup %5725 }
0x14b8   : > { %5250 = vmatmul.mubr.bf16.vlgmr.msra.gmra.mrb[0].mxu0 %v3891_v62  ;;  %5278 = vmatmul.mubr.bf16.vlgmr.msra.gmra.mrb[0].mxu1 %v3891_v62  ;;  %v5728_v25 = vpop.eup %5727  ;;  %v3888_v33 = vadd.f32 %v4891_v31, %v3876_v10  ;;  %v3866_v51 = vmul.f32 %v5726_v6, %v6975_v27 }
0x14b9   : > { %5253 = vmatprep.mubr.msk.bf16.mxu0 %vm5793_vm8, %v5792_v46  ;;  %5281 = vmatprep.mubr.msk.bf16.mxu1 %vm5793_vm8, %v5792_v46  ;;  %v3865_v60 = vmul.f32 %v5728_v25, %v6973_v50 }
0x14ba   : > { %v3892_v0 = vpack.c.bf16 %v3888_v33, %v3887_v42  ;;  %v3878_v13 = vmul.f32 %v4890_v30, %v3866_v51 }
0x14bb   : > { %v3877_v21 = vmul.f32 %v4890_v30, %v3865_v60  ;;  %v4311_v60 = vld [vmem:[%s7267_s6] sm:$0xff] }
0x14bc   : > { %v3890_v58 = vadd.f32 %v4891_v31, %v3878_v13  ;;  %v4312_v13 = vld [vmem:[%s7267_s6 + $0x8] sm:$0xff] }
0x14bd   : > { %v3889_v1 = vadd.f32 %v4891_v31, %v3877_v21 }
0x14bf   : > { %v3893_v17 = vpack.c.bf16 %v3890_v58, %v3889_v1  ;;  %v4316_v58 = vld [vmem:[%s7267_s6 + $0x28] sm:$0xff] }
0x14c0   : > { %5254 = vmatmul.mubr.bf16.gmra.mrb[4].mxu0 %v3892_v0  ;;  %5282 = vmatmul.mubr.bf16.gmra.mrb[4].mxu1 %v3892_v0  ;;  %v4315_v0 = vld [vmem:[%s7267_s6 + $0x20] sm:$0xff] }
0x14c1   : > { %5257 = vmatprep.mubr.msk.bf16.mxu0 %vm5793_vm8, %v5792_v46  ;;  %5285 = vmatprep.mubr.msk.bf16.mxu1 %vm5793_vm8, %v5792_v46  ;;  %v4909_v21 = vcombine.high %v4311_v60, %v4315_v0  ;;  %v4908_v1 = vcombine.low %v4311_v60, %v4315_v0 }
0x14c8   : > { %5258 = vmatmul.mubr.bf16.gmra.mrb[8].mxu0 %v3893_v17  ;;  %5286 = vmatmul.mubr.bf16.gmra.mrb[8].mxu1 %v3893_v17  ;;  %v4910_v17 = vcombine.low %v4312_v13, %v4316_v58 }
0x14c9   : > { %5297 = vmatprep.mubr.msk.bf16.mxu1 %vm5793_vm8, %v5792_v46  ;;  %5291 = vmatprep.mubr.msk.bf16.mxu0 %vm5793_vm8, %v5792_v46 }
0x158b   : > { %v7067_v50 = vpop.f32.mrb[0].mxu0  ;;  %v4111_v27 = vpop.f32.mrb[0].mxu1 }
0x158c   : > { %v5251_v63 = vpop.f32.mrb[1].mxu0  ;;  %v5279_v38 = vpop.f32.mrb[1].mxu1  ;;  %v4130_v59 = vmul.f32 %v7067_v50, %v7067_v50  ;;  %v7109_v27 = vld [vmem:[%s7267_s6 + $0x10] sm:$0xff] }
0x158d   : > { %v7069_v53 = vpop.f32.mrb[2].mxu0  ;;  %v4113_v18 = vpop.f32.mrb[2].mxu1  ;;  %v7114_v63 = vld [vmem:[%s7267_s6 + $0x30] sm:$0xff]  ;;  %v7119_v38 = vld [vmem:[%s7267_s6 + $0x18] sm:$0xff] }
0x158e   : > { %v5252_v24 = vpop.f32.mrb[3].mxu0  ;;  %v5280_v32 = vpop.f32.mrb[3].mxu1  ;;  %v4131_v44 = vmul.f32 %v7069_v53, %v7069_v53  ;;  %v4913_v18 = vcombine.high %v7109_v27, %v7114_v63 }
0x158f   : > { %v7128_v24 = vld [vmem:[%s7267_s6 + $0x38] sm:$0xff] }
0x1590   : > { %v4914_v32 = vcombine.low %v7119_v38, %v7128_v24 }
0x1593   : > { %v4000_v45 = vpop.f32.mrb[4].mxu0  ;;  %v7071_v39 = vpop.f32.mrb[4].mxu1 }
0x1594   : > { %v5255_v4 = vpop.f32.mrb[5].mxu0  ;;  %v5283_v37 = vpop.f32.mrb[5].mxu1  ;;  %v4140_v35 = vmul.f32 %v7071_v39, %v7071_v39  ;;  %v4915_v45 = vcombine.high %v7119_v38, %v7128_v24 }
0x1595   : > { %v4002_v22 = vpop.f32.mrb[6].mxu0  ;;  %v4120_v56 = vpop.f32.mrb[6].mxu1 }
0x1596   : > { %v5256_v40 = vpop.f32.mrb[7].mxu0  ;;  %v5284_v12 = vpop.f32.mrb[7].mxu1  ;;  %v4225_v46 = vmul.f32 %v4002_v22, %v4002_v22  ;;  %v4141_v49 = vsel %vm1987_vm5, %v4140_v35, 0.0 }
0x1598   : > { %4227 = vadd.xlane.f32.xlu0 %v4225_v46 }
0x159b   : > { %v4007_v3 = vpop.f32.mrb[8].mxu0  ;;  %v4124_v61 = vpop.f32.mrb[8].mxu1 }
0x159c   : > { %v5287_v16 = vpop.f32.mrb[9].mxu1  ;;  %4132 = vadd.xlane.f32.xlu0 %v4130_v59  ;;  %v5259_v2 = vpop.f32.mrb[9].mxu0  ;;  %v4226_v48 = vmul.f32 %v4007_v3, %v4007_v3 }
0x159d   : > { %v4010_v28 = vpop.f32.mrb[10].mxu0  ;;  %v4126_v8 = vpop.f32.mrb[10].mxu1 }
0x159e   : > { %v5288_v14 = vpop.f32.mrb[11].mxu1  ;;  %4229 = vadd.xlane.f32.xlu1 %v4226_v48  ;;  %v5260_v19 = vpop.f32.mrb[11].mxu0  ;;  %v4235_v26 = vmul.f32 %v4126_v8, %v4126_v8 }
0x15a0   : > { %v4236_v41 = vsel %vm1987_vm5, %v4235_v26, 0.0 }
0x15a1   : > { %4237 = vadd.xlane.f32.xlu0 %v4236_v41 }
0x15a2   : > { %4134 = vadd.xlane.f32.xlu1 %v4131_v44 }
0x15a6   : > { %4142 = vadd.xlane.f32.xlu1 %v4141_v49 }
0x15b7   : > { %4214 = vperm.xlu0 %5699, %v4211_v43   ;;  %4221 = vperm.xlu1 %5700, %v4218_v9  }
0x1625   : > { %v4228_v29 = vpop.xlane.xlu0 %4227 }
0x1626   : > { %5729 = vrsqrt.f32 %v4228_v29 }
0x1629   : > { %v4133_v20 = vpop.xlane.xlu0 %4132 }
0x162b   : > { %v4230_v30 = vpop.xlane.xlu1 %4229 }
0x162c   : > { %5731 = vrsqrt.f32 %v4230_v30 }
0x162d   : > { %5733 = vrsqrt.f32 %v4133_v20 }
0x162e   : > { %v4238_v5 = vpop.xlane.xlu0 %4237 }
0x162f   : > { %5735 = vrsqrt.f32 %v4238_v5  ;;  %v4135_v47 = vpop.xlane.xlu1 %4134 }
0x1630   : > { %5737 = vrsqrt.f32 %v4135_v47  ;;  %v5730_v34 = vpop.eup %5729 }
0x1631   : > { %v4233_v52 = vmul.f32 %v5730_v34, %v4002_v22 }
0x1633   : > { %v4143_v11 = vpop.xlane.xlu1 %4142 }
0x1634   : > { %5739 = vrsqrt.f32 %v4143_v11 }
0x1636   : > { %v5732_v31 = vpop.eup %5731  ;;  %v4215_v60 = vpop.permute.xlu0 %4214 }
0x1637   : > { %v4234_v57 = vmul.f32 %v5732_v31, %v4007_v3  ;;  %v5734_v54 = vpop.eup %5733 }
0x1638   : > { %v4138_v62 = vmul.f32 %v5734_v54, %v7067_v50  ;;  %v4911_v50 = vcombine.high %v4312_v13, %v4316_v58  ;;  %v4222_v13 = vpop.permute.xlu1 %4221 }
0x1639   : > { %v5736_v23 = vpop.eup %5735  ;;  %v4242_v55 = vpack.c.bf16 %v4234_v57, %v4233_v52 }
0x163a   : > { %v5738_v15 = vpop.eup %5737  ;;  %v4240_v6 = vmul.f32 %v5736_v23, %v4126_v8 }
0x163b   : > { %5296 = vmatpush3.bf16.xpose.msra.mxu1 %v4242_v55  ;;  %v4139_v10 = vmul.f32 %v5738_v15, %v7069_v53  ;;  %v4912_v53 = vcombine.low %v7109_v27, %v7114_v63 }
0x163c   : > { %v4241_v51 = vpack.c.bf16 %v4240_v6, %v4240_v6  ;;  %4404 = vmatprep.subr.bf16.mxu1 %v4911_v50 }
0x163d   : > { %v4147_v36 = vpack.c.bf16 %v4139_v10, %v4138_v62 }
0x163e   : > { %v5740_v25 = vpop.eup %5739 }
0x163f   : > { %5290 = vmatpush3.bf16.xpose.msra.mxu0 %v4147_v36  ;;  %v4145_v33 = vmul.f32 %v5740_v25, %v7071_v39 }
0x1640   : > { %4363 = vmatprep.subr.bf16.mxu0 %v4909_v21 }
0x1641   : > { %v4146_v42 = vpack.c.bf16 %v4145_v33, %v4145_v33 }
0x1642   : > { %5298 = vmatmul.mubr.bf16.vlgmr.msra.gmra.mrb[12].mxu1 %v4241_v51 }
0x1643   : > { %4436 = vmatprep.mubr.bf16.mxu1 %v5794_v7  ;;  %4405 = vmatpush1.bf16.msra.mxu1 %v4910_v17 }
0x1644   : > { %4486 = vmatprep.subr.bf16.mxu1 %v4915_v45 }
0x1646   : > { %5292 = vmatmul.mubr.bf16.vlgmr.msra.gmra.mrb[12].mxu0 %v4146_v42 }
0x1647   : > { %4395 = vmatprep.mubr.bf16.mxu0 %v5794_v7  ;;  %4364 = vmatpush1.bf16.msra.mxu0 %v4908_v1 }
0x1648   : > { %4445 = vmatprep.subr.bf16.mxu0 %v4913_v18 }
0x1715   : > { %v4277_v39 = vpop.f32.mrb[12].mxu1 }
0x1716   : > { %v4283_v4 = vsel %vm4188_vm9, %v4277_v39, 0.0  ;;  %v5299_v37 = vpop.f32.mrb[13].mxu1 }
0x1717   : > { %v4284_v22 = vrot.slane %v4283_v4, 4  ;;  %v4280_v56 = vpop.f32.mrb[14].mxu1 }
0x1718   : > { %v5300_v40 = vpop.f32.mrb[15].mxu1 }
0x1719   : > { %v4285_v12 = vadd.f32 %v4284_v22, %v4283_v4  ;;  %v4182_v46 = vpop.f32.mrb[12].mxu0 }
0x171a   : > { %v4189_v59 = vsel %vm4188_vm9, %v4182_v46, 0.0  ;;  %v5293_v3 = vpop.f32.mrb[13].mxu0 }
0x171b   : > { %v4286_v61 = vrot.slane %v4285_v12, 2  ;;  %v4190_v16 = vrot.slane %v4189_v59, 4  ;;  %v4185_v2 = vpop.f32.mrb[14].mxu0 }
0x171c   : > { %v5294_v48 = vpop.f32.mrb[15].mxu0 }
0x171d   : > { %v4287_v28 = vadd.f32 %v4286_v61, %v4285_v12  ;;  %v4191_v8 = vadd.f32 %v4190_v16, %v4189_v59 }
0x171f   : > { %v4288_v14 = vrot.slane %v4287_v28, 1  ;;  %v4192_v19 = vrot.slane %v4191_v8, 2 }
0x1721   : > { %v4289_v26 = vadd.f32 %v4288_v14, %v4287_v28  ;;  %v4193_v41 = vadd.f32 %v4192_v19, %v4191_v8 }
0x1723   : > { %v4290_v44 = vmul.f32 0.25, %v4289_v26  ;;  %v4194_v35 = vrot.slane %v4193_v41, 1 }
0x1725   : > { %v4291_v49 = vsub.f32 %v4277_v39, %v4290_v44  ;;  %v4195_v43 = vadd.f32 %v4194_v35, %v4193_v41 }
0x1727   : > { %v4292_v9 = vmul.f32 %v4291_v49, %v4291_v49  ;;  %v4197_v29 = vmul.f32 0.25, %v4195_v43 }
0x1729   : > { %v4293_v20 = vsel %vm4188_vm9, %v4292_v9, 0.0  ;;  %v4198_v30 = vsub.f32 %v4182_v46, %v4197_v29 }
0x172a   : > { %v4294_v5 = vrot.slane %v4293_v20, 4 }
0x172b   : > { %v4199_v47 = vmul.f32 %v4198_v30, %v4198_v30 }
0x172c   : > { %v4295_v11 = vadd.f32 %v4294_v5, %v4293_v20 }
0x172d   : > { %v4200_v34 = vsel %vm4188_vm9, %v4199_v47, 0.0 }
0x172e   : > { %v4296_v31 = vrot.slane %v4295_v11, 2  ;;  %v4201_v52 = vrot.slane %v4200_v34, 4 }
0x1730   : > { %v4297_v57 = vadd.f32 %v4296_v31, %v4295_v11  ;;  %v4202_v54 = vadd.f32 %v4201_v52, %v4200_v34 }
0x1732   : > { %v4298_v23 = vrot.slane %v4297_v57, 1  ;;  %v4203_v55 = vrot.slane %v4202_v54, 2 }
0x1734   : > { %v4299_v15 = vadd.f32 %v4298_v23, %v4297_v57  ;;  %v4204_v62 = vadd.f32 %v4203_v55, %v4202_v54 }
0x1736   : > { %v4300_v10 = vmul.f32 0.25, %v4299_v15  ;;  %v4205_v6 = vrot.slane %v4204_v62, 1 }
0x1738   : > { %v4301_v36 = vadd.f32 1e-05, %v4300_v10  ;;  %v4206_v25 = vadd.f32 %v4205_v6, %v4204_v62 }
0x173a   : > { %5741 = vrsqrt.f32 %v4301_v36  ;;  %v4207_v33 = vmul.f32 0.25, %v4206_v25 }
0x173c   : > { %v4208_v51 = vadd.f32 1e-05, %v4207_v33 }
0x173e   : > { %5743 = vrsqrt.f32 %v4208_v51 }
0x1744   : > { %v5742_v42 = vpop.eup %5741 }
0x1745   : > { %v4303_v0 = vmul.f32 %v5742_v42, %v4291_v49 }
0x1747   : > { %v4304_v21 = vmul.f32 %v4303_v0, %v4215_v60 }
0x1748   : > { %v5744_v58 = vpop.eup %5743 }
0x1749   : > { %v4210_v1 = vmul.f32 %v5744_v58, %v4198_v30  ;;  %v4305_v17 = vadd.f32 %v4304_v21, %v4222_v13 }
0x174b   : > { %v4217_v50 = vmul.f32 %v4215_v60, %v4210_v1  ;;  %v4307_v45 = vrot.slane %v4305_v17, 4 }
0x174d   : > { %v4224_v18 = vadd.f32 %v4222_v13, %v4217_v50 }
0x174f   : > { %v4309_v39 = vsel %vm1987_vm5, %v4224_v18, %v4307_v45 }
0x1750   : > { %v4310_v4 = vpack.c.bf16 %v4309_v39, %v4309_v39 }
0x1752   : > { %4916 = vmatmul.mubr.msk.bf16.vlgmr.msra.gmra.mrb[16].mxu0 %vm4359_vm10, %v4310_v4  ;;  %4917 = vmatmul.mubr.msk.bf16.vlgmr.msra.gmra.mrb[16].mxu1 %vm4359_vm10, %v4310_v4 }
0x1753   : > { %4446 = vmatpush1.bf16.msra.mxu0 %v4912_v53  ;;  %4487 = vmatpush1.bf16.msra.mxu1 %v4914_v32 }
0x1754   : > { %4477 = vmatprep.mubr.bf16.mxu0 %v5794_v7  ;;  %4518 = vmatprep.mubr.bf16.mxu1 %v5794_v7 }
0x175a   : > { %4918 = vmatmul.mubr.msk.bf16.vlgmr.msra.gmra.mrb[20].mxu0 %vm4359_vm10, %v4310_v4  ;;  %4919 = vmatmul.mubr.msk.bf16.vlgmr.msra.gmra.mrb[20].mxu1 %vm4359_vm10, %v4310_v4 }
0x1825   : > { %v4397_v37 = vpop.f32.mrb[16].mxu0  ;;  %v4438_v22 = vpop.f32.mrb[16].mxu1 }
0x1826   : > { %4527 = vst [vmem:[%s6033_s3] sm:$0xff] %v4397_v37  ;;  %4529 = vst [vmem:[%s6033_s3 + $0x10] sm:$0xff] %v4438_v22  ;;  %v4399_v27 = vpop.f32.mrb[17].mxu0  ;;  %v4440_v63 = vpop.f32.mrb[17].mxu1 }
0x1827   : > { %4528 = vst [vmem:[%s6033_s3 + $0x8] sm:$0xff] %v4399_v27  ;;  %4530 = vst [vmem:[%s6033_s3 + $0x18] sm:$0xff] %v4440_v63  ;;  %v4401_v38 = vpop.f32.mrb[18].mxu0  ;;  %v4442_v53 = vpop.f32.mrb[18].mxu1 }
0x1828   : > { %v4402_v24 = vpop.f32.mrb[19].mxu0  ;;  %v4443_v32 = vpop.f32.mrb[19].mxu1 }
0x182d   : > { %v4479_v56 = vpop.f32.mrb[20].mxu0  ;;  %v4520_v7 = vpop.f32.mrb[20].mxu1 }
0x182e   : > { %4531 = vst [vmem:[%s6033_s3 + $0x20] sm:$0xff] %v4479_v56  ;;  %4533 = vst [vmem:[%s6033_s3 + $0x30] sm:$0xff] %v4520_v7  ;;  %v4481_v40 = vpop.f32.mrb[21].mxu0  ;;  %v4522_v12 = vpop.f32.mrb[21].mxu1 }
0x182f   : > { %4532 = vst [vmem:[%s6033_s3 + $0x28] sm:$0xff] %v4481_v40  ;;  %4534 = vst [vmem:[%s6033_s3 + $0x38] sm:$0xff] %v4522_v12  ;;  %v4483_v46 = vpop.f32.mrb[22].mxu0  ;;  %v4524_v59 = vpop.f32.mrb[22].mxu1 }
0x1830   : > { %v4484_v3 = vpop.f32.mrb[23].mxu0  ;;  %v4525_v61 = vpop.f32.mrb[23].mxu1 }
0x1831 PF: > { %s7268_s27 = sld [smem:[#allocation5_spill]]  ;;  %s7270_s3 = sld [smem:[#allocation4_spill]] }
0x1832   : > { %s7271_s7 = sld [smem:[#allocation6_spill]]  ;;  %s7272_s28 = sld [smem:[#allocation7_spill]] }
0x1837   : > { %s36_s8 = sadd.s32 1, %s7268_s27   ;;  %s7269_s27 = sld [smem:[#allocation3_spill]] }
0x1838   : > { %p33_p12 = scmp.ge.s32.totalorder %s36_s8, 10  }
0x183a   :  { %35 = sbr.rel (!%p33_p12) target bundleno = 23 (0x17), region = 206 }

</bundles_post_ra>
